<compile_context>
chip_gen: v6e
topology: v6e:2x2x1
jax: 0.10.0
libtpu: 0.0.40
codegen_flags: <defaults>
</compile_context>

<pallas_src>
import functools

import jax
import jax.numpy as jnp
from jax.experimental import pallas as pl
from jax.experimental.pallas import tpu as pltpu


_EPS = 1e-5
_NEG_SLOPE = 0.3
_TL_MAX = 1024                     # multiple of 256 -> pooled multi-tile blocks stay 128-aligned
_VMEM_LIMIT = 32 * 1024 * 1024     # safe on v5e/v6e (128 MiB) and v7x (64 MiB) alike


def _ceil_to(v, m):
    return ((v + m - 1) // m) * m


def _leaky(z):
    return jnp.where(z >= 0.0, z, _NEG_SLOPE * z)


# ---------------------------------------------------------------------------
# Fused pass: [previous BN affine (+LeakyReLU)] -> Conv1d on one L tile
#             + per-tile BN partial statistics of this layer's conv output.
#   bn_ref  : (2, C_in, 1)   previous layer's [scale, shift] (identity for raw /
#                            already-activated inputs)
#   lh_ref  : (N, C_in, 128) 128-lane block just left of the current tile (clamped)
#   cur_ref : (N, C_in, TL)  current input tile
#   rh_ref  : (N, C_in, 128) 128-lane block just right of the current tile (clamped)
#   w_ref   : (C_out, K*C_in) tap-major / channel-minor flattened conv weight
#   y_ref   : (N, C_out, TL) pre-BN conv output tile (bf16, single store)
#   st_ref  : (1, C_out, 2)  [sum, sum-of-squares] over valid output columns
# ---------------------------------------------------------------------------
def _fused_conv_kernel(bn_ref, lh_ref, cur_ref, rh_ref, w_ref, y_ref, st_ref,
                       *, K, lpad, L_in, L_out, act):
    N, C_in, TL = cur_ref.shape
    C_out = w_ref.shape[0]
    rpad = K - 1 - lpad
    W = TL + K - 1
    l = pl.program_id(0)
    last = pl.num_programs(0) - 1

    scale = bn_ref[0]                                   # (C_in, 1) f32
    shift = bn_ref[1]

    # Assemble the (N, C_in, TL + K - 1) input window.  Halo columns come from the
    # clamped 128-lane neighbour blocks; at the array edges they are zeroed.
    pieces = []
    if lpad > 0:
        lmask = (l > 0).astype(jnp.float32)
        pieces.append(lh_ref[:, :, 128 - lpad:].astype(jnp.float32) * lmask)
    pieces.append(cur_ref[...].astype(jnp.float32))
    if rpad > 0:
        rmask = (l < last).astype(jnp.float32)
        pieces.append(rh_ref[:, :, :rpad].astype(jnp.float32) * rmask)
    window = pieces[0] if len(pieces) == 1 else jnp.concatenate(pieces, axis=2)

    # Previous layer's BN affine (+ LeakyReLU) fused into this layer's input path.
    window = window * scale + shift
    if act:
        window = _leaky(window)
    # Reproduce Conv1d zero padding and mask stored-but-invalid tail columns.
    col_in = jax.lax.broadcasted_iota(jnp.int32, (1, W), 1) + (l * TL - lpad)
    window = jnp.where((col_in >= 0) & (col_in < L_in), window, 0.0)

    valid_out = (jax.lax.broadcasted_iota(jnp.int32, (1, TL), 1) + l * TL) < L_out
    wm = w_ref[...]
    s = jnp.zeros((C_out, 1), jnp.float32)
    ss = jnp.zeros((C_out, 1), jnp.float32)

    if C_in == 1:
        # Rank-1 taps: K broadcast FMAs on the VPU (contraction-1 matmuls waste the MXU).
        for n in range(N):
            acc = jnp.zeros((C_out, TL), jnp.float32)
            for dk in range(K):
                acc = acc + wm[:, dk:dk + 1] * window[n, 0:1, dk:dk + TL]
            y_ref[n] = acc.astype(y_ref.dtype)
            am = jnp.where(valid_out, acc, 0.0)
            s = s + jnp.sum(am, axis=1, keepdims=True)
            ss = ss + jnp.sum(am * am, axis=1, keepdims=True)
    else:
        # im2col slab (tap-major, channel-minor) -> one MXU dot per batch row,
        # bf16 operands / f32 accumulate.
        wb = window.astype(jnp.bfloat16)
        slab = jnp.concatenate([wb[:, :, dk:dk + TL] for dk in range(K)], axis=1)
        for n in range(N):
            acc = jnp.dot(wm, slab[n], preferred_element_type=jnp.float32)
            y_ref[n] = acc.astype(y_ref.dtype)
            am = jnp.where(valid_out, acc, 0.0)
            s = s + jnp.sum(am, axis=1, keepdims=True)
            ss = ss + jnp.sum(am * am, axis=1, keepdims=True)
    st_ref[0] = jnp.concatenate([s, ss], axis=1)         # (C_out, 2)


# ---------------------------------------------------------------------------
# Standalone finalize kernels (used only at the pool boundary / network output).
#   pool variant: MaxPool1d(2) (exact: bf16 even/odd selection via resident 0/1
#   matrices, then max) followed by BN affine + LeakyReLU — pooling first is exact
#   because the affine has positive scale and LeakyReLU is monotone.
# ---------------------------------------------------------------------------
def _bn_act_pool_kernel(y_ref, bn_ref, sele_ref, selo_ref, o_ref):
    N = y_ref.shape[0]
    scale = bn_ref[0]                                    # (C, 1) f32, > 0
    shift = bn_ref[1]
    sel_e = sele_ref[...]                                # (TL, TL//2) bf16 0/1
    sel_o = selo_ref[...]
    for n in range(N):
        yn = y_ref[n]                                    # (C, TL) bf16
        even = jnp.dot(yn, sel_e, preferred_element_type=jnp.float32)
        odd = jnp.dot(yn, sel_o, preferred_element_type=jnp.float32)
        z = jnp.maximum(even, odd) * scale + shift
        o_ref[n] = _leaky(z).astype(o_ref.dtype)


def _bn_act_kernel(y_ref, bn_ref, o_ref):
    z = y_ref[...].astype(jnp.float32) * bn_ref[0] + bn_ref[1]
    o_ref[...] = _leaky(z).astype(o_ref.dtype)


# ---------------------------------------------------------------------------
# One fused conv layer: [prev BN + act] -> Conv1d -> (bf16 y, this layer's BN affine).
# ---------------------------------------------------------------------------
def _conv_bn_stats(x_store, L_in, w, bn_prev, act_prev):
    N, C_in, Ls = x_store.shape
    C_out, _, K = w.shape
    lpad = (K - 1) // 2
    L_out = L_in + 2 * lpad - (K - 1)

    TL = min(_TL_MAX, _ceil_to(L_out, 128))
    num_t = pl.cdiv(L_out, TL)
    R = TL // 128

    # Ensure every block read (tiles + clamped 128-lane halos) is in bounds.  This is a
    # no-op between fused layers; it only pads the tiny raw input / post-pool tails.
    target = max(num_t * TL, _ceil_to(Ls, 128))
    if target > Ls:
        x_store = jnp.pad(x_store, ((0, 0), (0, 0), (0, target - Ls)))
    nblk = x_store.shape[2] // 128

    if bn_prev is None:   # raw or already-activated input: identity affine, no act
        bn_prev = jnp.concatenate(
            [jnp.ones((1, C_in, 1), jnp.float32),
             jnp.zeros((1, C_in, 1), jnp.float32)], axis=0)

    # Weight pre-layout: (C_out, K*C_in), tap-major / channel-minor (matches the slab).
    w_flat = jnp.transpose(w, (0, 2, 1)).reshape(C_out, K * C_in)
    w_flat = w_flat.astype(jnp.float32 if C_in == 1 else jnp.bfloat16)

    body = functools.partial(_fused_conv_kernel, K=K, lpad=lpad,
                             L_in=L_in, L_out=L_out, act=act_prev)

    y, stats = pl.pallas_call(
        body,
        grid=(num_t,),
        in_specs=[
            pl.BlockSpec((2, C_in, 1), lambda l: (0, 0, 0)),                 # prev BN
            pl.BlockSpec((N, C_in, 128),
                         lambda l: (0, 0, jnp.maximum(l * R - 1, 0))),       # left halo
            pl.BlockSpec((N, C_in, TL), lambda l: (0, 0, l)),                # current tile
            pl.BlockSpec((N, C_in, 128),
                         lambda l: (0, 0, jnp.minimum((l + 1) * R, nblk - 1))),  # right halo
            pl.BlockSpec((C_out, K * C_in), lambda l: (0, 0)),               # weights
        ],
        out_specs=[
            pl.BlockSpec((N, C_out, TL), lambda l: (0, 0, l)),
            pl.BlockSpec((1, C_out, 2), lambda l: (l, 0, 0)),
        ],
        out_shape=[
            jax.ShapeDtypeStruct((N, C_out, num_t * TL), jnp.bfloat16),
            jax.ShapeDtypeStruct((num_t, C_out, 2), jnp.float32),
        ],
        compiler_params=pltpu.CompilerParams(
            dimension_semantics=("parallel",),
            vmem_limit_bytes=_VMEM_LIMIT),
    )(bn_prev, x_store, x_store, x_store, w_flat)

    # Tiny XLA glue: reduce per-tile partials -> per-channel scale / shift (train-mode BN).
    cnt = jnp.float32(N * L_out)
    total = jnp.sum(stats, axis=0)                                           # (C_out, 2)
    mean = total[:, 0] / cnt
    var = jnp.maximum(total[:, 1] / cnt - mean * mean, 0.0)                  # biased var
    scale = jax.lax.rsqrt(var + _EPS)                                        # gamma = 1
    shift = -mean * scale                                                    # beta = 0
    bn = jnp.stack([scale, shift], axis=0).reshape(2, C_out, 1)
    return y, bn, L_out, TL, num_t


# ---------------------------------------------------------------------------
# Finalize: BN affine + LeakyReLU on the last pre-BN output (optionally fused MaxPool1d(2)).
# ---------------------------------------------------------------------------
def _finalize(y, bn, TL, num_t, L_valid, *, pool, out_dtype):
    N, C, _ = y.shape
    cparams = pltpu.CompilerParams(dimension_semantics=("parallel",),
                                   vmem_limit_bytes=_VMEM_LIMIT)
    if pool:
        TLo = TL // 2
        r = jax.lax.broadcasted_iota(jnp.int32, (TL, TLo), 0)
        c = jax.lax.broadcasted_iota(jnp.int32, (TL, TLo), 1)
        sel_e = (r == 2 * c).astype(jnp.bfloat16)
        sel_o = (r == 2 * c + 1).astype(jnp.bfloat16)
        out = pl.pallas_call(
            _bn_act_pool_kernel,
            grid=(num_t,),
            in_specs=[
                pl.BlockSpec((N, C, TL), lambda l: (0, 0, l)),
                pl.BlockSpec((2, C, 1), lambda l: (0, 0, 0)),
                pl.BlockSpec((TL, TLo), lambda l: (0, 0)),
                pl.BlockSpec((TL, TLo), lambda l: (0, 0)),
            ],
            out_specs=pl.BlockSpec((N, C, TLo), lambda l: (0, 0, l)),
            out_shape=jax.ShapeDtypeStruct((N, C, num_t * TLo), out_dtype),
            compiler_params=cparams,
        )(y, bn, sel_e, sel_o)
        return out, L_valid // 2
    out = pl.pallas_call(
        _bn_act_kernel,
        grid=(num_t,),
        in_specs=[
            pl.BlockSpec((N, C, TL), lambda l: (0, 0, l)),
            pl.BlockSpec((2, C, 1), lambda l: (0, 0, 0)),
        ],
        out_specs=pl.BlockSpec((N, C, TL), lambda l: (0, 0, l)),
        out_shape=jax.ShapeDtypeStruct((N, C, num_t * TL), out_dtype),
        compiler_params=cparams,
    )(y, bn)
    return out, L_valid


# ---------------------------------------------------------------------------
# XceptionStemBlock: parameter construction + forward composition.
# ---------------------------------------------------------------------------
class XceptionStemBlockPallas:
    def __init__(self, kernel, depth=1, max_dim=64, key=None):
        if max_dim in (64, 128):
            input_dim, output_dim = [1, 32], [32, 64]
        elif max_dim == 32:
            input_dim, output_dim = [1, 16], [16, 32]
        else:
            raise ValueError("max_dim must be 32, 64 or 128")

        if key is None:
            key = jax.random.PRNGKey(0)
        keys = jax.random.split(key, 4)

        self.depth = depth
        self.kernel = kernel

        # normal_init: conv weight ~ N(0, 0.05); conv bias = 0 (dropped); BN gamma=1/beta=0.
        def make_w(k, c_out, c_in):
            return 0.05 * jax.random.normal(k, (c_out, c_in, kernel), jnp.float32)

        self.stem1 = []
        c_in, c_out = input_dim[0], output_dim[0]
        for i in range(2):
            self.stem1.append(make_w(keys[i], c_out, c_in))
            c_in = c_out

        self.stem2 = []
        if depth == 2:
            c_out = output_dim[1]
            for i in range(2):
                self.stem2.append(make_w(keys[2 + i], c_out, c_in))
                c_in = c_out

    def __call__(self, x):
        # x: (N, 1, L) float32
        x = x.astype(jnp.float32)
        L = x.shape[2]

        # stem 1 (BN/act of layer 1 is fused into layer 2's conv pass)
        y, bn, Lc, TL, nt = _conv_bn_stats(x, L, self.stem1[0], None, False)
        y, bn, Lc, TL, nt = _conv_bn_stats(y, Lc, self.stem1[1], bn, True)

        if self.depth == 2:
            # stem-1 BN/act + MaxPool1d(2) in one kernel; pooled activation kept bf16.
            a, Lc = _finalize(y, bn, TL, nt, Lc, pool=True, out_dtype=jnp.bfloat16)
            y, bn, Lc, TL, nt = _conv_bn_stats(a, Lc, self.stem2[0], None, False)
            y, bn, Lc, TL, nt = _conv_bn_stats(y, Lc, self.stem2[1], bn, True)
            out, Lc = _finalize(y, bn, TL, nt, Lc, pool=False, out_dtype=jnp.float32)
        else:
            out, Lc = _finalize(y, bn, TL, nt, Lc, pool=True, out_dtype=jnp.float32)
        return out[:, :, :Lc]


# ---------------------------------------------------------------------------
# Plain-XLA f32 reference (loose cross-check; the Pallas path uses bf16 conv operands
# and bf16 inter-layer activations).
# ---------------------------------------------------------------------------
def _reference_forward(x, stem1, stem2):
    def layer(x, w):
        pad = (w.shape[2] - 1) // 2
        y = jax.lax.conv_general_dilated(
            x, w, window_strides=(1,), padding=[(pad, pad)],
            dimension_numbers=("NCH", "OIH", "NCH"))
        mean = jnp.mean(y, axis=(0, 2), keepdims=True)
        var = jnp.mean((y - mean) ** 2, axis=(0, 2), keepdims=True)
        z = (y - mean) * jax.lax.rsqrt(var + _EPS)
        return jnp.where(z >= 0.0, z, _NEG_SLOPE * z)

    def pool(z):
        n, c, L = z.shape
        return jnp.max(z[:, :, : (L // 2) * 2].reshape(n, c, L // 2, 2), axis=3)

    x = layer(x, stem1[0])
    x = layer(x, stem1[1])
    x = pool(x)
    for w in stem2:
        x = layer(x, w)
    return x


if __name__ == "__main__":
    key = jax.random.PRNGKey(0)
    k_x, k_p = jax.random.split(key)

    # Small, module-consistent shapes: batch=2, 1 input channel, length=16, kernel=3.
    x = jax.random.normal(k_x, (2, 1, 16), dtype=jnp.float32)

    model = XceptionStemBlockPallas(kernel=3, depth=2, max_dim=64, key=k_p)
    out = jax.jit(lambda v: model(v))(x)                 # (2, 64, 8)
    jax.block_until_ready(out)

    assert out.shape == (2, 64, 8), out.shape
    assert bool(jnp.all(jnp.isfinite(out)))

    # Loose cross-check vs. a plain-XLA f32 reference (bf16 operands / activations in kernel).
    ref = _reference_forward(x, model.stem1, model.stem2)
    err = float(jnp.max(jnp.abs(out - ref)))
    assert bool(jnp.allclose(out, ref, rtol=0.05, atol=0.12)), err

    print("KERNEL_OK")
</pallas_src>

<mosaic_0001>
module attributes {stable_mosaic.version = 11 : i64} {
  func.func @_fused_conv_kernel(%arg0: i32, %arg1: memref<2x1x1xf32, #tpu.memory_space<vmem>>, %arg2: memref<2x1x128xf32, #tpu.memory_space<vmem>>, %arg3: memref<2x1x128xf32, #tpu.memory_space<vmem>>, %arg4: memref<2x1x128xf32, #tpu.memory_space<vmem>>, %arg5: memref<32x3xf32, #tpu.memory_space<vmem>>, %arg6: memref<2x32x128xbf16, #tpu.memory_space<vmem>>, %arg7: memref<1x32x2xf32, #tpu.memory_space<vmem>>) attributes {dimension_semantics = [#tpu.dimension_semantics<parallel>], iteration_bounds = array<i64: 1>, scalar_prefetch = 0 : i64, scratch_operands = 0 : i64, tpu.core_type = #tpu.core_type<tc>, window_params = [{pipeline_mode = #tpu.pipeline_mode<synchronous>, transform_indices = @transform_0, window_bounds = array<i64: 2, 1, 1>}, {transform_indices = @transform_1, window_bounds = array<i64: 2, 1, 128>}, {transform_indices = @transform_2, window_bounds = array<i64: 2, 1, 128>}, {transform_indices = @transform_3, window_bounds = array<i64: 2, 1, 128>}, {pipeline_mode = #tpu.pipeline_mode<synchronous>, transform_indices = @transform_4, window_bounds = array<i64: 32, 3>}, {transform_indices = @transform_5, window_bounds = array<i64: 2, 32, 128>}, {transform_indices = @transform_6, window_bounds = array<i64: 1, 32, 2>}]} {
    %c0 = arith.constant 0 : index
    %c0_0 = arith.constant 0 : index
    %c0_1 = arith.constant 0 : index
    %0 = vector.load %arg1[%c0, %c0_0, %c0_1] : memref<2x1x1xf32, #tpu.memory_space<vmem>>, vector<1x1x1xf32>
    %1 = vector.shape_cast %0 : vector<1x1x1xf32> to vector<1x1xf32>
    %c1 = arith.constant 1 : index
    %c0_2 = arith.constant 0 : index
    %c0_3 = arith.constant 0 : index
    %2 = vector.load %arg1[%c1, %c0_2, %c0_3] : memref<2x1x1xf32, #tpu.memory_space<vmem>>, vector<1x1x1xf32>
    %3 = vector.shape_cast %2 : vector<1x1x1xf32> to vector<1x1xf32>
    %c0_i32 = arith.constant 0 : i32
    %4 = arith.cmpi sgt, %arg0, %c0_i32 : i32
    %5 = arith.extui %4 : i1 to i32
    %6 = arith.sitofp %5 : i32 to f32
    %c0_4 = arith.constant 0 : index
    %c0_5 = arith.constant 0 : index
    %c127 = arith.constant 127 : index
    %7 = vector.load %arg2[%c0_4, %c0_5, %c127] : memref<2x1x128xf32, #tpu.memory_space<vmem>>, vector<2x1x1xf32>
    %8 = vector.broadcast %6 : f32 to vector<2x1x1xf32>
    %9 = arith.mulf %7, %8 : vector<2x1x1xf32>
    %c0_6 = arith.constant 0 : index
    %c0_7 = arith.constant 0 : index
    %c0_8 = arith.constant 0 : index
    %10 = vector.load %arg3[%c0_6, %c0_7, %c0_8] : memref<2x1x128xf32, #tpu.memory_space<vmem>>, vector<2x1x128xf32>
    %c0_i32_9 = arith.constant 0 : i32
    %11 = arith.cmpi slt, %arg0, %c0_i32_9 : i32
    %12 = arith.extui %11 : i1 to i32
    %13 = arith.sitofp %12 : i32 to f32
    %c0_10 = arith.constant 0 : index
    %c0_11 = arith.constant 0 : index
    %c0_12 = arith.constant 0 : index
    %14 = vector.load %arg4[%c0_10, %c0_11, %c0_12] : memref<2x1x128xf32, #tpu.memory_space<vmem>>, vector<2x1x1xf32>
    %15 = vector.broadcast %13 : f32 to vector<2x1x1xf32>
    %16 = arith.mulf %14, %15 : vector<2x1x1xf32>
    %17 = tpu.concatenate %9, %10, %16 in 2 : vector<2x1x1xf32>, vector<2x1x128xf32>, vector<2x1x1xf32> -> vector<2x1x130xf32>
    %18 = vector.shape_cast %1 : vector<1x1xf32> to vector<1x1x1xf32>
    %19 = vector.broadcast %18 : vector<1x1x1xf32> to vector<2x1x130xf32>
    %20 = arith.mulf %17, %19 : vector<2x1x130xf32>
    %21 = vector.shape_cast %3 : vector<1x1xf32> to vector<1x1x1xf32>
    %22 = vector.broadcast %21 : vector<1x1x1xf32> to vector<2x1x130xf32>
    %23 = arith.addf %20, %22 : vector<2x1x130xf32>
    %24 = tpu.iota {dimensions = array<i32: 1>} : vector<1x130xi32>
    %c128_i32 = arith.constant 128 : i32
    %25 = arith.muli %arg0, %c128_i32 : i32
    %c1_i32 = arith.constant 1 : i32
    %26 = arith.subi %25, %c1_i32 : i32
    %27 = vector.broadcast %26 : i32 to vector<1x130xi32>
    %28 = arith.addi %24, %27 : vector<1x130xi32>
    %c0_i32_13 = arith.constant 0 : i32
    %29 = vector.broadcast %c0_i32_13 : i32 to vector<1x130xi32>
    %30 = arith.cmpi sge, %28, %29 : vector<1x130xi32>
    %c16_i32 = arith.constant 16 : i32
    %31 = vector.broadcast %c16_i32 : i32 to vector<1x130xi32>
    %32 = arith.cmpi slt, %28, %31 : vector<1x130xi32>
    %33 = arith.andi %30, %32 : vector<1x130xi1>
    %cst = arith.constant 0.000000e+00 : f32
    %34 = vector.shape_cast %33 : vector<1x130xi1> to vector<1x1x130xi1>
    %35 = vector.broadcast %34 : vector<1x1x130xi1> to vector<2x1x130xi1>
    %36 = vector.broadcast %cst : f32 to vector<2x1x130xf32>
    %37 = arith.select %35, %23, %36 : vector<2x1x130xi1>, vector<2x1x130xf32>
    %38 = tpu.iota {dimensions = array<i32: 1>} : vector<1x128xi32>
    %c128_i32_14 = arith.constant 128 : i32
    %39 = arith.muli %arg0, %c128_i32_14 : i32
    %40 = vector.broadcast %39 : i32 to vector<1x128xi32>
    %41 = arith.addi %38, %40 : vector<1x128xi32>
    %c16_i32_15 = arith.constant 16 : i32
    %42 = vector.broadcast %c16_i32_15 : i32 to vector<1x128xi32>
    %43 = arith.cmpi slt, %41, %42 : vector<1x128xi32>
    %c0_16 = arith.constant 0 : index
    %c0_17 = arith.constant 0 : index
    %44 = vector.load %arg5[%c0_16, %c0_17] : memref<32x3xf32, #tpu.memory_space<vmem>>, vector<32x3xf32>
    %cst_18 = arith.constant 0.000000e+00 : f32
    %45 = vector.broadcast %cst_18 : f32 to vector<32x1xf32>
    %cst_19 = arith.constant 0.000000e+00 : f32
    %46 = vector.broadcast %cst_19 : f32 to vector<32x1xf32>
    %cst_20 = arith.constant 0.000000e+00 : f32
    %47 = vector.broadcast %cst_20 : f32 to vector<32x128xf32>
    %48 = vector.extract_strided_slice %44 {offsets = [0, 0], sizes = [32, 1], strides = [1, 1]} : vector<32x3xf32> to vector<32x1xf32>
    %49 = vector.extract_strided_slice %37 {offsets = [0, 0, 0], sizes = [1, 1, 128], strides = [1, 1, 1]} : vector<2x1x130xf32> to vector<1x1x128xf32>
    %50 = vector.shape_cast %49 : vector<1x1x128xf32> to vector<1x128xf32>
    %51 = vector.broadcast %48 : vector<32x1xf32> to vector<32x128xf32>
    %52 = vector.broadcast %50 : vector<1x128xf32> to vector<32x128xf32>
    %53 = arith.mulf %51, %52 : vector<32x128xf32>
    %54 = arith.addf %47, %53 : vector<32x128xf32>
    %55 = vector.extract_strided_slice %44 {offsets = [0, 1], sizes = [32, 1], strides = [1, 1]} : vector<32x3xf32> to vector<32x1xf32>
    %56 = vector.extract_strided_slice %37 {offsets = [0, 0, 1], sizes = [1, 1, 128], strides = [1, 1, 1]} : vector<2x1x130xf32> to vector<1x1x128xf32>
    %57 = vector.shape_cast %56 : vector<1x1x128xf32> to vector<1x128xf32>
    %58 = vector.broadcast %55 : vector<32x1xf32> to vector<32x128xf32>
    %59 = vector.broadcast %57 : vector<1x128xf32> to vector<32x128xf32>
    %60 = arith.mulf %58, %59 : vector<32x128xf32>
    %61 = arith.addf %54, %60 : vector<32x128xf32>
    %62 = vector.extract_strided_slice %44 {offsets = [0, 2], sizes = [32, 1], strides = [1, 1]} : vector<32x3xf32> to vector<32x1xf32>
    %63 = vector.extract_strided_slice %37 {offsets = [0, 0, 2], sizes = [1, 1, 128], strides = [1, 1, 1]} : vector<2x1x130xf32> to vector<1x1x128xf32>
    %64 = vector.shape_cast %63 : vector<1x1x128xf32> to vector<1x128xf32>
    %65 = vector.broadcast %62 : vector<32x1xf32> to vector<32x128xf32>
    %66 = vector.broadcast %64 : vector<1x128xf32> to vector<32x128xf32>
    %67 = arith.mulf %65, %66 : vector<32x128xf32>
    %68 = arith.addf %61, %67 : vector<32x128xf32>
    %69 = arith.truncf %68 : vector<32x128xf32> to vector<32x128xbf16>
    %c0_21 = arith.constant 0 : index
    %c0_22 = arith.constant 0 : index
    %c0_23 = arith.constant 0 : index
    %70 = vector.load %arg6[%c0_21, %c0_22, %c0_23] : memref<2x32x128xbf16, #tpu.memory_space<vmem>>, vector<1x32x128xbf16>
    %71 = vector.shape_cast %70 : vector<1x32x128xbf16> to vector<32x128xbf16>
    %72 = vector.shape_cast %69 : vector<32x128xbf16> to vector<1x32x128xbf16>
    tpu.vector_store %arg6[%c0_21, %c0_22, %c0_23], %72 {strides = array<i32>} : memref<2x32x128xbf16, #tpu.memory_space<vmem>>, vector<1x32x128xbf16>,
    %cst_24 = arith.constant 0.000000e+00 : f32
    %73 = vector.shape_cast %43 : vector<1x128xi1> to vector<1x128xi1>
    %74 = vector.broadcast %73 : vector<1x128xi1> to vector<32x128xi1>
    %75 = vector.broadcast %cst_24 : f32 to vector<32x128xf32>
    %76 = arith.select %74, %68, %75 : vector<32x128xi1>, vector<32x128xf32>
    %cst_25 = arith.constant dense<0.000000e+00> : vector<32xf32>
    %77 = vector.multi_reduction <add>, %76, %cst_25 [1] : vector<32x128xf32> to vector<32xf32>
    %78 = vector.shape_cast %77 : vector<32xf32> to vector<32x1xf32>
    %79 = arith.addf %45, %78 : vector<32x1xf32>
    %80 = arith.mulf %76, %76 : vector<32x128xf32>
    %cst_26 = arith.constant dense<0.000000e+00> : vector<32xf32>
    %81 = vector.multi_reduction <add>, %80, %cst_26 [1] : vector<32x128xf32> to vector<32xf32>
    %82 = vector.shape_cast %81 : vector<32xf32> to vector<32x1xf32>
    %83 = arith.addf %46, %82 : vector<32x1xf32>
    %cst_27 = arith.constant 0.000000e+00 : f32
    %84 = vector.broadcast %cst_27 : f32 to vector<32x128xf32>
    %85 = vector.extract_strided_slice %44 {offsets = [0, 0], sizes = [32, 1], strides = [1, 1]} : vector<32x3xf32> to vector<32x1xf32>
    %86 = vector.extract_strided_slice %37 {offsets = [1, 0, 0], sizes = [1, 1, 128], strides = [1, 1, 1]} : vector<2x1x130xf32> to vector<1x1x128xf32>
    %87 = vector.shape_cast %86 : vector<1x1x128xf32> to vector<1x128xf32>
    %88 = vector.broadcast %85 : vector<32x1xf32> to vector<32x128xf32>
    %89 = vector.broadcast %87 : vector<1x128xf32> to vector<32x128xf32>
    %90 = arith.mulf %88, %89 : vector<32x128xf32>
    %91 = arith.addf %84, %90 : vector<32x128xf32>
    %92 = vector.extract_strided_slice %44 {offsets = [0, 1], sizes = [32, 1], strides = [1, 1]} : vector<32x3xf32> to vector<32x1xf32>
    %93 = vector.extract_strided_slice %37 {offsets = [1, 0, 1], sizes = [1, 1, 128], strides = [1, 1, 1]} : vector<2x1x130xf32> to vector<1x1x128xf32>
    %94 = vector.shape_cast %93 : vector<1x1x128xf32> to vector<1x128xf32>
    %95 = vector.broadcast %92 : vector<32x1xf32> to vector<32x128xf32>
    %96 = vector.broadcast %94 : vector<1x128xf32> to vector<32x128xf32>
    %97 = arith.mulf %95, %96 : vector<32x128xf32>
    %98 = arith.addf %91, %97 : vector<32x128xf32>
    %99 = vector.extract_strided_slice %44 {offsets = [0, 2], sizes = [32, 1], strides = [1, 1]} : vector<32x3xf32> to vector<32x1xf32>
    %100 = vector.extract_strided_slice %37 {offsets = [1, 0, 2], sizes = [1, 1, 128], strides = [1, 1, 1]} : vector<2x1x130xf32> to vector<1x1x128xf32>
    %101 = vector.shape_cast %100 : vector<1x1x128xf32> to vector<1x128xf32>
    %102 = vector.broadcast %99 : vector<32x1xf32> to vector<32x128xf32>
    %103 = vector.broadcast %101 : vector<1x128xf32> to vector<32x128xf32>
    %104 = arith.mulf %102, %103 : vector<32x128xf32>
    %105 = arith.addf %98, %104 : vector<32x128xf32>
    %106 = arith.truncf %105 : vector<32x128xf32> to vector<32x128xbf16>
    %c1_28 = arith.constant 1 : index
    %c0_29 = arith.constant 0 : index
    %c0_30 = arith.constant 0 : index
    %107 = vector.load %arg6[%c1_28, %c0_29, %c0_30] : memref<2x32x128xbf16, #tpu.memory_space<vmem>>, vector<1x32x128xbf16>
    %108 = vector.shape_cast %107 : vector<1x32x128xbf16> to vector<32x128xbf16>
    %109 = vector.shape_cast %106 : vector<32x128xbf16> to vector<1x32x128xbf16>
    tpu.vector_store %arg6[%c1_28, %c0_29, %c0_30], %109 {strides = array<i32>} : memref<2x32x128xbf16, #tpu.memory_space<vmem>>, vector<1x32x128xbf16>,
    %cst_31 = arith.constant 0.000000e+00 : f32
    %110 = vector.shape_cast %43 : vector<1x128xi1> to vector<1x128xi1>
    %111 = vector.broadcast %110 : vector<1x128xi1> to vector<32x128xi1>
    %112 = vector.broadcast %cst_31 : f32 to vector<32x128xf32>
    %113 = arith.select %111, %105, %112 : vector<32x128xi1>, vector<32x128xf32>
    %cst_32 = arith.constant dense<0.000000e+00> : vector<32xf32>
    %114 = vector.multi_reduction <add>, %113, %cst_32 [1] : vector<32x128xf32> to vector<32xf32>
    %115 = vector.shape_cast %114 : vector<32xf32> to vector<32x1xf32>
    %116 = arith.addf %79, %115 : vector<32x1xf32>
    %117 = arith.mulf %113, %113 : vector<32x128xf32>
    %cst_33 = arith.constant dense<0.000000e+00> : vector<32xf32>
    %118 = vector.multi_reduction <add>, %117, %cst_33 [1] : vector<32x128xf32> to vector<32xf32>
    %119 = vector.shape_cast %118 : vector<32xf32> to vector<32x1xf32>
    %120 = arith.addf %83, %119 : vector<32x1xf32>
    %121 = tpu.concatenate %116, %120 in 1 : vector<32x1xf32>, vector<32x1xf32> -> vector<32x2xf32>
    %c0_34 = arith.constant 0 : index
    %c0_35 = arith.constant 0 : index
    %c0_36 = arith.constant 0 : index
    %122 = vector.load %arg7[%c0_34, %c0_35, %c0_36] : memref<1x32x2xf32, #tpu.memory_space<vmem>>, vector<1x32x2xf32>
    %123 = vector.shape_cast %122 : vector<1x32x2xf32> to vector<32x2xf32>
    %124 = vector.shape_cast %121 : vector<32x2xf32> to vector<1x32x2xf32>
    tpu.vector_store %arg7[%c0_34, %c0_35, %c0_36], %124 {strides = array<i32>} : memref<1x32x2xf32, #tpu.memory_space<vmem>>, vector<1x32x2xf32>,
    return
  }
  func.func @transform_0(%arg0: i32) -> (i32, i32, i32) {
    %c0_i32 = arith.constant 0 : i32
    %c0_i32_0 = arith.constant 0 : i32
    %c0_i32_1 = arith.constant 0 : i32
    %c0_i32_2 = arith.constant 0 : i32
    return %c0_i32, %c0_i32_0, %c0_i32_1 : i32, i32, i32
  }
  func.func @transform_1(%arg0: i32) -> (i32, i32, i32) {
    %c1_i32 = arith.constant 1 : i32
    %0 = arith.muli %arg0, %c1_i32 : i32
    %c1_i32_0 = arith.constant 1 : i32
    %1 = arith.subi %0, %c1_i32_0 : i32
    %c0_i32 = arith.constant 0 : i32
    %2 = arith.maxsi %1, %c0_i32 : i32
    %c0_i32_1 = arith.constant 0 : i32
    %c0_i32_2 = arith.constant 0 : i32
    %c0_i32_3 = arith.constant 0 : i32
    return %c0_i32_1, %c0_i32_2, %2 : i32, i32, i32
  }
  func.func @transform_2(%arg0: i32) -> (i32, i32, i32) {
    %c0_i32 = arith.constant 0 : i32
    %c0_i32_0 = arith.constant 0 : i32
    %c0_i32_1 = arith.constant 0 : i32
    return %c0_i32, %c0_i32_0, %arg0 : i32, i32, i32
  }
  func.func @transform_3(%arg0: i32) -> (i32, i32, i32) {
    %c1_i32 = arith.constant 1 : i32
    %0 = arith.addi %arg0, %c1_i32 : i32
    %c1_i32_0 = arith.constant 1 : i32
    %1 = arith.muli %0, %c1_i32_0 : i32
    %c0_i32 = arith.constant 0 : i32
    %2 = arith.minsi %1, %c0_i32 : i32
    %c0_i32_1 = arith.constant 0 : i32
    %c0_i32_2 = arith.constant 0 : i32
    %c0_i32_3 = arith.constant 0 : i32
    return %c0_i32_1, %c0_i32_2, %2 : i32, i32, i32
  }
  func.func @transform_4(%arg0: i32) -> (i32, i32) {
    %c0_i32 = arith.constant 0 : i32
    %c0_i32_0 = arith.constant 0 : i32
    %c0_i32_1 = arith.constant 0 : i32
    return %c0_i32, %c0_i32_0 : i32, i32
  }
  func.func @transform_5(%arg0: i32) -> (i32, i32, i32) {
    %c0_i32 = arith.constant 0 : i32
    %c0_i32_0 = arith.constant 0 : i32
    %c0_i32_1 = arith.constant 0 : i32
    return %c0_i32, %c0_i32_0, %arg0 : i32, i32, i32
  }
  func.func @transform_6(%arg0: i32) -> (i32, i32, i32) {
    %c0_i32 = arith.constant 0 : i32
    %c0_i32_0 = arith.constant 0 : i32
    %c0_i32_1 = arith.constant 0 : i32
    return %arg0, %c0_i32, %c0_i32_0 : i32, i32, i32
  }
}

module attributes {stable_mosaic.version = 11 : i64} {
  func.func @_bn_act_pool_kernel(%arg0: i32, %arg1: memref<2x32x128xbf16, #tpu.memory_space<vmem>>, %arg2: memref<2x32x1xf32, #tpu.memory_space<vmem>>, %arg3: memref<128x64xbf16, #tpu.memory_space<vmem>>, %arg4: memref<128x64xbf16, #tpu.memory_space<vmem>>, %arg5: memref<2x32x64xbf16, #tpu.memory_space<vmem>>) attributes {dimension_semantics = [#tpu.dimension_semantics<parallel>], iteration_bounds = array<i64: 1>, scalar_prefetch = 0 : i64, scratch_operands = 0 : i64, tpu.core_type = #tpu.core_type<tc>, window_params = [{transform_indices = @transform_0, window_bounds = array<i64: 2, 32, 128>}, {pipeline_mode = #tpu.pipeline_mode<synchronous>, transform_indices = @transform_1, window_bounds = array<i64: 2, 32, 1>}, {pipeline_mode = #tpu.pipeline_mode<synchronous>, transform_indices = @transform_2, window_bounds = array<i64: 128, 64>}, {pipeline_mode = #tpu.pipeline_mode<synchronous>, transform_indices = @transform_3, window_bounds = array<i64: 128, 64>}, {transform_indices = @transform_4, window_bounds = array<i64: 2, 32, 64>}]} {
    %c0 = arith.constant 0 : index
    %c0_0 = arith.constant 0 : index
    %c0_1 = arith.constant 0 : index
    %0 = vector.load %arg2[%c0, %c0_0, %c0_1] : memref<2x32x1xf32, #tpu.memory_space<vmem>>, vector<1x32x1xf32>
    %1 = vector.shape_cast %0 : vector<1x32x1xf32> to vector<32x1xf32>
    %c1 = arith.constant 1 : index
    %c0_2 = arith.constant 0 : index
    %c0_3 = arith.constant 0 : index
    %2 = vector.load %arg2[%c1, %c0_2, %c0_3] : memref<2x32x1xf32, #tpu.memory_space<vmem>>, vector<1x32x1xf32>
    %3 = vector.shape_cast %2 : vector<1x32x1xf32> to vector<32x1xf32>
    %c0_4 = arith.constant 0 : index
    %c0_5 = arith.constant 0 : index
    %4 = vector.load %arg3[%c0_4, %c0_5] : memref<128x64xbf16, #tpu.memory_space<vmem>>, vector<128x64xbf16>
    %c0_6 = arith.constant 0 : index
    %c0_7 = arith.constant 0 : index
    %5 = vector.load %arg4[%c0_6, %c0_7] : memref<128x64xbf16, #tpu.memory_space<vmem>>, vector<128x64xbf16>
    %c0_8 = arith.constant 0 : index
    %c0_9 = arith.constant 0 : index
    %c0_10 = arith.constant 0 : index
    %6 = vector.load %arg1[%c0_8, %c0_9, %c0_10] : memref<2x32x128xbf16, #tpu.memory_space<vmem>>, vector<1x32x128xbf16>
    %7 = vector.shape_cast %6 : vector<1x32x128xbf16> to vector<32x128xbf16>
    %cst = arith.constant dense<0.000000e+00> : vector<32x64xf32>
    %8 = tpu.matmul %7, %4, %cst {dimension_numbers = #tpu.dot_dimension_numbers<[1], [0], [0], [1], [0, 0, 1, 1], [], []>} : vector<32x128xbf16>, vector<128x64xbf16>, vector<32x64xf32> -> vector<32x64xf32>
    %cst_11 = arith.constant dense<0.000000e+00> : vector<32x64xf32>
    %9 = tpu.matmul %7, %5, %cst_11 {dimension_numbers = #tpu.dot_dimension_numbers<[1], [0], [0], [1], [0, 0, 1, 1], [], []>} : vector<32x128xbf16>, vector<128x64xbf16>, vector<32x64xf32> -> vector<32x64xf32>
    %10 = arith.maximumf %8, %9 : vector<32x64xf32>
    %11 = vector.broadcast %1 : vector<32x1xf32> to vector<32x64xf32>
    %12 = arith.mulf %10, %11 : vector<32x64xf32>
    %13 = vector.broadcast %3 : vector<32x1xf32> to vector<32x64xf32>
    %14 = arith.addf %12, %13 : vector<32x64xf32>
    %cst_12 = arith.constant 0.000000e+00 : f32
    %15 = vector.broadcast %cst_12 : f32 to vector<32x64xf32>
    %16 = arith.cmpf oge, %14, %15 : vector<32x64xf32>
    %cst_13 = arith.constant 3.000000e-01 : f32
    %17 = vector.broadcast %cst_13 : f32 to vector<32x64xf32>
    %18 = arith.mulf %17, %14 : vector<32x64xf32>
    %19 = arith.select %16, %14, %18 : vector<32x64xi1>, vector<32x64xf32>
    %20 = arith.truncf %19 : vector<32x64xf32> to vector<32x64xbf16>
    %c0_14 = arith.constant 0 : index
    %c0_15 = arith.constant 0 : index
    %c0_16 = arith.constant 0 : index
    %21 = vector.load %arg5[%c0_14, %c0_15, %c0_16] : memref<2x32x64xbf16, #tpu.memory_space<vmem>>, vector<1x32x64xbf16>
    %22 = vector.shape_cast %21 : vector<1x32x64xbf16> to vector<32x64xbf16>
    %23 = vector.shape_cast %20 : vector<32x64xbf16> to vector<1x32x64xbf16>
    tpu.vector_store %arg5[%c0_14, %c0_15, %c0_16], %23 {strides = array<i32>} : memref<2x32x64xbf16, #tpu.memory_space<vmem>>, vector<1x32x64xbf16>,
    %c1_17 = arith.constant 1 : index
    %c0_18 = arith.constant 0 : index
    %c0_19 = arith.constant 0 : index
    %24 = vector.load %arg1[%c1_17, %c0_18, %c0_19] : memref<2x32x128xbf16, #tpu.memory_space<vmem>>, vector<1x32x128xbf16>
    %25 = vector.shape_cast %24 : vector<1x32x128xbf16> to vector<32x128xbf16>
    %cst_20 = arith.constant dense<0.000000e+00> : vector<32x64xf32>
    %26 = tpu.matmul %25, %4, %cst_20 {dimension_numbers = #tpu.dot_dimension_numbers<[1], [0], [0], [1], [0, 0, 1, 1], [], []>} : vector<32x128xbf16>, vector<128x64xbf16>, vector<32x64xf32> -> vector<32x64xf32>
    %cst_21 = arith.constant dense<0.000000e+00> : vector<32x64xf32>
    %27 = tpu.matmul %25, %5, %cst_21 {dimension_numbers = #tpu.dot_dimension_numbers<[1], [0], [0], [1], [0, 0, 1, 1], [], []>} : vector<32x128xbf16>, vector<128x64xbf16>, vector<32x64xf32> -> vector<32x64xf32>
    %28 = arith.maximumf %26, %27 : vector<32x64xf32>
    %29 = vector.broadcast %1 : vector<32x1xf32> to vector<32x64xf32>
    %30 = arith.mulf %28, %29 : vector<32x64xf32>
    %31 = vector.broadcast %3 : vector<32x1xf32> to vector<32x64xf32>
    %32 = arith.addf %30, %31 : vector<32x64xf32>
    %cst_22 = arith.constant 0.000000e+00 : f32
    %33 = vector.broadcast %cst_22 : f32 to vector<32x64xf32>
    %34 = arith.cmpf oge, %32, %33 : vector<32x64xf32>
    %cst_23 = arith.constant 3.000000e-01 : f32
    %35 = vector.broadcast %cst_23 : f32 to vector<32x64xf32>
    %36 = arith.mulf %35, %32 : vector<32x64xf32>
    %37 = arith.select %34, %32, %36 : vector<32x64xi1>, vector<32x64xf32>
    %38 = arith.truncf %37 : vector<32x64xf32> to vector<32x64xbf16>
    %c1_24 = arith.constant 1 : index
    %c0_25 = arith.constant 0 : index
    %c0_26 = arith.constant 0 : index
    %39 = vector.load %arg5[%c1_24, %c0_25, %c0_26] : memref<2x32x64xbf16, #tpu.memory_space<vmem>>, vector<1x32x64xbf16>
    %40 = vector.shape_cast %39 : vector<1x32x64xbf16> to vector<32x64xbf16>
    %41 = vector.shape_cast %38 : vector<32x64xbf16> to vector<1x32x64xbf16>
    tpu.vector_store %arg5[%c1_24, %c0_25, %c0_26], %41 {strides = array<i32>} : memref<2x32x64xbf16, #tpu.memory_space<vmem>>, vector<1x32x64xbf16>,
    return
  }
  func.func @transform_0(%arg0: i32) -> (i32, i32, i32) {
    %c0_i32 = arith.constant 0 : i32
    %c0_i32_0 = arith.constant 0 : i32
    %c0_i32_1 = arith.constant 0 : i32
    return %c0_i32, %c0_i32_0, %arg0 : i32, i32, i32
  }
  func.func @transform_1(%arg0: i32) -> (i32, i32, i32) {
    %c0_i32 = arith.constant 0 : i32
    %c0_i32_0 = arith.constant 0 : i32
    %c0_i32_1 = arith.constant 0 : i32
    %c0_i32_2 = arith.constant 0 : i32
    return %c0_i32, %c0_i32_0, %c0_i32_1 : i32, i32, i32
  }
  func.func @transform_2(%arg0: i32) -> (i32, i32) {
    %c0_i32 = arith.constant 0 : i32
    %c0_i32_0 = arith.constant 0 : i32
    %c0_i32_1 = arith.constant 0 : i32
    return %c0_i32, %c0_i32_0 : i32, i32
  }
  func.func @transform_3(%arg0: i32) -> (i32, i32) {
    %c0_i32 = arith.constant 0 : i32
    %c0_i32_0 = arith.constant 0 : i32
    %c0_i32_1 = arith.constant 0 : i32
    return %c0_i32, %c0_i32_0 : i32, i32
  }
  func.func @transform_4(%arg0: i32) -> (i32, i32, i32) {
    %c0_i32 = arith.constant 0 : i32
    %c0_i32_0 = arith.constant 0 : i32
    %c0_i32_1 = arith.constant 0 : i32
    return %c0_i32, %c0_i32_0, %arg0 : i32, i32, i32
  }
}

module attributes {stable_mosaic.version = 11 : i64} {
  func.func @_fused_conv_kernel(%arg0: i32, %arg1: memref<2x32x1xf32, #tpu.memory_space<vmem>>, %arg2: memref<2x32x128xbf16, #tpu.memory_space<vmem>>, %arg3: memref<2x32x128xbf16, #tpu.memory_space<vmem>>, %arg4: memref<2x32x128xbf16, #tpu.memory_space<vmem>>, %arg5: memref<32x96xbf16, #tpu.memory_space<vmem>>, %arg6: memref<2x32x128xbf16, #tpu.memory_space<vmem>>, %arg7: memref<1x32x2xf32, #tpu.memory_space<vmem>>) attributes {dimension_semantics = [#tpu.dimension_semantics<parallel>], iteration_bounds = array<i64: 1>, scalar_prefetch = 0 : i64, scratch_operands = 0 : i64, tpu.core_type = #tpu.core_type<tc>, window_params = [{pipeline_mode = #tpu.pipeline_mode<synchronous>, transform_indices = @transform_0, window_bounds = array<i64: 2, 32, 1>}, {transform_indices = @transform_1, window_bounds = array<i64: 2, 32, 128>}, {transform_indices = @transform_2, window_bounds = array<i64: 2, 32, 128>}, {transform_indices = @transform_3, window_bounds = array<i64: 2, 32, 128>}, {pipeline_mode = #tpu.pipeline_mode<synchronous>, transform_indices = @transform_4, window_bounds = array<i64: 32, 96>}, {transform_indices = @transform_5, window_bounds = array<i64: 2, 32, 128>}, {transform_indices = @transform_6, window_bounds = array<i64: 1, 32, 2>}]} {
    %c0 = arith.constant 0 : index
    %c0_0 = arith.constant 0 : index
    %c0_1 = arith.constant 0 : index
    %0 = vector.load %arg1[%c0, %c0_0, %c0_1] : memref<2x32x1xf32, #tpu.memory_space<vmem>>, vector<1x32x1xf32>
    %1 = vector.shape_cast %0 : vector<1x32x1xf32> to vector<32x1xf32>
    %c1 = arith.constant 1 : index
    %c0_2 = arith.constant 0 : index
    %c0_3 = arith.constant 0 : index
    %2 = vector.load %arg1[%c1, %c0_2, %c0_3] : memref<2x32x1xf32, #tpu.memory_space<vmem>>, vector<1x32x1xf32>
    %3 = vector.shape_cast %2 : vector<1x32x1xf32> to vector<32x1xf32>
    %c0_i32 = arith.constant 0 : i32
    %4 = arith.cmpi sgt, %arg0, %c0_i32 : i32
    %5 = arith.extui %4 : i1 to i32
    %6 = arith.sitofp %5 : i32 to f32
    %c0_4 = arith.constant 0 : index
    %c0_5 = arith.constant 0 : index
    %c127 = arith.constant 127 : index
    %7 = vector.load %arg2[%c0_4, %c0_5, %c127] : memref<2x32x128xbf16, #tpu.memory_space<vmem>>, vector<2x32x1xbf16>
    %8 = arith.extf %7 : vector<2x32x1xbf16> to vector<2x32x1xf32>
    %9 = vector.broadcast %6 : f32 to vector<2x32x1xf32>
    %10 = arith.mulf %8, %9 : vector<2x32x1xf32>
    %c0_6 = arith.constant 0 : index
    %c0_7 = arith.constant 0 : index
    %c0_8 = arith.constant 0 : index
    %11 = vector.load %arg3[%c0_6, %c0_7, %c0_8] : memref<2x32x128xbf16, #tpu.memory_space<vmem>>, vector<2x32x128xbf16>
    %12 = arith.extf %11 : vector<2x32x128xbf16> to vector<2x32x128xf32>
    %c0_i32_9 = arith.constant 0 : i32
    %13 = arith.cmpi slt, %arg0, %c0_i32_9 : i32
    %14 = arith.extui %13 : i1 to i32
    %15 = arith.sitofp %14 : i32 to f32
    %c0_10 = arith.constant 0 : index
    %c0_11 = arith.constant 0 : index
    %c0_12 = arith.constant 0 : index
    %16 = vector.load %arg4[%c0_10, %c0_11, %c0_12] : memref<2x32x128xbf16, #tpu.memory_space<vmem>>, vector<2x32x1xbf16>
    %17 = arith.extf %16 : vector<2x32x1xbf16> to vector<2x32x1xf32>
    %18 = vector.broadcast %15 : f32 to vector<2x32x1xf32>
    %19 = arith.mulf %17, %18 : vector<2x32x1xf32>
    %20 = tpu.concatenate %10, %12, %19 in 2 : vector<2x32x1xf32>, vector<2x32x128xf32>, vector<2x32x1xf32> -> vector<2x32x130xf32>
    %21 = vector.shape_cast %1 : vector<32x1xf32> to vector<1x32x1xf32>
    %22 = vector.broadcast %21 : vector<1x32x1xf32> to vector<2x32x130xf32>
    %23 = arith.mulf %20, %22 : vector<2x32x130xf32>
    %24 = vector.shape_cast %3 : vector<32x1xf32> to vector<1x32x1xf32>
    %25 = vector.broadcast %24 : vector<1x32x1xf32> to vector<2x32x130xf32>
    %26 = arith.addf %23, %25 : vector<2x32x130xf32>
    %cst = arith.constant 0.000000e+00 : f32
    %27 = vector.broadcast %cst : f32 to vector<2x32x130xf32>
    %28 = arith.cmpf oge, %26, %27 : vector<2x32x130xf32>
    %cst_13 = arith.constant 3.000000e-01 : f32
    %29 = vector.broadcast %cst_13 : f32 to vector<2x32x130xf32>
    %30 = arith.mulf %29, %26 : vector<2x32x130xf32>
    %31 = arith.select %28, %26, %30 : vector<2x32x130xi1>, vector<2x32x130xf32>
    %32 = tpu.iota {dimensions = array<i32: 1>} : vector<1x130xi32>
    %c128_i32 = arith.constant 128 : i32
    %33 = arith.muli %arg0, %c128_i32 : i32
    %c1_i32 = arith.constant 1 : i32
    %34 = arith.subi %33, %c1_i32 : i32
    %35 = vector.broadcast %34 : i32 to vector<1x130xi32>
    %36 = arith.addi %32, %35 : vector<1x130xi32>
    %c0_i32_14 = arith.constant 0 : i32
    %37 = vector.broadcast %c0_i32_14 : i32 to vector<1x130xi32>
    %38 = arith.cmpi sge, %36, %37 : vector<1x130xi32>
    %c16_i32 = arith.constant 16 : i32
    %39 = vector.broadcast %c16_i32 : i32 to vector<1x130xi32>
    %40 = arith.cmpi slt, %36, %39 : vector<1x130xi32>
    %41 = arith.andi %38, %40 : vector<1x130xi1>
    %cst_15 = arith.constant 0.000000e+00 : f32
    %42 = vector.shape_cast %41 : vector<1x130xi1> to vector<1x1x130xi1>
    %43 = vector.broadcast %42 : vector<1x1x130xi1> to vector<2x32x130xi1>
    %44 = vector.broadcast %cst_15 : f32 to vector<2x32x130xf32>
    %45 = arith.select %43, %31, %44 : vector<2x32x130xi1>, vector<2x32x130xf32>
    %46 = tpu.iota {dimensions = array<i32: 1>} : vector<1x128xi32>
    %c128_i32_16 = arith.constant 128 : i32
    %47 = arith.muli %arg0, %c128_i32_16 : i32
    %48 = vector.broadcast %47 : i32 to vector<1x128xi32>
    %49 = arith.addi %46, %48 : vector<1x128xi32>
    %c16_i32_17 = arith.constant 16 : i32
    %50 = vector.broadcast %c16_i32_17 : i32 to vector<1x128xi32>
    %51 = arith.cmpi slt, %49, %50 : vector<1x128xi32>
    %c0_18 = arith.constant 0 : index
    %c0_19 = arith.constant 0 : index
    %52 = vector.load %arg5[%c0_18, %c0_19] : memref<32x96xbf16, #tpu.memory_space<vmem>>, vector<32x96xbf16>
    %cst_20 = arith.constant 0.000000e+00 : f32
    %53 = vector.broadcast %cst_20 : f32 to vector<32x1xf32>
    %cst_21 = arith.constant 0.000000e+00 : f32
    %54 = vector.broadcast %cst_21 : f32 to vector<32x1xf32>
    %55 = arith.truncf %45 : vector<2x32x130xf32> to vector<2x32x130xbf16>
    %56 = vector.extract_strided_slice %55 {offsets = [0, 0, 0], sizes = [2, 32, 128], strides = [1, 1, 1]} : vector<2x32x130xbf16> to vector<2x32x128xbf16>
    %57 = vector.extract_strided_slice %55 {offsets = [0, 0, 1], sizes = [2, 32, 128], strides = [1, 1, 1]} : vector<2x32x130xbf16> to vector<2x32x128xbf16>
    %58 = vector.extract_strided_slice %55 {offsets = [0, 0, 2], sizes = [2, 32, 128], strides = [1, 1, 1]} : vector<2x32x130xbf16> to vector<2x32x128xbf16>
    %59 = tpu.concatenate %56, %57, %58 in 1 : vector<2x32x128xbf16>, vector<2x32x128xbf16>, vector<2x32x128xbf16> -> vector<2x96x128xbf16>
    %60 = vector.extract_strided_slice %59 {offsets = [0, 0, 0], sizes = [1, 96, 128], strides = [1, 1, 1]} : vector<2x96x128xbf16> to vector<1x96x128xbf16>
    %61 = vector.shape_cast %60 : vector<1x96x128xbf16> to vector<96x128xbf16>
    %cst_22 = arith.constant dense<0.000000e+00> : vector<32x128xf32>
    %62 = tpu.matmul %52, %61, %cst_22 {dimension_numbers = #tpu.dot_dimension_numbers<[1], [0], [0], [1], [0, 0, 1, 1], [], []>} : vector<32x96xbf16>, vector<96x128xbf16>, vector<32x128xf32> -> vector<32x128xf32>
    %63 = arith.truncf %62 : vector<32x128xf32> to vector<32x128xbf16>
    %c0_23 = arith.constant 0 : index
    %c0_24 = arith.constant 0 : index
    %c0_25 = arith.constant 0 : index
    %64 = vector.load %arg6[%c0_23, %c0_24, %c0_25] : memref<2x32x128xbf16, #tpu.memory_space<vmem>>, vector<1x32x128xbf16>
    %65 = vector.shape_cast %64 : vector<1x32x128xbf16> to vector<32x128xbf16>
    %66 = vector.shape_cast %63 : vector<32x128xbf16> to vector<1x32x128xbf16>
    tpu.vector_store %arg6[%c0_23, %c0_24, %c0_25], %66 {strides = array<i32>} : memref<2x32x128xbf16, #tpu.memory_space<vmem>>, vector<1x32x128xbf16>,
    %cst_26 = arith.constant 0.000000e+00 : f32
    %67 = vector.shape_cast %51 : vector<1x128xi1> to vector<1x128xi1>
    %68 = vector.broadcast %67 : vector<1x128xi1> to vector<32x128xi1>
    %69 = vector.broadcast %cst_26 : f32 to vector<32x128xf32>
    %70 = arith.select %68, %62, %69 : vector<32x128xi1>, vector<32x128xf32>
    %cst_27 = arith.constant dense<0.000000e+00> : vector<32xf32>
    %71 = vector.multi_reduction <add>, %70, %cst_27 [1] : vector<32x128xf32> to vector<32xf32>
    %72 = vector.shape_cast %71 : vector<32xf32> to vector<32x1xf32>
    %73 = arith.addf %53, %72 : vector<32x1xf32>
    %74 = arith.mulf %70, %70 : vector<32x128xf32>
    %cst_28 = arith.constant dense<0.000000e+00> : vector<32xf32>
    %75 = vector.multi_reduction <add>, %74, %cst_28 [1] : vector<32x128xf32> to vector<32xf32>
    %76 = vector.shape_cast %75 : vector<32xf32> to vector<32x1xf32>
    %77 = arith.addf %54, %76 : vector<32x1xf32>
    %78 = vector.extract_strided_slice %59 {offsets = [1, 0, 0], sizes = [1, 96, 128], strides = [1, 1, 1]} : vector<2x96x128xbf16> to vector<1x96x128xbf16>
    %79 = vector.shape_cast %78 : vector<1x96x128xbf16> to vector<96x128xbf16>
    %cst_29 = arith.constant dense<0.000000e+00> : vector<32x128xf32>
    %80 = tpu.matmul %52, %79, %cst_29 {dimension_numbers = #tpu.dot_dimension_numbers<[1], [0], [0], [1], [0, 0, 1, 1], [], []>} : vector<32x96xbf16>, vector<96x128xbf16>, vector<32x128xf32> -> vector<32x128xf32>
    %81 = arith.truncf %80 : vector<32x128xf32> to vector<32x128xbf16>
    %c1_30 = arith.constant 1 : index
    %c0_31 = arith.constant 0 : index
    %c0_32 = arith.constant 0 : index
    %82 = vector.load %arg6[%c1_30, %c0_31, %c0_32] : memref<2x32x128xbf16, #tpu.memory_space<vmem>>, vector<1x32x128xbf16>
    %83 = vector.shape_cast %82 : vector<1x32x128xbf16> to vector<32x128xbf16>
    %84 = vector.shape_cast %81 : vector<32x128xbf16> to vector<1x32x128xbf16>
    tpu.vector_store %arg6[%c1_30, %c0_31, %c0_32], %84 {strides = array<i32>} : memref<2x32x128xbf16, #tpu.memory_space<vmem>>, vector<1x32x128xbf16>,
    %cst_33 = arith.constant 0.000000e+00 : f32
    %85 = vector.shape_cast %51 : vector<1x128xi1> to vector<1x128xi1>
    %86 = vector.broadcast %85 : vector<1x128xi1> to vector<32x128xi1>
    %87 = vector.broadcast %cst_33 : f32 to vector<32x128xf32>
    %88 = arith.select %86, %80, %87 : vector<32x128xi1>, vector<32x128xf32>
    %cst_34 = arith.constant dense<0.000000e+00> : vector<32xf32>
    %89 = vector.multi_reduction <add>, %88, %cst_34 [1] : vector<32x128xf32> to vector<32xf32>
    %90 = vector.shape_cast %89 : vector<32xf32> to vector<32x1xf32>
    %91 = arith.addf %73, %90 : vector<32x1xf32>
    %92 = arith.mulf %88, %88 : vector<32x128xf32>
    %cst_35 = arith.constant dense<0.000000e+00> : vector<32xf32>
    %93 = vector.multi_reduction <add>, %92, %cst_35 [1] : vector<32x128xf32> to vector<32xf32>
    %94 = vector.shape_cast %93 : vector<32xf32> to vector<32x1xf32>
    %95 = arith.addf %77, %94 : vector<32x1xf32>
    %96 = tpu.concatenate %91, %95 in 1 : vector<32x1xf32>, vector<32x1xf32> -> vector<32x2xf32>
    %c0_36 = arith.constant 0 : index
    %c0_37 = arith.constant 0 : index
    %c0_38 = arith.constant 0 : index
    %97 = vector.load %arg7[%c0_36, %c0_37, %c0_38] : memref<1x32x2xf32, #tpu.memory_space<vmem>>, vector<1x32x2xf32>
    %98 = vector.shape_cast %97 : vector<1x32x2xf32> to vector<32x2xf32>
    %99 = vector.shape_cast %96 : vector<32x2xf32> to vector<1x32x2xf32>
    tpu.vector_store %arg7[%c0_36, %c0_37, %c0_38], %99 {strides = array<i32>} : memref<1x32x2xf32, #tpu.memory_space<vmem>>, vector<1x32x2xf32>,
    return
  }
  func.func @transform_0(%arg0: i32) -> (i32, i32, i32) {
    %c0_i32 = arith.constant 0 : i32
    %c0_i32_0 = arith.constant 0 : i32
    %c0_i32_1 = arith.constant 0 : i32
    %c0_i32_2 = arith.constant 0 : i32
    return %c0_i32, %c0_i32_0, %c0_i32_1 : i32, i32, i32
  }
  func.func @transform_1(%arg0: i32) -> (i32, i32, i32) {
    %c1_i32 = arith.constant 1 : i32
    %0 = arith.muli %arg0, %c1_i32 : i32
    %c1_i32_0 = arith.constant 1 : i32
    %1 = arith.subi %0, %c1_i32_0 : i32
    %c0_i32 = arith.constant 0 : i32
    %2 = arith.maxsi %1, %c0_i32 : i32
    %c0_i32_1 = arith.constant 0 : i32
    %c0_i32_2 = arith.constant 0 : i32
    %c0_i32_3 = arith.constant 0 : i32
    return %c0_i32_1, %c0_i32_2, %2 : i32, i32, i32
  }
  func.func @transform_2(%arg0: i32) -> (i32, i32, i32) {
    %c0_i32 = arith.constant 0 : i32
    %c0_i32_0 = arith.constant 0 : i32
    %c0_i32_1 = arith.constant 0 : i32
    return %c0_i32, %c0_i32_0, %arg0 : i32, i32, i32
  }
  func.func @transform_3(%arg0: i32) -> (i32, i32, i32) {
    %c1_i32 = arith.constant 1 : i32
    %0 = arith.addi %arg0, %c1_i32 : i32
    %c1_i32_0 = arith.constant 1 : i32
    %1 = arith.muli %0, %c1_i32_0 : i32
    %c0_i32 = arith.constant 0 : i32
    %2 = arith.minsi %1, %c0_i32 : i32
    %c0_i32_1 = arith.constant 0 : i32
    %c0_i32_2 = arith.constant 0 : i32
    %c0_i32_3 = arith.constant 0 : i32
    return %c0_i32_1, %c0_i32_2, %2 : i32, i32, i32
  }
  func.func @transform_4(%arg0: i32) -> (i32, i32) {
    %c0_i32 = arith.constant 0 : i32
    %c0_i32_0 = arith.constant 0 : i32
    %c0_i32_1 = arith.constant 0 : i32
    return %c0_i32, %c0_i32_0 : i32, i32
  }
  func.func @transform_5(%arg0: i32) -> (i32, i32, i32) {
    %c0_i32 = arith.constant 0 : i32
    %c0_i32_0 = arith.constant 0 : i32
    %c0_i32_1 = arith.constant 0 : i32
    return %c0_i32, %c0_i32_0, %arg0 : i32, i32, i32
  }
  func.func @transform_6(%arg0: i32) -> (i32, i32, i32) {
    %c0_i32 = arith.constant 0 : i32
    %c0_i32_0 = arith.constant 0 : i32
    %c0_i32_1 = arith.constant 0 : i32
    return %arg0, %c0_i32, %c0_i32_0 : i32, i32, i32
  }
}

module attributes {stable_mosaic.version = 11 : i64} {
  func.func @_fused_conv_kernel(%arg0: i32, %arg1: memref<2x32x1xf32, #tpu.memory_space<vmem>>, %arg2: memref<2x32x128xbf16, #tpu.memory_space<vmem>>, %arg3: memref<2x32x128xbf16, #tpu.memory_space<vmem>>, %arg4: memref<2x32x128xbf16, #tpu.memory_space<vmem>>, %arg5: memref<64x96xbf16, #tpu.memory_space<vmem>>, %arg6: memref<2x64x128xbf16, #tpu.memory_space<vmem>>, %arg7: memref<1x64x2xf32, #tpu.memory_space<vmem>>) attributes {dimension_semantics = [#tpu.dimension_semantics<parallel>], iteration_bounds = array<i64: 1>, scalar_prefetch = 0 : i64, scratch_operands = 0 : i64, tpu.core_type = #tpu.core_type<tc>, window_params = [{pipeline_mode = #tpu.pipeline_mode<synchronous>, transform_indices = @transform_0, window_bounds = array<i64: 2, 32, 1>}, {transform_indices = @transform_1, window_bounds = array<i64: 2, 32, 128>}, {transform_indices = @transform_2, window_bounds = array<i64: 2, 32, 128>}, {transform_indices = @transform_3, window_bounds = array<i64: 2, 32, 128>}, {pipeline_mode = #tpu.pipeline_mode<synchronous>, transform_indices = @transform_4, window_bounds = array<i64: 64, 96>}, {transform_indices = @transform_5, window_bounds = array<i64: 2, 64, 128>}, {transform_indices = @transform_6, window_bounds = array<i64: 1, 64, 2>}]} {
    %c0 = arith.constant 0 : index
    %c0_0 = arith.constant 0 : index
    %c0_1 = arith.constant 0 : index
    %0 = vector.load %arg1[%c0, %c0_0, %c0_1] : memref<2x32x1xf32, #tpu.memory_space<vmem>>, vector<1x32x1xf32>
    %1 = vector.shape_cast %0 : vector<1x32x1xf32> to vector<32x1xf32>
    %c1 = arith.constant 1 : index
    %c0_2 = arith.constant 0 : index
    %c0_3 = arith.constant 0 : index
    %2 = vector.load %arg1[%c1, %c0_2, %c0_3] : memref<2x32x1xf32, #tpu.memory_space<vmem>>, vector<1x32x1xf32>
    %3 = vector.shape_cast %2 : vector<1x32x1xf32> to vector<32x1xf32>
    %c0_i32 = arith.constant 0 : i32
    %4 = arith.cmpi sgt, %arg0, %c0_i32 : i32
    %5 = arith.extui %4 : i1 to i32
    %6 = arith.sitofp %5 : i32 to f32
    %c0_4 = arith.constant 0 : index
    %c0_5 = arith.constant 0 : index
    %c127 = arith.constant 127 : index
    %7 = vector.load %arg2[%c0_4, %c0_5, %c127] : memref<2x32x128xbf16, #tpu.memory_space<vmem>>, vector<2x32x1xbf16>
    %8 = arith.extf %7 : vector<2x32x1xbf16> to vector<2x32x1xf32>
    %9 = vector.broadcast %6 : f32 to vector<2x32x1xf32>
    %10 = arith.mulf %8, %9 : vector<2x32x1xf32>
    %c0_6 = arith.constant 0 : index
    %c0_7 = arith.constant 0 : index
    %c0_8 = arith.constant 0 : index
    %11 = vector.load %arg3[%c0_6, %c0_7, %c0_8] : memref<2x32x128xbf16, #tpu.memory_space<vmem>>, vector<2x32x128xbf16>
    %12 = arith.extf %11 : vector<2x32x128xbf16> to vector<2x32x128xf32>
    %c0_i32_9 = arith.constant 0 : i32
    %13 = arith.cmpi slt, %arg0, %c0_i32_9 : i32
    %14 = arith.extui %13 : i1 to i32
    %15 = arith.sitofp %14 : i32 to f32
    %c0_10 = arith.constant 0 : index
    %c0_11 = arith.constant 0 : index
    %c0_12 = arith.constant 0 : index
    %16 = vector.load %arg4[%c0_10, %c0_11, %c0_12] : memref<2x32x128xbf16, #tpu.memory_space<vmem>>, vector<2x32x1xbf16>
    %17 = arith.extf %16 : vector<2x32x1xbf16> to vector<2x32x1xf32>
    %18 = vector.broadcast %15 : f32 to vector<2x32x1xf32>
    %19 = arith.mulf %17, %18 : vector<2x32x1xf32>
    %20 = tpu.concatenate %10, %12, %19 in 2 : vector<2x32x1xf32>, vector<2x32x128xf32>, vector<2x32x1xf32> -> vector<2x32x130xf32>
    %21 = vector.shape_cast %1 : vector<32x1xf32> to vector<1x32x1xf32>
    %22 = vector.broadcast %21 : vector<1x32x1xf32> to vector<2x32x130xf32>
    %23 = arith.mulf %20, %22 : vector<2x32x130xf32>
    %24 = vector.shape_cast %3 : vector<32x1xf32> to vector<1x32x1xf32>
    %25 = vector.broadcast %24 : vector<1x32x1xf32> to vector<2x32x130xf32>
    %26 = arith.addf %23, %25 : vector<2x32x130xf32>
    %27 = tpu.iota {dimensions = array<i32: 1>} : vector<1x130xi32>
    %c128_i32 = arith.constant 128 : i32
    %28 = arith.muli %arg0, %c128_i32 : i32
    %c1_i32 = arith.constant 1 : i32
    %29 = arith.subi %28, %c1_i32 : i32
    %30 = vector.broadcast %29 : i32 to vector<1x130xi32>
    %31 = arith.addi %27, %30 : vector<1x130xi32>
    %c0_i32_13 = arith.constant 0 : i32
    %32 = vector.broadcast %c0_i32_13 : i32 to vector<1x130xi32>
    %33 = arith.cmpi sge, %31, %32 : vector<1x130xi32>
    %c8_i32 = arith.constant 8 : i32
    %34 = vector.broadcast %c8_i32 : i32 to vector<1x130xi32>
    %35 = arith.cmpi slt, %31, %34 : vector<1x130xi32>
    %36 = arith.andi %33, %35 : vector<1x130xi1>
    %cst = arith.constant 0.000000e+00 : f32
    %37 = vector.shape_cast %36 : vector<1x130xi1> to vector<1x1x130xi1>
    %38 = vector.broadcast %37 : vector<1x1x130xi1> to vector<2x32x130xi1>
    %39 = vector.broadcast %cst : f32 to vector<2x32x130xf32>
    %40 = arith.select %38, %26, %39 : vector<2x32x130xi1>, vector<2x32x130xf32>
    %41 = tpu.iota {dimensions = array<i32: 1>} : vector<1x128xi32>
    %c128_i32_14 = arith.constant 128 : i32
    %42 = arith.muli %arg0, %c128_i32_14 : i32
    %43 = vector.broadcast %42 : i32 to vector<1x128xi32>
    %44 = arith.addi %41, %43 : vector<1x128xi32>
    %c8_i32_15 = arith.constant 8 : i32
    %45 = vector.broadcast %c8_i32_15 : i32 to vector<1x128xi32>
    %46 = arith.cmpi slt, %44, %45 : vector<1x128xi32>
    %c0_16 = arith.constant 0 : index
    %c0_17 = arith.constant 0 : index
    %47 = vector.load %arg5[%c0_16, %c0_17] : memref<64x96xbf16, #tpu.memory_space<vmem>>, vector<64x96xbf16>
    %cst_18 = arith.constant 0.000000e+00 : f32
    %48 = vector.broadcast %cst_18 : f32 to vector<64x1xf32>
    %cst_19 = arith.constant 0.000000e+00 : f32
    %49 = vector.broadcast %cst_19 : f32 to vector<64x1xf32>
    %50 = arith.truncf %40 : vector<2x32x130xf32> to vector<2x32x130xbf16>
    %51 = vector.extract_strided_slice %50 {offsets = [0, 0, 0], sizes = [2, 32, 128], strides = [1, 1, 1]} : vector<2x32x130xbf16> to vector<2x32x128xbf16>
    %52 = vector.extract_strided_slice %50 {offsets = [0, 0, 1], sizes = [2, 32, 128], strides = [1, 1, 1]} : vector<2x32x130xbf16> to vector<2x32x128xbf16>
    %53 = vector.extract_strided_slice %50 {offsets = [0, 0, 2], sizes = [2, 32, 128], strides = [1, 1, 1]} : vector<2x32x130xbf16> to vector<2x32x128xbf16>
    %54 = tpu.concatenate %51, %52, %53 in 1 : vector<2x32x128xbf16>, vector<2x32x128xbf16>, vector<2x32x128xbf16> -> vector<2x96x128xbf16>
    %55 = vector.extract_strided_slice %54 {offsets = [0, 0, 0], sizes = [1, 96, 128], strides = [1, 1, 1]} : vector<2x96x128xbf16> to vector<1x96x128xbf16>
    %56 = vector.shape_cast %55 : vector<1x96x128xbf16> to vector<96x128xbf16>
    %cst_20 = arith.constant dense<0.000000e+00> : vector<64x128xf32>
    %57 = tpu.matmul %47, %56, %cst_20 {dimension_numbers = #tpu.dot_dimension_numbers<[1], [0], [0], [1], [0, 0, 1, 1], [], []>} : vector<64x96xbf16>, vector<96x128xbf16>, vector<64x128xf32> -> vector<64x128xf32>
    %58 = arith.truncf %57 : vector<64x128xf32> to vector<64x128xbf16>
    %c0_21 = arith.constant 0 : index
    %c0_22 = arith.constant 0 : index
    %c0_23 = arith.constant 0 : index
    %59 = vector.load %arg6[%c0_21, %c0_22, %c0_23] : memref<2x64x128xbf16, #tpu.memory_space<vmem>>, vector<1x64x128xbf16>
    %60 = vector.shape_cast %59 : vector<1x64x128xbf16> to vector<64x128xbf16>
    %61 = vector.shape_cast %58 : vector<64x128xbf16> to vector<1x64x128xbf16>
    tpu.vector_store %arg6[%c0_21, %c0_22, %c0_23], %61 {strides = array<i32>} : memref<2x64x128xbf16, #tpu.memory_space<vmem>>, vector<1x64x128xbf16>,
    %cst_24 = arith.constant 0.000000e+00 : f32
    %62 = vector.shape_cast %46 : vector<1x128xi1> to vector<1x128xi1>
    %63 = vector.broadcast %62 : vector<1x128xi1> to vector<64x128xi1>
    %64 = vector.broadcast %cst_24 : f32 to vector<64x128xf32>
    %65 = arith.select %63, %57, %64 : vector<64x128xi1>, vector<64x128xf32>
    %cst_25 = arith.constant dense<0.000000e+00> : vector<64xf32>
    %66 = vector.multi_reduction <add>, %65, %cst_25 [1] : vector<64x128xf32> to vector<64xf32>
    %67 = vector.shape_cast %66 : vector<64xf32> to vector<64x1xf32>
    %68 = arith.addf %48, %67 : vector<64x1xf32>
    %69 = arith.mulf %65, %65 : vector<64x128xf32>
    %cst_26 = arith.constant dense<0.000000e+00> : vector<64xf32>
    %70 = vector.multi_reduction <add>, %69, %cst_26 [1] : vector<64x128xf32> to vector<64xf32>
    %71 = vector.shape_cast %70 : vector<64xf32> to vector<64x1xf32>
    %72 = arith.addf %49, %71 : vector<64x1xf32>
    %73 = vector.extract_strided_slice %54 {offsets = [1, 0, 0], sizes = [1, 96, 128], strides = [1, 1, 1]} : vector<2x96x128xbf16> to vector<1x96x128xbf16>
    %74 = vector.shape_cast %73 : vector<1x96x128xbf16> to vector<96x128xbf16>
    %cst_27 = arith.constant dense<0.000000e+00> : vector<64x128xf32>
    %75 = tpu.matmul %47, %74, %cst_27 {dimension_numbers = #tpu.dot_dimension_numbers<[1], [0], [0], [1], [0, 0, 1, 1], [], []>} : vector<64x96xbf16>, vector<96x128xbf16>, vector<64x128xf32> -> vector<64x128xf32>
    %76 = arith.truncf %75 : vector<64x128xf32> to vector<64x128xbf16>
    %c1_28 = arith.constant 1 : index
    %c0_29 = arith.constant 0 : index
    %c0_30 = arith.constant 0 : index
    %77 = vector.load %arg6[%c1_28, %c0_29, %c0_30] : memref<2x64x128xbf16, #tpu.memory_space<vmem>>, vector<1x64x128xbf16>
    %78 = vector.shape_cast %77 : vector<1x64x128xbf16> to vector<64x128xbf16>
    %79 = vector.shape_cast %76 : vector<64x128xbf16> to vector<1x64x128xbf16>
    tpu.vector_store %arg6[%c1_28, %c0_29, %c0_30], %79 {strides = array<i32>} : memref<2x64x128xbf16, #tpu.memory_space<vmem>>, vector<1x64x128xbf16>,
    %cst_31 = arith.constant 0.000000e+00 : f32
    %80 = vector.shape_cast %46 : vector<1x128xi1> to vector<1x128xi1>
    %81 = vector.broadcast %80 : vector<1x128xi1> to vector<64x128xi1>
    %82 = vector.broadcast %cst_31 : f32 to vector<64x128xf32>
    %83 = arith.select %81, %75, %82 : vector<64x128xi1>, vector<64x128xf32>
    %cst_32 = arith.constant dense<0.000000e+00> : vector<64xf32>
    %84 = vector.multi_reduction <add>, %83, %cst_32 [1] : vector<64x128xf32> to vector<64xf32>
    %85 = vector.shape_cast %84 : vector<64xf32> to vector<64x1xf32>
    %86 = arith.addf %68, %85 : vector<64x1xf32>
    %87 = arith.mulf %83, %83 : vector<64x128xf32>
    %cst_33 = arith.constant dense<0.000000e+00> : vector<64xf32>
    %88 = vector.multi_reduction <add>, %87, %cst_33 [1] : vector<64x128xf32> to vector<64xf32>
    %89 = vector.shape_cast %88 : vector<64xf32> to vector<64x1xf32>
    %90 = arith.addf %72, %89 : vector<64x1xf32>
    %91 = tpu.concatenate %86, %90 in 1 : vector<64x1xf32>, vector<64x1xf32> -> vector<64x2xf32>
    %c0_34 = arith.constant 0 : index
    %c0_35 = arith.constant 0 : index
    %c0_36 = arith.constant 0 : index
    %92 = vector.load %arg7[%c0_34, %c0_35, %c0_36] : memref<1x64x2xf32, #tpu.memory_space<vmem>>, vector<1x64x2xf32>
    %93 = vector.shape_cast %92 : vector<1x64x2xf32> to vector<64x2xf32>
    %94 = vector.shape_cast %91 : vector<64x2xf32> to vector<1x64x2xf32>
    tpu.vector_store %arg7[%c0_34, %c0_35, %c0_36], %94 {strides = array<i32>} : memref<1x64x2xf32, #tpu.memory_space<vmem>>, vector<1x64x2xf32>,
    return
  }
  func.func @transform_0(%arg0: i32) -> (i32, i32, i32) {
    %c0_i32 = arith.constant 0 : i32
    %c0_i32_0 = arith.constant 0 : i32
    %c0_i32_1 = arith.constant 0 : i32
    %c0_i32_2 = arith.constant 0 : i32
    return %c0_i32, %c0_i32_0, %c0_i32_1 : i32, i32, i32
  }
  func.func @transform_1(%arg0: i32) -> (i32, i32, i32) {
    %c1_i32 = arith.constant 1 : i32
    %0 = arith.muli %arg0, %c1_i32 : i32
    %c1_i32_0 = arith.constant 1 : i32
    %1 = arith.subi %0, %c1_i32_0 : i32
    %c0_i32 = arith.constant 0 : i32
    %2 = arith.maxsi %1, %c0_i32 : i32
    %c0_i32_1 = arith.constant 0 : i32
    %c0_i32_2 = arith.constant 0 : i32
    %c0_i32_3 = arith.constant 0 : i32
    return %c0_i32_1, %c0_i32_2, %2 : i32, i32, i32
  }
  func.func @transform_2(%arg0: i32) -> (i32, i32, i32) {
    %c0_i32 = arith.constant 0 : i32
    %c0_i32_0 = arith.constant 0 : i32
    %c0_i32_1 = arith.constant 0 : i32
    return %c0_i32, %c0_i32_0, %arg0 : i32, i32, i32
  }
  func.func @transform_3(%arg0: i32) -> (i32, i32, i32) {
    %c1_i32 = arith.constant 1 : i32
    %0 = arith.addi %arg0, %c1_i32 : i32
    %c1_i32_0 = arith.constant 1 : i32
    %1 = arith.muli %0, %c1_i32_0 : i32
    %c0_i32 = arith.constant 0 : i32
    %2 = arith.minsi %1, %c0_i32 : i32
    %c0_i32_1 = arith.constant 0 : i32
    %c0_i32_2 = arith.constant 0 : i32
    %c0_i32_3 = arith.constant 0 : i32
    return %c0_i32_1, %c0_i32_2, %2 : i32, i32, i32
  }
  func.func @transform_4(%arg0: i32) -> (i32, i32) {
    %c0_i32 = arith.constant 0 : i32
    %c0_i32_0 = arith.constant 0 : i32
    %c0_i32_1 = arith.constant 0 : i32
    return %c0_i32, %c0_i32_0 : i32, i32
  }
  func.func @transform_5(%arg0: i32) -> (i32, i32, i32) {
    %c0_i32 = arith.constant 0 : i32
    %c0_i32_0 = arith.constant 0 : i32
    %c0_i32_1 = arith.constant 0 : i32
    return %c0_i32, %c0_i32_0, %arg0 : i32, i32, i32
  }
  func.func @transform_6(%arg0: i32) -> (i32, i32, i32) {
    %c0_i32 = arith.constant 0 : i32
    %c0_i32_0 = arith.constant 0 : i32
    %c0_i32_1 = arith.constant 0 : i32
    return %arg0, %c0_i32, %c0_i32_0 : i32, i32, i32
  }
}

module attributes {stable_mosaic.version = 11 : i64} {
  func.func @_bn_act_kernel(%arg0: i32, %arg1: memref<2x64x128xbf16, #tpu.memory_space<vmem>>, %arg2: memref<2x64x1xf32, #tpu.memory_space<vmem>>, %arg3: memref<2x64x128xf32, #tpu.memory_space<vmem>>) attributes {dimension_semantics = [#tpu.dimension_semantics<parallel>], iteration_bounds = array<i64: 1>, scalar_prefetch = 0 : i64, scratch_operands = 0 : i64, tpu.core_type = #tpu.core_type<tc>, window_params = [{transform_indices = @transform_0, window_bounds = array<i64: 2, 64, 128>}, {pipeline_mode = #tpu.pipeline_mode<synchronous>, transform_indices = @transform_1, window_bounds = array<i64: 2, 64, 1>}, {transform_indices = @transform_2, window_bounds = array<i64: 2, 64, 128>}]} {
    %c0 = arith.constant 0 : index
    %c0_0 = arith.constant 0 : index
    %c0_1 = arith.constant 0 : index
    %0 = vector.load %arg1[%c0, %c0_0, %c0_1] : memref<2x64x128xbf16, #tpu.memory_space<vmem>>, vector<2x64x128xbf16>
    %1 = arith.extf %0 : vector<2x64x128xbf16> to vector<2x64x128xf32>
    %c0_2 = arith.constant 0 : index
    %c0_3 = arith.constant 0 : index
    %c0_4 = arith.constant 0 : index
    %2 = vector.load %arg2[%c0_2, %c0_3, %c0_4] : memref<2x64x1xf32, #tpu.memory_space<vmem>>, vector<1x64x1xf32>
    %3 = vector.shape_cast %2 : vector<1x64x1xf32> to vector<64x1xf32>
    %4 = vector.shape_cast %3 : vector<64x1xf32> to vector<1x64x1xf32>
    %5 = vector.broadcast %4 : vector<1x64x1xf32> to vector<2x64x128xf32>
    %6 = arith.mulf %1, %5 : vector<2x64x128xf32>
    %c1 = arith.constant 1 : index
    %c0_5 = arith.constant 0 : index
    %c0_6 = arith.constant 0 : index
    %7 = vector.load %arg2[%c1, %c0_5, %c0_6] : memref<2x64x1xf32, #tpu.memory_space<vmem>>, vector<1x64x1xf32>
    %8 = vector.shape_cast %7 : vector<1x64x1xf32> to vector<64x1xf32>
    %9 = vector.shape_cast %8 : vector<64x1xf32> to vector<1x64x1xf32>
    %10 = vector.broadcast %9 : vector<1x64x1xf32> to vector<2x64x128xf32>
    %11 = arith.addf %6, %10 : vector<2x64x128xf32>
    %cst = arith.constant 0.000000e+00 : f32
    %12 = vector.broadcast %cst : f32 to vector<2x64x128xf32>
    %13 = arith.cmpf oge, %11, %12 : vector<2x64x128xf32>
    %cst_7 = arith.constant 3.000000e-01 : f32
    %14 = vector.broadcast %cst_7 : f32 to vector<2x64x128xf32>
    %15 = arith.mulf %14, %11 : vector<2x64x128xf32>
    %16 = arith.select %13, %11, %15 : vector<2x64x128xi1>, vector<2x64x128xf32>
    %c0_8 = arith.constant 0 : index
    %c0_9 = arith.constant 0 : index
    %c0_10 = arith.constant 0 : index
    %17 = vector.load %arg3[%c0_8, %c0_9, %c0_10] : memref<2x64x128xf32, #tpu.memory_space<vmem>>, vector<2x64x128xf32>
    tpu.vector_store %arg3[%c0_8, %c0_9, %c0_10], %16 {strides = array<i32>} : memref<2x64x128xf32, #tpu.memory_space<vmem>>, vector<2x64x128xf32>,
    return
  }
  func.func @transform_0(%arg0: i32) -> (i32, i32, i32) {
    %c0_i32 = arith.constant 0 : i32
    %c0_i32_0 = arith.constant 0 : i32
    %c0_i32_1 = arith.constant 0 : i32
    return %c0_i32, %c0_i32_0, %arg0 : i32, i32, i32
  }
  func.func @transform_1(%arg0: i32) -> (i32, i32, i32) {
    %c0_i32 = arith.constant 0 : i32
    %c0_i32_0 = arith.constant 0 : i32
    %c0_i32_1 = arith.constant 0 : i32
    %c0_i32_2 = arith.constant 0 : i32
    return %c0_i32, %c0_i32_0, %c0_i32_1 : i32, i32, i32
  }
  func.func @transform_2(%arg0: i32) -> (i32, i32, i32) {
    %c0_i32 = arith.constant 0 : i32
    %c0_i32_0 = arith.constant 0 : i32
    %c0_i32_1 = arith.constant 0 : i32
    return %c0_i32, %c0_i32_0, %arg0 : i32, i32, i32
  }
}

module attributes {stable_mosaic.version = 11 : i64} {
  func.func @_fused_conv_kernel(%arg0: i32, %arg1: memref<2x64x1xf32, #tpu.memory_space<vmem>>, %arg2: memref<2x64x128xbf16, #tpu.memory_space<vmem>>, %arg3: memref<2x64x128xbf16, #tpu.memory_space<vmem>>, %arg4: memref<2x64x128xbf16, #tpu.memory_space<vmem>>, %arg5: memref<64x192xbf16, #tpu.memory_space<vmem>>, %arg6: memref<2x64x128xbf16, #tpu.memory_space<vmem>>, %arg7: memref<1x64x2xf32, #tpu.memory_space<vmem>>) attributes {dimension_semantics = [#tpu.dimension_semantics<parallel>], iteration_bounds = array<i64: 1>, scalar_prefetch = 0 : i64, scratch_operands = 0 : i64, tpu.core_type = #tpu.core_type<tc>, window_params = [{pipeline_mode = #tpu.pipeline_mode<synchronous>, transform_indices = @transform_0, window_bounds = array<i64: 2, 64, 1>}, {transform_indices = @transform_1, window_bounds = array<i64: 2, 64, 128>}, {transform_indices = @transform_2, window_bounds = array<i64: 2, 64, 128>}, {transform_indices = @transform_3, window_bounds = array<i64: 2, 64, 128>}, {pipeline_mode = #tpu.pipeline_mode<synchronous>, transform_indices = @transform_4, window_bounds = array<i64: 64, 192>}, {transform_indices = @transform_5, window_bounds = array<i64: 2, 64, 128>}, {transform_indices = @transform_6, window_bounds = array<i64: 1, 64, 2>}]} {
    %c0 = arith.constant 0 : index
    %c0_0 = arith.constant 0 : index
    %c0_1 = arith.constant 0 : index
    %0 = vector.load %arg1[%c0, %c0_0, %c0_1] : memref<2x64x1xf32, #tpu.memory_space<vmem>>, vector<1x64x1xf32>
    %1 = vector.shape_cast %0 : vector<1x64x1xf32> to vector<64x1xf32>
    %c1 = arith.constant 1 : index
    %c0_2 = arith.constant 0 : index
    %c0_3 = arith.constant 0 : index
    %2 = vector.load %arg1[%c1, %c0_2, %c0_3] : memref<2x64x1xf32, #tpu.memory_space<vmem>>, vector<1x64x1xf32>
    %3 = vector.shape_cast %2 : vector<1x64x1xf32> to vector<64x1xf32>
    %c0_i32 = arith.constant 0 : i32
    %4 = arith.cmpi sgt, %arg0, %c0_i32 : i32
    %5 = arith.extui %4 : i1 to i32
    %6 = arith.sitofp %5 : i32 to f32
    %c0_4 = arith.constant 0 : index
    %c0_5 = arith.constant 0 : index
    %c127 = arith.constant 127 : index
    %7 = vector.load %arg2[%c0_4, %c0_5, %c127] : memref<2x64x128xbf16, #tpu.memory_space<vmem>>, vector<2x64x1xbf16>
    %8 = arith.extf %7 : vector<2x64x1xbf16> to vector<2x64x1xf32>
    %9 = vector.broadcast %6 : f32 to vector<2x64x1xf32>
    %10 = arith.mulf %8, %9 : vector<2x64x1xf32>
    %c0_6 = arith.constant 0 : index
    %c0_7 = arith.constant 0 : index
    %c0_8 = arith.constant 0 : index
    %11 = vector.load %arg3[%c0_6, %c0_7, %c0_8] : memref<2x64x128xbf16, #tpu.memory_space<vmem>>, vector<2x64x128xbf16>
    %12 = arith.extf %11 : vector<2x64x128xbf16> to vector<2x64x128xf32>
    %c0_i32_9 = arith.constant 0 : i32
    %13 = arith.cmpi slt, %arg0, %c0_i32_9 : i32
    %14 = arith.extui %13 : i1 to i32
    %15 = arith.sitofp %14 : i32 to f32
    %c0_10 = arith.constant 0 : index
    %c0_11 = arith.constant 0 : index
    %c0_12 = arith.constant 0 : index
    %16 = vector.load %arg4[%c0_10, %c0_11, %c0_12] : memref<2x64x128xbf16, #tpu.memory_space<vmem>>, vector<2x64x1xbf16>
    %17 = arith.extf %16 : vector<2x64x1xbf16> to vector<2x64x1xf32>
    %18 = vector.broadcast %15 : f32 to vector<2x64x1xf32>
    %19 = arith.mulf %17, %18 : vector<2x64x1xf32>
    %20 = tpu.concatenate %10, %12, %19 in 2 : vector<2x64x1xf32>, vector<2x64x128xf32>, vector<2x64x1xf32> -> vector<2x64x130xf32>
    %21 = vector.shape_cast %1 : vector<64x1xf32> to vector<1x64x1xf32>
    %22 = vector.broadcast %21 : vector<1x64x1xf32> to vector<2x64x130xf32>
    %23 = arith.mulf %20, %22 : vector<2x64x130xf32>
    %24 = vector.shape_cast %3 : vector<64x1xf32> to vector<1x64x1xf32>
    %25 = vector.broadcast %24 : vector<1x64x1xf32> to vector<2x64x130xf32>
    %26 = arith.addf %23, %25 : vector<2x64x130xf32>
    %cst = arith.constant 0.000000e+00 : f32
    %27 = vector.broadcast %cst : f32 to vector<2x64x130xf32>
    %28 = arith.cmpf oge, %26, %27 : vector<2x64x130xf32>
    %cst_13 = arith.constant 3.000000e-01 : f32
    %29 = vector.broadcast %cst_13 : f32 to vector<2x64x130xf32>
    %30 = arith.mulf %29, %26 : vector<2x64x130xf32>
    %31 = arith.select %28, %26, %30 : vector<2x64x130xi1>, vector<2x64x130xf32>
    %32 = tpu.iota {dimensions = array<i32: 1>} : vector<1x130xi32>
    %c128_i32 = arith.constant 128 : i32
    %33 = arith.muli %arg0, %c128_i32 : i32
    %c1_i32 = arith.constant 1 : i32
    %34 = arith.subi %33, %c1_i32 : i32
    %35 = vector.broadcast %34 : i32 to vector<1x130xi32>
    %36 = arith.addi %32, %35 : vector<1x130xi32>
    %c0_i32_14 = arith.constant 0 : i32
    %37 = vector.broadcast %c0_i32_14 : i32 to vector<1x130xi32>
    %38 = arith.cmpi sge, %36, %37 : vector<1x130xi32>
    %c8_i32 = arith.constant 8 : i32
    %39 = vector.broadcast %c8_i32 : i32 to vector<1x130xi32>
    %40 = arith.cmpi slt, %36, %39 : vector<1x130xi32>
    %41 = arith.andi %38, %40 : vector<1x130xi1>
    %cst_15 = arith.constant 0.000000e+00 : f32
    %42 = vector.shape_cast %41 : vector<1x130xi1> to vector<1x1x130xi1>
    %43 = vector.broadcast %42 : vector<1x1x130xi1> to vector<2x64x130xi1>
    %44 = vector.broadcast %cst_15 : f32 to vector<2x64x130xf32>
    %45 = arith.select %43, %31, %44 : vector<2x64x130xi1>, vector<2x64x130xf32>
    %46 = tpu.iota {dimensions = array<i32: 1>} : vector<1x128xi32>
    %c128_i32_16 = arith.constant 128 : i32
    %47 = arith.muli %arg0, %c128_i32_16 : i32
    %48 = vector.broadcast %47 : i32 to vector<1x128xi32>
    %49 = arith.addi %46, %48 : vector<1x128xi32>
    %c8_i32_17 = arith.constant 8 : i32
    %50 = vector.broadcast %c8_i32_17 : i32 to vector<1x128xi32>
    %51 = arith.cmpi slt, %49, %50 : vector<1x128xi32>
    %c0_18 = arith.constant 0 : index
    %c0_19 = arith.constant 0 : index
    %52 = vector.load %arg5[%c0_18, %c0_19] : memref<64x192xbf16, #tpu.memory_space<vmem>>, vector<64x192xbf16>
    %cst_20 = arith.constant 0.000000e+00 : f32
    %53 = vector.broadcast %cst_20 : f32 to vector<64x1xf32>
    %cst_21 = arith.constant 0.000000e+00 : f32
    %54 = vector.broadcast %cst_21 : f32 to vector<64x1xf32>
    %55 = arith.truncf %45 : vector<2x64x130xf32> to vector<2x64x130xbf16>
    %56 = vector.extract_strided_slice %55 {offsets = [0, 0, 0], sizes = [2, 64, 128], strides = [1, 1, 1]} : vector<2x64x130xbf16> to vector<2x64x128xbf16>
    %57 = vector.extract_strided_slice %55 {offsets = [0, 0, 1], sizes = [2, 64, 128], strides = [1, 1, 1]} : vector<2x64x130xbf16> to vector<2x64x128xbf16>
    %58 = vector.extract_strided_slice %55 {offsets = [0, 0, 2], sizes = [2, 64, 128], strides = [1, 1, 1]} : vector<2x64x130xbf16> to vector<2x64x128xbf16>
    %59 = tpu.concatenate %56, %57, %58 in 1 : vector<2x64x128xbf16>, vector<2x64x128xbf16>, vector<2x64x128xbf16> -> vector<2x192x128xbf16>
    %60 = vector.extract_strided_slice %59 {offsets = [0, 0, 0], sizes = [1, 192, 128], strides = [1, 1, 1]} : vector<2x192x128xbf16> to vector<1x192x128xbf16>
    %61 = vector.shape_cast %60 : vector<1x192x128xbf16> to vector<192x128xbf16>
    %cst_22 = arith.constant dense<0.000000e+00> : vector<64x128xf32>
    %62 = tpu.matmul %52, %61, %cst_22 {dimension_numbers = #tpu.dot_dimension_numbers<[1], [0], [0], [1], [0, 0, 1, 1], [], []>} : vector<64x192xbf16>, vector<192x128xbf16>, vector<64x128xf32> -> vector<64x128xf32>
    %63 = arith.truncf %62 : vector<64x128xf32> to vector<64x128xbf16>
    %c0_23 = arith.constant 0 : index
    %c0_24 = arith.constant 0 : index
    %c0_25 = arith.constant 0 : index
    %64 = vector.load %arg6[%c0_23, %c0_24, %c0_25] : memref<2x64x128xbf16, #tpu.memory_space<vmem>>, vector<1x64x128xbf16>
    %65 = vector.shape_cast %64 : vector<1x64x128xbf16> to vector<64x128xbf16>
    %66 = vector.shape_cast %63 : vector<64x128xbf16> to vector<1x64x128xbf16>
    tpu.vector_store %arg6[%c0_23, %c0_24, %c0_25], %66 {strides = array<i32>} : memref<2x64x128xbf16, #tpu.memory_space<vmem>>, vector<1x64x128xbf16>,
    %cst_26 = arith.constant 0.000000e+00 : f32
    %67 = vector.shape_cast %51 : vector<1x128xi1> to vector<1x128xi1>
    %68 = vector.broadcast %67 : vector<1x128xi1> to vector<64x128xi1>
    %69 = vector.broadcast %cst_26 : f32 to vector<64x128xf32>
    %70 = arith.select %68, %62, %69 : vector<64x128xi1>, vector<64x128xf32>
    %cst_27 = arith.constant dense<0.000000e+00> : vector<64xf32>
    %71 = vector.multi_reduction <add>, %70, %cst_27 [1] : vector<64x128xf32> to vector<64xf32>
    %72 = vector.shape_cast %71 : vector<64xf32> to vector<64x1xf32>
    %73 = arith.addf %53, %72 : vector<64x1xf32>
    %74 = arith.mulf %70, %70 : vector<64x128xf32>
    %cst_28 = arith.constant dense<0.000000e+00> : vector<64xf32>
    %75 = vector.multi_reduction <add>, %74, %cst_28 [1] : vector<64x128xf32> to vector<64xf32>
    %76 = vector.shape_cast %75 : vector<64xf32> to vector<64x1xf32>
    %77 = arith.addf %54, %76 : vector<64x1xf32>
    %78 = vector.extract_strided_slice %59 {offsets = [1, 0, 0], sizes = [1, 192, 128], strides = [1, 1, 1]} : vector<2x192x128xbf16> to vector<1x192x128xbf16>
    %79 = vector.shape_cast %78 : vector<1x192x128xbf16> to vector<192x128xbf16>
    %cst_29 = arith.constant dense<0.000000e+00> : vector<64x128xf32>
    %80 = tpu.matmul %52, %79, %cst_29 {dimension_numbers = #tpu.dot_dimension_numbers<[1], [0], [0], [1], [0, 0, 1, 1], [], []>} : vector<64x192xbf16>, vector<192x128xbf16>, vector<64x128xf32> -> vector<64x128xf32>
    %81 = arith.truncf %80 : vector<64x128xf32> to vector<64x128xbf16>
    %c1_30 = arith.constant 1 : index
    %c0_31 = arith.constant 0 : index
    %c0_32 = arith.constant 0 : index
    %82 = vector.load %arg6[%c1_30, %c0_31, %c0_32] : memref<2x64x128xbf16, #tpu.memory_space<vmem>>, vector<1x64x128xbf16>
    %83 = vector.shape_cast %82 : vector<1x64x128xbf16> to vector<64x128xbf16>
    %84 = vector.shape_cast %81 : vector<64x128xbf16> to vector<1x64x128xbf16>
    tpu.vector_store %arg6[%c1_30, %c0_31, %c0_32], %84 {strides = array<i32>} : memref<2x64x128xbf16, #tpu.memory_space<vmem>>, vector<1x64x128xbf16>,
    %cst_33 = arith.constant 0.000000e+00 : f32
    %85 = vector.shape_cast %51 : vector<1x128xi1> to vector<1x128xi1>
    %86 = vector.broadcast %85 : vector<1x128xi1> to vector<64x128xi1>
    %87 = vector.broadcast %cst_33 : f32 to vector<64x128xf32>
    %88 = arith.select %86, %80, %87 : vector<64x128xi1>, vector<64x128xf32>
    %cst_34 = arith.constant dense<0.000000e+00> : vector<64xf32>
    %89 = vector.multi_reduction <add>, %88, %cst_34 [1] : vector<64x128xf32> to vector<64xf32>
    %90 = vector.shape_cast %89 : vector<64xf32> to vector<64x1xf32>
    %91 = arith.addf %73, %90 : vector<64x1xf32>
    %92 = arith.mulf %88, %88 : vector<64x128xf32>
    %cst_35 = arith.constant dense<0.000000e+00> : vector<64xf32>
    %93 = vector.multi_reduction <add>, %92, %cst_35 [1] : vector<64x128xf32> to vector<64xf32>
    %94 = vector.shape_cast %93 : vector<64xf32> to vector<64x1xf32>
    %95 = arith.addf %77, %94 : vector<64x1xf32>
    %96 = tpu.concatenate %91, %95 in 1 : vector<64x1xf32>, vector<64x1xf32> -> vector<64x2xf32>
    %c0_36 = arith.constant 0 : index
    %c0_37 = arith.constant 0 : index
    %c0_38 = arith.constant 0 : index
    %97 = vector.load %arg7[%c0_36, %c0_37, %c0_38] : memref<1x64x2xf32, #tpu.memory_space<vmem>>, vector<1x64x2xf32>
    %98 = vector.shape_cast %97 : vector<1x64x2xf32> to vector<64x2xf32>
    %99 = vector.shape_cast %96 : vector<64x2xf32> to vector<1x64x2xf32>
    tpu.vector_store %arg7[%c0_36, %c0_37, %c0_38], %99 {strides = array<i32>} : memref<1x64x2xf32, #tpu.memory_space<vmem>>, vector<1x64x2xf32>,
    return
  }
  func.func @transform_0(%arg0: i32) -> (i32, i32, i32) {
    %c0_i32 = arith.constant 0 : i32
    %c0_i32_0 = arith.constant 0 : i32
    %c0_i32_1 = arith.constant 0 : i32
    %c0_i32_2 = arith.constant 0 : i32
    return %c0_i32, %c0_i32_0, %c0_i32_1 : i32, i32, i32
  }
  func.func @transform_1(%arg0: i32) -> (i32, i32, i32) {
    %c1_i32 = arith.constant 1 : i32
    %0 = arith.muli %arg0, %c1_i32 : i32
    %c1_i32_0 = arith.constant 1 : i32
    %1 = arith.subi %0, %c1_i32_0 : i32
    %c0_i32 = arith.constant 0 : i32
    %2 = arith.maxsi %1, %c0_i32 : i32
    %c0_i32_1 = arith.constant 0 : i32
    %c0_i32_2 = arith.constant 0 : i32
    %c0_i32_3 = arith.constant 0 : i32
    return %c0_i32_1, %c0_i32_2, %2 : i32, i32, i32
  }
  func.func @transform_2(%arg0: i32) -> (i32, i32, i32) {
    %c0_i32 = arith.constant 0 : i32
    %c0_i32_0 = arith.constant 0 : i32
    %c0_i32_1 = arith.constant 0 : i32
    return %c0_i32, %c0_i32_0, %arg0 : i32, i32, i32
  }
  func.func @transform_3(%arg0: i32) -> (i32, i32, i32) {
    %c1_i32 = arith.constant 1 : i32
    %0 = arith.addi %arg0, %c1_i32 : i32
    %c1_i32_0 = arith.constant 1 : i32
    %1 = arith.muli %0, %c1_i32_0 : i32
    %c0_i32 = arith.constant 0 : i32
    %2 = arith.minsi %1, %c0_i32 : i32
    %c0_i32_1 = arith.constant 0 : i32
    %c0_i32_2 = arith.constant 0 : i32
    %c0_i32_3 = arith.constant 0 : i32
    return %c0_i32_1, %c0_i32_2, %2 : i32, i32, i32
  }
  func.func @transform_4(%arg0: i32) -> (i32, i32) {
    %c0_i32 = arith.constant 0 : i32
    %c0_i32_0 = arith.constant 0 : i32
    %c0_i32_1 = arith.constant 0 : i32
    return %c0_i32, %c0_i32_0 : i32, i32
  }
  func.func @transform_5(%arg0: i32) -> (i32, i32, i32) {
    %c0_i32 = arith.constant 0 : i32
    %c0_i32_0 = arith.constant 0 : i32
    %c0_i32_1 = arith.constant 0 : i32
    return %c0_i32, %c0_i32_0, %arg0 : i32, i32, i32
  }
  func.func @transform_6(%arg0: i32) -> (i32, i32, i32) {
    %c0_i32 = arith.constant 0 : i32
    %c0_i32_0 = arith.constant 0 : i32
    %c0_i32_1 = arith.constant 0 : i32
    return %arg0, %c0_i32, %c0_i32_0 : i32, i32, i32
  }
}

</mosaic_0001>

<bundles_post_ra>
// kernel: _lambda_.8
= control target key start
LH: loop header
LB: loop body
LE: loop exit
PB: predicated region body
PF: predicated region fallthrough
CT: control target
= control target key end

     0   :  { %v709_v1 = vmov 0   ;;  %vm349_vm1 = vcmask 519168   ;;  %s935_s2 = inlined_call_operand.vmem [shape: bf16[128,64], index: 2, kind: input, shape index: {}]   ;;  %s936_s3 = inlined_call_operand.vmem [shape: bf16[128,64], index: 3, kind: input, shape index: {}]   ;;  %s937_s0 = inlined_call_operand.vmem [shape: bf16[2,32,128], index: 0, kind: input, shape index: {}]   ;;  %s938_s1 = inlined_call_operand.vmem [shape: f32[2,32,1], index: 1, kind: input, shape index: {}]   ;;  %s939_s4 = inlined_call_operand.vmem [shape: bf16[2,32,64], index: 4, kind: output, shape index: {}]  }
   0x1   :  { %v738_v0 = vld [vmem:[%s935_s2 + $0x38] sm:$0xff]   ;;  %687 = vset.pattern.permute.xlu0 %v709_v1  ;;  %688 = vset.pattern.permute.xlu1 %v709_v1  ;;  %v749_v3 = vld [vmem:[%s935_s2 + $0x30] sm:$0xff]   ;;  %v763_v5 = vld [vmem:[%s935_s2 + $0x28] sm:$0xff]  }
   0x2   :  { %v743_v2 = vld [vmem:[%s936_s3 + $0x38] sm:$0xff]   ;;  %606 = vmatprep.subr.bf16.mxu0 %v738_v0  ;;  %v756_v4 = vld [vmem:[%s936_s3 + $0x30] sm:$0xff]   ;;  %v769_v6 = vld [vmem:[%s936_s3 + $0x28] sm:$0xff]  }
   0x3   :  { %626 = vmatprep.subr.bf16.mxu1 %v743_v2  ;;  %607 = vmatpush3.bf16.msra.mxu0 %v738_v0  ;;  %v777_v7 = vld [vmem:[%s935_s2 + $0x20] sm:$0xff]   ;;  %v791_v9 = vld [vmem:[%s935_s2 + $0x18] sm:$0xff]   ;;  %v803_v11 = vld [vmem:[%s935_s2 + $0x10] sm:$0xff]  }
   0x4   :  { %627 = vmatpush3.bf16.msra.mxu1 %v743_v2  ;;  %608 = vmatprep.subr.bf16.mxu0 %v749_v3  ;;  %v783_v8 = vld [vmem:[%s936_s3 + $0x20] sm:$0xff]   ;;  %v797_v10 = vld [vmem:[%s936_s3 + $0x18] sm:$0xff]   ;;  %v814_v13 = vld [vmem:[%s936_s3 + $0x10] sm:$0xff]  }
   0x5   :  { %628 = vmatprep.subr.bf16.mxu1 %v756_v4  ;;  %v705_v12 = vld [vmem:[%s937_s0] sm:$0xff]   ;;  %v701_v14 = vld [vmem:[%s935_s2 + $0x8] sm:$0xff]   ;;  %v20_v16 = vld [vmem:[%s938_s1 + $0x10] sm:$0xff] }
   0x6   :  { %622 = vmatprep.mubr.bf16.mxu0 %v705_v12  ;;  %642 = vmatprep.mubr.bf16.mxu1 %v705_v12  ;;  %v18_v15 = vld [vmem:[%s938_s1] sm:$0xff]  ;;  %v702_v17 = vld [vmem:[%s936_s3 + $0x8] sm:$0xff]   ;;  %v21_v19 = vld [vmem:[%s938_s1 + $0x18] sm:$0xff] }
   0x7   :  { %609 = vmatpush3.bf16.msra.mxu0 %v749_v3  ;;  %275 = vperm.xlu0 %687, %v18_v15   ;;  %v19_v18 = vld [vmem:[%s938_s1 + $0x8] sm:$0xff]  ;;  %v703_v20 = vld [vmem:[%s935_s2] sm:$0xff]   ;;  %v520_v25 = vld [vmem:[%s938_s1 + $0x30] sm:$0xff] }
   0x8   :  { %629 = vmatpush3.bf16.msra.mxu1 %v756_v4  ;;  %610 = vmatprep.subr.bf16.mxu0 %v763_v5  ;;  %v704_v21 = vld [vmem:[%s936_s3] sm:$0xff]   ;;  %v519_v23 = vld [vmem:[%s938_s1 + $0x28] sm:$0xff]  ;;  %v521_v26 = vld [vmem:[%s938_s1 + $0x38] sm:$0xff] }
   0x9   :  { %630 = vmatprep.subr.bf16.mxu1 %v769_v6  ;;  %285 = vperm.xlu1 %688, %v20_v16   ;;  %v518_v22 = vld [vmem:[%s938_s1 + $0x20] sm:$0xff]  ;;  %v706_v24 = vld [vmem:[%s937_s0 + $0x8] sm:$0xff]   ;;  %v707_v27 = vld [vmem:[%s937_s0 + $0x10] sm:$0xff]  }
   0xa   :  { %v708_v28 = vld [vmem:[%s937_s0 + $0x18] sm:$0xff]  }
   0xb   :  { %611 = vmatpush3.bf16.msra.mxu0 %v763_v5  ;;  %280 = vperm.xlu0 %687, %v19_v18  }
   0xc   :  { %631 = vmatpush3.bf16.msra.mxu1 %v769_v6  ;;  %612 = vmatprep.subr.bf16.mxu0 %v777_v7 }
   0xd   :  { %632 = vmatprep.subr.bf16.mxu1 %v783_v8  ;;  %290 = vperm.xlu1 %688, %v21_v19  }
   0xf   :  { %613 = vmatpush3.bf16.msra.mxu0 %v777_v7  ;;  %299 = vperm.xlu0 %687, %v518_v22  }
  0x10   :  { %633 = vmatpush3.bf16.msra.mxu1 %v783_v8  ;;  %614 = vmatprep.subr.bf16.mxu0 %v791_v9 }
  0x11   :  { %634 = vmatprep.subr.bf16.mxu1 %v797_v10  ;;  %304 = vperm.xlu1 %688, %v519_v23  }
  0x13   :  { %615 = vmatpush3.bf16.msra.mxu0 %v791_v9  ;;  %309 = vperm.xlu0 %687, %v520_v25  }
  0x14   :  { %635 = vmatpush3.bf16.msra.mxu1 %v797_v10  ;;  %616 = vmatprep.subr.bf16.mxu0 %v803_v11 }
  0x15   :  { %636 = vmatprep.subr.bf16.mxu1 %v814_v13  ;;  %314 = vperm.xlu1 %688, %v521_v26  }
  0x17   :  { %617 = vmatpush3.bf16.msra.mxu0 %v803_v11 }
  0x18   :  { %637 = vmatpush3.bf16.msra.mxu1 %v814_v13  ;;  %618 = vmatprep.subr.bf16.mxu0 %v701_v14 }
  0x19   :  { %638 = vmatprep.subr.bf16.mxu1 %v702_v17 }
  0x1b   :  { %619 = vmatpush3.bf16.msra.mxu0 %v701_v14 }
  0x1c   :  { %639 = vmatpush3.bf16.msra.mxu1 %v702_v17  ;;  %620 = vmatprep.subr.bf16.mxu0 %v703_v20 }
  0x1d   :  { %640 = vmatprep.subr.bf16.mxu1 %v704_v21 }
  0x1f   :  { %621 = vmatpush3.bf16.msra.mxu0 %v703_v20 }
  0x20   :  { %641 = vmatpush3.bf16.msra.mxu1 %v704_v21  ;;  %646 = vmatprep.subr.bf16.mxu0 %v738_v0 }
  0x21   :  { %666 = vmatprep.subr.bf16.mxu1 %v743_v2 }
  0x22   :  { %623 = vmatmul.mubr.bf16.vlgmr.msra.gmra.mxu0 %v706_v24 }
  0x23   :  { %643 = vmatmul.mubr.bf16.vlgmr.msra.gmra.mxu1 %v706_v24  ;;  %647 = vmatpush3.bf16.msra.mxu0 %v738_v0 }
  0x24   :  { %667 = vmatpush3.bf16.msra.mxu1 %v743_v2  ;;  %648 = vmatprep.subr.bf16.mxu0 %v749_v3 }
  0x25   :  { %668 = vmatprep.subr.bf16.mxu1 %v756_v4  ;;  %662 = vmatprep.mubr.bf16.mxu0 %v707_v27 }
  0x26   :  { %682 = vmatprep.mubr.bf16.mxu1 %v707_v27 }
  0x27   :  { %649 = vmatpush3.bf16.msra.mxu0 %v749_v3 }
  0x28   :  { %669 = vmatpush3.bf16.msra.mxu1 %v756_v4  ;;  %650 = vmatprep.subr.bf16.mxu0 %v763_v5 }
  0x29   :  { %670 = vmatprep.subr.bf16.mxu1 %v769_v6 }
  0x2b   :  { %651 = vmatpush3.bf16.msra.mxu0 %v763_v5 }
  0x2c   :  { %671 = vmatpush3.bf16.msra.mxu1 %v769_v6  ;;  %652 = vmatprep.subr.bf16.mxu0 %v777_v7 }
  0x2d   :  { %672 = vmatprep.subr.bf16.mxu1 %v783_v8 }
  0x2f   :  { %653 = vmatpush3.bf16.msra.mxu0 %v777_v7 }
  0x30   :  { %673 = vmatpush3.bf16.msra.mxu1 %v783_v8  ;;  %654 = vmatprep.subr.bf16.mxu0 %v791_v9 }
  0x31   :  { %674 = vmatprep.subr.bf16.mxu1 %v797_v10 }
  0x33   :  { %655 = vmatpush3.bf16.msra.mxu0 %v791_v9 }
  0x34   :  { %675 = vmatpush3.bf16.msra.mxu1 %v797_v10  ;;  %656 = vmatprep.subr.bf16.mxu0 %v803_v11 }
  0x35   :  { %676 = vmatprep.subr.bf16.mxu1 %v814_v13 }
  0x37   :  { %657 = vmatpush3.bf16.msra.mxu0 %v803_v11 }
  0x38   :  { %677 = vmatpush3.bf16.msra.mxu1 %v814_v13  ;;  %658 = vmatprep.subr.bf16.mxu0 %v701_v14 }
  0x39   :  { %678 = vmatprep.subr.bf16.mxu1 %v702_v17 }
  0x3b   :  { %659 = vmatpush3.bf16.msra.mxu0 %v701_v14 }
  0x3c   :  { %679 = vmatpush3.bf16.msra.mxu1 %v702_v17  ;;  %660 = vmatprep.subr.bf16.mxu0 %v703_v20 }
  0x3d   :  { %680 = vmatprep.subr.bf16.mxu1 %v704_v21 }
  0x3f   :  { %661 = vmatpush3.bf16.msra.mxu0 %v703_v20 }
  0x40   :  { %681 = vmatpush3.bf16.msra.mxu1 %v704_v21 }
  0x42   :  { %663 = vmatmul.mubr.bf16.vlgmr.msra.gmra.mxu0 %v708_v28 }
  0x43   :  { %683 = vmatmul.mubr.bf16.vlgmr.msra.gmra.mxu1 %v708_v28 }
  0x82   :  { %v276_v29 = vpop.permute.xlu0 %275 }
  0x84   :  { %v286_v30 = vpop.permute.xlu1 %285 }
  0x86   :  { %v891_v31 = vpop.permute.xlu0 %280 }
  0x88   :  { %v893_v32 = vpop.permute.xlu1 %290 }
  0x8a   :  { %v300_v33 = vpop.permute.xlu0 %299 }
  0x8c   :  { %v895_v38 = vpop.permute.xlu1 %304 }
  0x8e   :  { %v310_v40 = vpop.permute.xlu0 %309 }
  0x90   :  { %v315_v53 = vpop.permute.xlu1 %314 }
  0xe2   :  { %v624_v34 = vpop.f32.mrf.mxu0 }
  0xe3   :  { %v644_v35 = vpop.f32.mrf.mxu1 }
  0xe4   :  { %v271_v36 = vmax.f32 %v624_v34, %v644_v35  ;;  %v157_v37 = vpop.f32.mrf.mxu0 }
  0xe5   :  { %v254_v39 = vpop.f32.mrf.mxu1 }
  0xe6   :  { %v269_v41 = vmax.f32 %v157_v37, %v254_v39  ;;  %v295_v42 = vmul.f32 %v286_v30, %v271_v36  ;;  %v625_v43 = vpop.f32.mrf.mxu0 }
  0xe7   :  { %v645_v44 = vpop.f32.mrf.mxu1 }
  0xe8   :  { %v293_v45 = vmul.f32 %v276_v29, %v269_v41  ;;  %v319_v46 = vadd.f32 %v310_v40, %v295_v42  ;;  %v272_v47 = vmax.f32 %v625_v43, %v645_v44  ;;  %v160_v48 = vpop.f32.mrf.mxu0 }
  0xe9   :  { %v257_v49 = vpop.f32.mrf.mxu1 }
  0xea   :  { %v317_v50 = vadd.f32 %v300_v33, %v293_v45  ;;  %vm323_vm0 = vcmp.ge.f32.partialorder %v319_v46, 0.0  ;;  %v327_v51 = vmul.f32 0.3, %v319_v46  ;;  %v270_v52 = vmax.f32 %v160_v48, %v257_v49 }
  0xeb   :  { %v296_v54 = vmul.f32 %v893_v32, %v272_v47 }
  0xec   :  { %vm321_vm2 = vcmp.ge.f32.partialorder %v317_v50, 0.0  ;;  %v325_v55 = vmul.f32 0.3, %v317_v50  ;;  %v331_v56 = vsel %vm323_vm0, %v319_v46, %v327_v51  ;;  %v294_v57 = vmul.f32 %v891_v31, %v270_v52 }
  0xed   :  { %v560_v58 = vpack.c.bf16 %v331_v56, %v331_v56  ;;  %v320_v59 = vadd.f32 %v315_v53, %v296_v54 }
  0xee   :  { %v329_v60 = vsel %vm321_vm2, %v317_v50, %v325_v55  ;;  %v318_v61 = vadd.f32 %v895_v38, %v294_v57 }
  0xef   :  { %v558_v62 = vpack.c.bf16 %v329_v60, %v329_v60  ;;  %352 = vst.msk [vmem:[%s939_s4 + $0x8] sm:$0xf] %vm349_vm1, %v560_v58  ;;  %vm324_vm3 = vcmp.ge.f32.partialorder %v320_v59, 0.0  ;;  %v328_v63 = vmul.f32 0.3, %v320_v59 }
  0xf0   :  { %vm322_vm4 = vcmp.ge.f32.partialorder %v318_v61, 0.0  ;;  %v326_v0 = vmul.f32 0.3, %v318_v61 }
  0xf1   :  { %350 = vst.msk [vmem:[%s939_s4] sm:$0xf] %vm349_vm1, %v558_v62  ;;  %v332_v1 = vsel %vm324_vm3, %v320_v59, %v328_v63 }
  0xf2   :  { %v330_v2 = vsel %vm322_vm4, %v318_v61, %v326_v0  ;;  %v561_v3 = vpack.c.bf16 %v332_v1, %v332_v1 }
  0xf3   :  { %v559_v4 = vpack.c.bf16 %v330_v2, %v330_v2 }
  0xf4   :  { %353 = vst.msk [vmem:[%s939_s4 + $0xc] sm:$0xf] %vm349_vm1, %v561_v3 }
  0xf5   :  { %351 = vst.msk [vmem:[%s939_s4 + $0x4] sm:$0xf] %vm349_vm1, %v559_v4 }
 0x102   :  { %v664_v5 = vpop.f32.mrf.mxu0 }
 0x103   :  { %v684_v6 = vpop.f32.mrf.mxu1 }
 0x104   :  { %v471_v7 = vmax.f32 %v664_v5, %v684_v6  ;;  %v405_v8 = vpop.f32.mrf.mxu0 }
 0x105   :  { %v454_v9 = vpop.f32.mrf.mxu1 }
 0x106   :  { %v475_v10 = vmul.f32 %v471_v7, %v286_v30  ;;  %v469_v11 = vmax.f32 %v405_v8, %v454_v9  ;;  %v665_v12 = vpop.f32.mrf.mxu0 }
 0x107   :  { %v685_v13 = vpop.f32.mrf.mxu1 }
 0x108   :  { %v479_v14 = vadd.f32 %v475_v10, %v310_v40  ;;  %v473_v15 = vmul.f32 %v469_v11, %v276_v29  ;;  %v472_v16 = vmax.f32 %v665_v12, %v685_v13  ;;  %v408_v17 = vpop.f32.mrf.mxu0 }
 0x109   :  { %v457_v18 = vpop.f32.mrf.mxu1 }
 0x10a   :  { %vm483_vm5 = vcmp.ge.f32.partialorder %v479_v14, 0.0  ;;  %v487_v19 = vmul.f32 0.3, %v479_v14  ;;  %v477_v20 = vadd.f32 %v473_v15, %v300_v33  ;;  %v476_v21 = vmul.f32 %v472_v16, %v893_v32 }
 0x10b   :  { %v470_v22 = vmax.f32 %v408_v17, %v457_v18 }
 0x10c   :  { %v491_v23 = vsel %vm483_vm5, %v479_v14, %v487_v19  ;;  %vm481_vm6 = vcmp.ge.f32.partialorder %v477_v20, 0.0  ;;  %v485_v24 = vmul.f32 0.3, %v477_v20  ;;  %v480_v25 = vadd.f32 %v476_v21, %v315_v53 }
 0x10d   :  { %v564_v26 = vpack.c.bf16 %v491_v23, %v491_v23  ;;  %v474_v27 = vmul.f32 %v470_v22, %v891_v31 }
 0x10e   :  { %v489_v28 = vsel %vm481_vm6, %v477_v20, %v485_v24  ;;  %vm484_vm7 = vcmp.ge.f32.partialorder %v480_v25, 0.0  ;;  %v488_v30 = vmul.f32 0.3, %v480_v25 }
 0x10f   :  { %556 = vst.msk [vmem:[%s939_s4 + $0x18] sm:$0xf] %vm349_vm1, %v564_v26  ;;  %v562_v29 = vpack.c.bf16 %v489_v28, %v489_v28  ;;  %v478_v33 = vadd.f32 %v474_v27, %v895_v38 }
 0x110   :  { %v492_v32 = vsel %vm484_vm7, %v480_v25, %v488_v30 }
 0x111   :  { %554 = vst.msk [vmem:[%s939_s4 + $0x10] sm:$0xf] %vm349_vm1, %v562_v29  ;;  %v565_v34 = vpack.c.bf16 %v492_v32, %v492_v32  ;;  %vm482_vm8 = vcmp.ge.f32.partialorder %v478_v33, 0.0  ;;  %v486_v31 = vmul.f32 0.3, %v478_v33 }
 0x113   :  { %557 = vst.msk [vmem:[%s939_s4 + $0x1c] sm:$0xf] %vm349_vm1, %v565_v34  ;;  %v490_v35 = vsel %vm482_vm8, %v478_v33, %v486_v31 }
 0x114   :  { %v563_v36 = vpack.c.bf16 %v490_v35, %v490_v35 }
 0x116   :  { %555 = vst.msk [vmem:[%s939_s4 + $0x14] sm:$0xf] %vm349_vm1, %v563_v36 }

// kernel: _lambda_.6
= control target key start
LH: loop header
LB: loop body
LE: loop exit
PB: predicated region body
PF: predicated region fallthrough
CT: control target
= control target key end

     0   :  { %12 = vsyncpa [#allocation3], 0  ;;  %s691_s21 = smov [#allocation2]   ;;  %s922_s0 = inlined_call_operand.vmem [shape: f32[2,1,1], index: 0, kind: input, shape index: {}]   ;;  %s923_s1 = inlined_call_operand.vmem [shape: f32[2,1,128], index: 1, kind: input, shape index: {}, may-alias: {1,2,3}]   ;;  %s924_s2 = inlined_call_operand.vmem [shape: f32[2,1,128], index: 2, kind: input, shape index: {}, may-alias: {1,2,3}]   ;;  %s925_s3 = inlined_call_operand.vmem [shape: f32[2,1,128], index: 3, kind: input, shape index: {}, may-alias: {1,2,3}]   ;;  %s926_s4 = inlined_call_operand.hbm [shape: f32[32,3], index: 4, kind: input, shape index: {}]   ;;  %s927_s5 = inlined_call_operand.vmem [shape: bf16[2,32,128], index: 5, kind: output, shape index: {0}]   ;;  %s928_s6 = inlined_call_operand.vmem [shape: f32[1,32,2], index: 6, kind: output, shape index: {1}]  }
   0x1   :  { %s44_s22 = sshll.u32 %s691_s21, 4  ;;  %s45_s22 = int_to_ptr.vmem [resolvable:$true] %s44_s22 }
   0x2   :  { %s677_s23 = scalar_lea.vmem %s45_s22, 512  ;;  %p682_p1 = scmp.lt.s32.totalorder %s45_s22, %s45_s22 }
   0x3   :  { %p678_p0 = scmp.ne.s32.totalorder %s45_s22, %s677_s23  ;;  %p683_p2 = scmp.lt.s32.totalorder %s677_s23, %s677_s23 }
   0x5   :  { %p684_p3 = por %p683_p2, %p682_p1 }
   0x7   :  { %p685_p4 = pnand %p684_p3, %p678_p0 }
   0x9   :  { %688 = shalt.err (!%p685_p4)
}
   0xa   :  { %s692_s3 = smov 128   ;;  %s693_s24 = smov 8  }
   0xb   :  { %50 = dma.hbm_to_vmem [thread:$0]  %s926_s4, 512, %s45_s22, [#allocation3], %s692_s3, %s692_s3, %s693_s24  }
   0xc   :  { %689 = dma.done.wait [#allocation3], 512  }
   0xd   :  { %690 = vsyncadd [#allocation3], 4294966784  ;;  %v107_v0 = vlaneseq  ;;  %v694_v1 = vmov 1   ;;  %v608_v3 = vld [vmem:[%s924_s2 + $0x1] ss:$0 sm:$0xff]  ;;  %s695_s7 = smov 1  }
   0xe   :  { %663 = vset.pattern.permute.xlu1 %v694_v1  ;;  %662 = vset.pattern.permute.xlu0 %v694_v1  ;;  %v607_v4 = vld [vmem:[%s924_s2] ss:$0 sm:$0xff]  ;;  %v210_v7 = vld [vmem:[#allocation2 + $0x8] sm:$0xff]  ;;  %v91_v10 = vld [vmem:[%s923_s1 + $0x1] sm:$0x1]  ;;  %v696_v15 = vmov 2  }
   0xf   :  { %v108_v2 = vshrl.u32 %v107_v0, 7  ;;  %133 = vrot.lane.b32.xlu1 %v608_v3, %s695_s7  ;;  %131 = vrot.lane.b32.xlu0 %v607_v4, %s695_s7  ;;  %v90_v5 = vld [vmem:[%s923_s1] sm:$0x1]  ;;  %v94_v12 = vmul.f32 0.0, %v91_v10  ;;  %v212_v13 = vld [vmem:[#allocation2 + $0x18] sm:$0xff]  ;;  %v211_v16 = vld [vmem:[#allocation2 + $0x10] sm:$0xff] }
  0x10   :  { %v209_v8 = vld [vmem:[#allocation2] sm:$0xff]  ;;  %v93_v9 = vmul.f32 0.0, %v90_v5  ;;  %v697_v18 = vmov 0   ;;  %v698_v22 = vmov 0.0   ;;  %v766_v32 = vand.u32 127, %v107_v0  ;;  %s700_s13 = smov 126  }
  0x11   :  { %v748_v6 = vsub.s32 0, %v108_v2  ;;  %v84_v17 = vld [vmem:[%s922_s0] sm:$0x1]  ;;  %v606_v19 = vld [vmem:[%s922_s0 + $0x1] sm:$0x1]  ;;  %s699_s0 = smov 127  }
  0x12   :  { %v190_v35 = vadd.s32 4294967295, %v766_v32  ;;  %vm153_vm0 = vcmask 7168   ;;  %vm297_vm4 = vcmask 1039360   ;;  %vm358_vm5 = vcmask 1031168  }
  0x13   :  { %250 = vperm.xlu1 %663, %v210_v7   ;;  %246 = vperm.xlu0 %662, %v209_v8   ;;  %v110_v11 = vrot.slane %v93_v9, %v748_v6  ;;  %v114_v14 = vrot.slane %v94_v12, %v748_v6  ;;  %v264_v23 = vrot.slane %v698_v22, %v748_v6  ;;  %vm208_vm6 = vcmp.lt.s32.totalorder %v766_v32, 16 }
  0x14   :  { %vm192_vm1 = vcmp.ge.s32.totalorder %v190_v35, 0  ;;  %vm194_vm2 = vcmp.lt.s32.totalorder %v190_v35, 16  ;;  %vm586_vm7 = vcmask 15360  }
  0x15   :  { %vm196_vm3 = vmand %vm192_vm1, %vm194_vm2 }
  0x17   :  { %258 = vperm.xlu0 %662, %v212_v13   ;;  %115 = vrot.lane.b32.xlu1 %v110_v11, %s695_s7 }
  0x1b   :  { %665 = vset.pattern.permute.xlu0 %v696_v15  ;;  %117 = vrot.lane.b32.xlu1 %v114_v14, %s695_s7 }
  0x1c   :  { %315 = vperm.xlu0 %665, %v210_v7  }
  0x1f   :  { %254 = vperm.xlu1 %663, %v211_v16  }
  0x20   :  { %666 = vset.pattern.permute.xlu0 %v697_v18 }
  0x21   :  { %160 = vperm.xlu0 %666, %v84_v17  }
  0x23   :  { %664 = vset.pattern.permute.xlu1 %v696_v15 }
  0x24   :  { %311 = vperm.xlu1 %664, %v209_v8  }
  0x25   :  { %173 = vperm.xlu0 %666, %v606_v19  }
  0x28   :  { %319 = vperm.xlu1 %664, %v211_v16  }
  0x29   :  { %215 = vperm.xlu0 %666, %v209_v8  }
  0x2c   :  { %323 = vperm.xlu1 %664, %v212_v13  }
  0x2d   :  { %230 = vperm.xlu0 %666, %v212_v13  }
  0x30   :  { %667 = vset.pattern.permute.xlu1 %v697_v18 }
  0x31   :  { %220 = vperm.xlu1 %667, %v210_v7   ;;  %668 = vset.pattern.permute.xlu0 %v696_v15 }
  0x35   :  { %225 = vperm.xlu1 %667, %v211_v16  }
  0x81   :  { %v134_v20 = vpop.permute.xlu1 %133  ;;  %v132_v21 = vpop.permute.xlu0 %131 }
  0x8e   :  { %v251_v24 = vpop.permute.xlu1 %250  ;;  %v247_v25 = vpop.permute.xlu0 %246 }
  0x8f   :  { %v266_v26 = vmul.f32 %v264_v23, %v247_v25  ;;  %v268_v27 = vmul.f32 %v264_v23, %v251_v24 }
  0x91   :  { %283 = vrot.lane.b32.xlu0 %v266_v26, %s699_s0 }
  0x92   :  { %v259_v28 = vpop.permute.xlu0 %258  ;;  %v116_v29 = vpop.permute.xlu1 %115 }
  0x93   :  { %v272_v38 = vmul.f32 %v264_v23, %v259_v28  ;;  %v154_v39 = vsel %vm153_vm0, %v116_v29, %v132_v21 }
  0x95   :  { %287 = vrot.lane.b32.xlu0 %v268_v27, %s699_s0 }
  0x96   :  { %v118_v30 = vpop.permute.xlu1 %117 }
  0x97   :  { %v764_v31 = vpop.permute.xlu0 %315  ;;  %v155_v40 = vsel %vm153_vm0, %v118_v30, %v134_v20 }
  0x98   :  { %v329_v59 = vmul.f32 %v764_v31, %v264_v23 }
  0x9a   :  { %v255_v33 = vpop.permute.xlu1 %254 }
  0x9b   :  { %v270_v34 = vmul.f32 %v264_v23, %v255_v33 }
  0x9c   :  { %v161_v36 = vpop.permute.xlu0 %160 }
  0x9d   :  { %v166_v37 = vrot.slane %v161_v36, %v748_v6  ;;  %291 = vrot.lane.b32.xlu0 %v270_v34, %s699_s0 }
  0x9f   :  { %v167_v42 = vmul.f32 %v166_v37, %v154_v39  ;;  %v169_v43 = vmul.f32 %v166_v37, %v155_v40  ;;  %v312_v54 = vpop.permute.xlu1 %311 }
  0xa0   :  { %v174_v41 = vpop.permute.xlu0 %173  ;;  %v327_v55 = vmul.f32 %v312_v54, %v264_v23 }
  0xa1   :  { %v179_v44 = vrot.slane %v174_v41, %v748_v6  ;;  %295 = vrot.lane.b32.xlu0 %v272_v38, %s699_s0 }
  0xa3   :  { %v180_v45 = vadd.f32 %v179_v44, %v167_v42  ;;  %v182_v46 = vadd.f32 %v179_v44, %v169_v43  ;;  %v320_v57 = vpop.permute.xlu1 %319 }
  0xa4   :  { %v331_v60 = vmul.f32 %v320_v57, %v264_v23  ;;  %v216_v10 = vpop.permute.xlu0 %215 }
  0xa5   :  { %v202_v47 = vsel %vm196_vm3, %v180_v45, 0.0  ;;  %459 = vrot.lane.b32.xlu0 %v266_v26, %s699_s0  ;;  %v204_v48 = vsel %vm196_vm3, %v182_v46, 0.0 }
  0xa6   :  { %v777_v49 = vrot.slane %v202_v47, %v748_v6  ;;  %v780_v50 = vrot.slane %v204_v48, %v748_v6 }
  0xa7   :  { %v324_v62 = vpop.permute.xlu1 %323 }
  0xa8   :  { %v265_v51 = vmul.f32 %v247_v25, %v777_v49  ;;  %v487_v52 = vmul.f32 %v780_v50, %v764_v31  ;;  %v267_v53 = vmul.f32 %v251_v24, %v777_v49  ;;  %v269_v56 = vmul.f32 %v255_v33, %v777_v49  ;;  %v828_v11 = vpop.permute.xlu0 %230 }
  0xa9   :  { %463 = vrot.lane.b32.xlu0 %v268_v27, %s699_s0  ;;  %v271_v58 = vmul.f32 %v259_v28, %v777_v49  ;;  %v441_v61 = vmul.f32 %v780_v50, %v247_v25  ;;  %v333_v63 = vmul.f32 %v324_v62, %v264_v23  ;;  %v443_v0 = vmul.f32 %v780_v50, %v251_v24 }
  0xaa   :  { %281 = vrot.lane.b32.xlu1 %v265_v51, %s699_s0  ;;  %v445_v1 = vmul.f32 %v780_v50, %v255_v33  ;;  %v447_v2 = vmul.f32 %v780_v50, %v259_v28  ;;  %v326_v3 = vmul.f32 %v312_v54, %v777_v49  ;;  %v328_v4 = vmul.f32 %v764_v31, %v777_v49 }
  0xab   :  { %v330_v5 = vmul.f32 %v320_v57, %v777_v49  ;;  %v332_v6 = vmul.f32 %v324_v62, %v777_v49  ;;  %v485_v7 = vmul.f32 %v780_v50, %v312_v54  ;;  %v489_v8 = vmul.f32 %v780_v50, %v320_v57 }
  0xac   :  { %v491_v9 = vmul.f32 %v780_v50, %v324_v62  ;;  %v830_v16 = vpop.permute.xlu1 %220 }
  0xad   :  { %467 = vrot.lane.b32.xlu0 %v270_v34, %s699_s0  ;;  %v237_v34 = vmul.f32 %v777_v49, %v216_v10  ;;  %v238_v40 = vmul.f32 %v777_v49, %v830_v16 }
  0xae   :  { %285 = vrot.lane.b32.xlu1 %v267_v53, %s699_s0 }
  0xb0   :  { %v832_v18 = vpop.permute.xlu1 %225 }
  0xb1   :  { %471 = vrot.lane.b32.xlu0 %v272_v38, %s699_s0  ;;  %v239_v48 = vmul.f32 %v777_v49, %v832_v18 }
  0xb2   :  { %289 = vrot.lane.b32.xlu1 %v269_v56, %s699_s0 }
  0xb5   :  { %344 = vrot.lane.b32.xlu0 %v327_v55, %s700_s13 }
  0xb6   :  { %293 = vrot.lane.b32.xlu1 %v271_v58, %s699_s0  ;;  %v240_v58 = vmul.f32 %v777_v49, %v828_v11 }
  0xb9   :  { %348 = vrot.lane.b32.xlu0 %v329_v59, %s700_s13 }
  0xba   :  { %457 = vrot.lane.b32.xlu1 %v441_v61, %s699_s0 }
  0xbd   :  { %352 = vrot.lane.b32.xlu0 %v331_v60, %s700_s13 }
  0xbe   :  { %461 = vrot.lane.b32.xlu1 %v443_v0, %s699_s0 }
  0xc1   :  { %356 = vrot.lane.b32.xlu0 %v333_v63, %s700_s13 }
  0xc2   :  { %465 = vrot.lane.b32.xlu1 %v445_v1, %s699_s0 }
  0xc5   :  { %503 = vrot.lane.b32.xlu0 %v327_v55, %s700_s13 }
  0xc6   :  { %469 = vrot.lane.b32.xlu1 %v447_v2, %s699_s0  ;;  %v429_v2 = vmul.f32 %v780_v50, %v216_v10 }
  0xc9   :  { %507 = vrot.lane.b32.xlu0 %v329_v59, %s700_s13 }
  0xca   :  { %342 = vrot.lane.b32.xlu1 %v326_v3, %s700_s13 }
  0xcd   :  { %511 = vrot.lane.b32.xlu0 %v331_v60, %s700_s13 }
  0xce   :  { %346 = vrot.lane.b32.xlu1 %v328_v4, %s700_s13 }
  0xd1   :  { %515 = vrot.lane.b32.xlu0 %v333_v63, %s700_s13 }
  0xd2   :  { %350 = vrot.lane.b32.xlu1 %v330_v5, %s700_s13 }
  0xd6   :  { %354 = vrot.lane.b32.xlu1 %v332_v6, %s700_s13 }
  0xda   :  { %501 = vrot.lane.b32.xlu1 %v485_v7, %s700_s13 }
  0xde   :  { %505 = vrot.lane.b32.xlu1 %v487_v52, %s700_s13 }
  0xe2   :  { %509 = vrot.lane.b32.xlu1 %v489_v8, %s700_s13 }
  0xe6   :  { %513 = vrot.lane.b32.xlu1 %v491_v9, %s700_s13 }
 0x103   :  { %v284_v12 = vpop.permute.xlu0 %283 }
 0x107   :  { %v288_v13 = vpop.permute.xlu0 %287 }
 0x10f   :  { %v292_v14 = vpop.permute.xlu0 %291 }
 0x113   :  { %v296_v15 = vpop.permute.xlu0 %295 }
 0x117   :  { %v460_v17 = vpop.permute.xlu0 %459 }
 0x11b   :  { %v464_v19 = vpop.permute.xlu0 %463 }
 0x11c   :  { %v282_v20 = vpop.permute.xlu1 %281 }
 0x11d   :  { %v298_v33 = vsel %vm297_vm4, %v282_v20, %v284_v12  ;;  %v430_v12 = vmul.f32 %v780_v50, %v830_v16  ;;  %v431_v20 = vmul.f32 %v780_v50, %v832_v18 }
 0x11e   :  { %v306_v36 = vadd.f32 %v298_v33, %v237_v34 }
 0x11f   :  { %v834_v22 = vpop.permute.xlu0 %467 }
 0x120   :  { %v286_v21 = vpop.permute.xlu1 %285 }
 0x121   :  { %v299_v38 = vsel %vm297_vm4, %v286_v21, %v288_v13 }
 0x122   :  { %v307_v42 = vadd.f32 %v299_v38, %v238_v40 }
 0x123   :  { %v836_v24 = vpop.permute.xlu0 %471 }
 0x124   :  { %v290_v23 = vpop.permute.xlu1 %289 }
 0x125   :  { %v300_v46 = vsel %vm297_vm4, %v290_v23, %v292_v14 }
 0x126   :  { %v308_v52 = vadd.f32 %v300_v46, %v239_v48 }
 0x127   :  { %v345_v27 = vpop.permute.xlu0 %344 }
 0x128   :  { %v294_v25 = vpop.permute.xlu1 %293 }
 0x129   :  { %v301_v56 = vsel %vm297_vm4, %v294_v25, %v296_v15 }
 0x12a   :  { %v309_v61 = vadd.f32 %v301_v56, %v240_v58 }
 0x12b   :  { %v349_v29 = vpop.permute.xlu0 %348 }
 0x12c   :  { %v458_v26 = vpop.permute.xlu1 %457 }
 0x12d   :  { %v473_v0 = vsel %vm297_vm4, %v458_v26, %v460_v17 }
 0x12e   :  { %v481_v49 = vadd.f32 %v473_v0, %v429_v2 }
 0x12f   :  { %v353_v35 = vpop.permute.xlu0 %352 }
 0x130   :  { %v462_v28 = vpop.permute.xlu1 %461 }
 0x131   :  { %v474_v8 = vsel %vm297_vm4, %v462_v28, %v464_v19 }
 0x132   :  { %v482_v13 = vadd.f32 %v474_v8, %v430_v12 }
 0x133   :  { %v357_v43 = vpop.permute.xlu0 %356 }
 0x134   :  { %v466_v30 = vpop.permute.xlu1 %465 }
 0x135   :  { %v475_v17 = vsel %vm297_vm4, %v466_v30, %v834_v22 }
 0x136   :  { %v483_v23 = vadd.f32 %v475_v17, %v431_v20 }
 0x137   :  { %v504_v59 = vpop.permute.xlu0 %503 }
 0x138   :  { %v838_v31 = vpop.permute.xlu1 %469 }
 0x139   :  { %v476_v28 = vsel %vm297_vm4, %v838_v31, %v836_v24 }
 0x13b   :  { %v508_v4 = vpop.permute.xlu0 %507 }
 0x13c   :  { %v343_v37 = vpop.permute.xlu1 %342 }
 0x13d   :  { %v359_v39 = vsel %vm358_vm5, %v343_v37, %v345_v27 }
 0x13e   :  { %v367_v41 = vadd.f32 %v359_v39, %v306_v36 }
 0x13f   :  { %v512_v16 = vpop.permute.xlu0 %511 }
 0x140   :  { %v347_v44 = vpop.permute.xlu1 %346  ;;  %v393_v45 = vsel %vm208_vm6, %v367_v41, 0.0 }
 0x141   :  { %v360_v47 = vsel %vm358_vm5, %v347_v44, %v349_v29  ;;  %397 = vadd.xlane.f32.xlu1 %v393_v45  ;;  %v432_v29 = vmul.f32 %v780_v50, %v828_v11  ;;  %v409_v31 = vmul.f32 %v393_v45, %v393_v45 }
 0x142   :  { %v368_v51 = vadd.f32 %v360_v47, %v307_v42 }
 0x143   :  { %v484_v30 = vadd.f32 %v476_v28, %v432_v29  ;;  %v516_v33 = vpop.permute.xlu0 %515 }
 0x144   :  { %v351_v53 = vpop.permute.xlu1 %350  ;;  %v394_v54 = vsel %vm208_vm6, %v368_v51, 0.0  ;;  %v632_v55 = vpack.c.bf16 %v368_v51, %v367_v41 }
 0x145   :  { %v361_v57 = vsel %vm358_vm5, %v351_v53, %v353_v35  ;;  %399 = vadd.xlane.f32.xlu0 %v394_v54  ;;  %v410_v38 = vmul.f32 %v394_v54, %v394_v54 }
 0x146   :  { %633 = vst [vmem:[%s927_s5] sm:$0xff] %v632_v55   ;;  %v369_v60 = vadd.f32 %v361_v57, %v308_v52 }
 0x148   :  { %v355_v62 = vpop.permute.xlu1 %354  ;;  %v395_v63 = vsel %vm208_vm6, %v369_v60, 0.0 }
 0x149   :  { %v362_v1 = vsel %vm358_vm5, %v355_v62, %v357_v43  ;;  %401 = vadd.xlane.f32.xlu0 %v395_v63  ;;  %v411_v11 = vmul.f32 %v395_v63, %v395_v63 }
 0x14a   :  { %v370_v3 = vadd.f32 %v362_v1, %v309_v61 }
 0x14c   :  { %v502_v5 = vpop.permute.xlu1 %501  ;;  %v396_v6 = vsel %vm208_vm6, %v370_v3, 0.0  ;;  %v637_v7 = vpack.c.bf16 %v370_v3, %v369_v60 }
 0x14d   :  { %v517_v9 = vsel %vm358_vm5, %v502_v5, %v504_v59  ;;  %403 = vadd.xlane.f32.xlu1 %v396_v6  ;;  %v412_v40 = vmul.f32 %v396_v6, %v396_v6 }
 0x14e   :  { %649 = vst [vmem:[%s927_s5 + $0x8] sm:$0xff] %v637_v7   ;;  %v525_v10 = vadd.f32 %v517_v9, %v481_v49 }
 0x150   :  { %v506_v14 = vpop.permute.xlu1 %505  ;;  %v550_v15 = vsel %vm208_vm6, %v525_v10, 0.0 }
 0x151   :  { %v518_v19 = vsel %vm358_vm5, %v506_v14, %v508_v4  ;;  %554 = vadd.xlane.f32.xlu0 %v550_v15  ;;  %v566_v39 = vmul.f32 %v550_v15, %v550_v15 }
 0x152   :  { %v526_v21 = vadd.f32 %v518_v19, %v482_v13 }
 0x154   :  { %v510_v25 = vpop.permute.xlu1 %509  ;;  %v551_v26 = vsel %vm208_vm6, %v526_v21, 0.0  ;;  %v642_v27 = vpack.c.bf16 %v526_v21, %v525_v10 }
 0x155   :  { %v519_v22 = vsel %vm358_vm5, %v510_v25, %v512_v16  ;;  %556 = vadd.xlane.f32.xlu1 %v551_v26  ;;  %v567_v42 = vmul.f32 %v551_v26, %v551_v26 }
 0x156   :  { %650 = vst [vmem:[%s927_s5 + $0x10] sm:$0xff] %v642_v27   ;;  %v527_v18 = vadd.f32 %v519_v22, %v483_v23 }
 0x158   :  { %v514_v34 = vpop.permute.xlu1 %513  ;;  %v552_v35 = vsel %vm208_vm6, %v527_v18, 0.0 }
 0x159   :  { %v520_v36 = vsel %vm358_vm5, %v514_v34, %v516_v33  ;;  %558 = vadd.xlane.f32.xlu0 %v552_v35  ;;  %v568_v41 = vmul.f32 %v552_v35, %v552_v35 }
 0x15a   :  { %v528_v24 = vadd.f32 %v520_v36, %v484_v30 }
 0x15c   :  { %v553_v37 = vsel %vm208_vm6, %v528_v24, 0.0  ;;  %v647_v50 = vpack.c.bf16 %v528_v24, %v527_v18 }
 0x15d   :  { %413 = vadd.xlane.f32.xlu0 %v409_v31  ;;  %560 = vadd.xlane.f32.xlu1 %v553_v37  ;;  %v569_v32 = vmul.f32 %v553_v37, %v553_v37 }
 0x15e   :  { %651 = vst [vmem:[%s927_s5 + $0x18] sm:$0xff] %v647_v50  }
 0x161   :  { %417 = vadd.xlane.f32.xlu0 %v411_v11  ;;  %415 = vadd.xlane.f32.xlu1 %v410_v38 }
 0x165   :  { %570 = vadd.xlane.f32.xlu0 %v566_v39  ;;  %419 = vadd.xlane.f32.xlu1 %v412_v40 }
 0x169   :  { %574 = vadd.xlane.f32.xlu0 %v568_v41  ;;  %572 = vadd.xlane.f32.xlu1 %v567_v42 }
 0x16d   :  { %576 = vadd.xlane.f32.xlu1 %v569_v32 }
 0x1ca   :  { %v398_v44 = vpop.xlane.xlu1 %397 }
 0x1ce   :  { %v400_v43 = vpop.xlane.xlu0 %399 }
 0x1d2   :  { %v402_v45 = vpop.xlane.xlu0 %401 }
 0x1d6   :  { %v404_v46 = vpop.xlane.xlu1 %403 }
 0x1da   :  { %v555_v47 = vpop.xlane.xlu0 %554 }
 0x1db   :  { %v562_v58 = vadd.f32 %v555_v47, %v398_v44 }
 0x1de   :  { %v557_v48 = vpop.xlane.xlu1 %556 }
 0x1df   :  { %v563_v63 = vadd.f32 %v557_v48, %v400_v43 }
 0x1e2   :  { %v559_v51 = vpop.xlane.xlu0 %558 }
 0x1e3   :  { %v564_v0 = vadd.f32 %v559_v51, %v402_v45 }
 0x1e6   :  { %v561_v52 = vpop.xlane.xlu1 %560  ;;  %v414_v53 = vpop.xlane.xlu0 %413 }
 0x1e7   :  { %v565_v5 = vadd.f32 %v561_v52, %v404_v46 }
 0x1ea   :  { %v416_v54 = vpop.xlane.xlu1 %415  ;;  %v418_v55 = vpop.xlane.xlu0 %417 }
 0x1ee   :  { %v420_v56 = vpop.xlane.xlu1 %419  ;;  %v571_v57 = vpop.xlane.xlu0 %570 }
 0x1ef   :  { %v578_v59 = vadd.f32 %v571_v57, %v414_v53 }
 0x1f1   :  { %v582_v60 = vsel %vm153_vm0, %v562_v58, %v578_v59 }
 0x1f2   :  { %587 = vst.msk [vmem:[%s928_s6] sm:$0xff] %vm586_vm7, %v582_v60  ;;  %v573_v61 = vpop.xlane.xlu1 %572  ;;  %v575_v62 = vpop.xlane.xlu0 %574 }
 0x1f3   :  { %v579_v1 = vadd.f32 %v573_v61, %v416_v54  ;;  %v580_v2 = vadd.f32 %v575_v62, %v418_v55 }
 0x1f5   :  { %v583_v3 = vsel %vm153_vm0, %v563_v63, %v579_v1  ;;  %v584_v49 = vsel %vm153_vm0, %v564_v0, %v580_v2 }
 0x1f6   :  { %588 = vst.msk [vmem:[%s928_s6 + $0x8] sm:$0xff] %vm586_vm7, %v583_v3  ;;  %589 = vst.msk [vmem:[%s928_s6 + $0x10] sm:$0xff] %vm586_vm7, %v584_v49  ;;  %v577_v4 = vpop.xlane.xlu1 %576 }
 0x1f7   :  { %v581_v6 = vadd.f32 %v577_v4, %v420_v56 }
 0x1f9   :  { %v585_v7 = vsel %vm153_vm0, %v565_v5, %v581_v6 }
 0x1fa   :  { %590 = vst.msk [vmem:[%s928_s6 + $0x18] sm:$0xff] %vm586_vm7, %v585_v7 }
 0x1fb   :  { %599 = vsyncpa [#allocation3], 1 }

// kernel: _lambda_.7
= control target key start
LH: loop header
LB: loop body
LE: loop exit
PB: predicated region body
PF: predicated region fallthrough
CT: control target
= control target key end

     0   :  { %v948_v0 = vmov 0   ;;  %s949_s12 = smov 1   ;;  %v950_v45 = vmov 0.0|0.0   ;;  %v391_v52 = vlaneseq  ;;  %vm254_vm0 = vcmask 7168   ;;  %s1201_s0 = inlined_call_operand.vmem [shape: f32[2,32,1], index: 0, kind: input, shape index: {}]   ;;  %s1202_s1 = inlined_call_operand.vmem [shape: bf16[2,32,128], index: 1, kind: input, shape index: {}, may-alias: {1,2,3}]   ;;  %s1203_s3 = inlined_call_operand.vmem [shape: bf16[2,32,128], index: 3, kind: input, shape index: {}, may-alias: {1,2,3}]   ;;  %s1204_s2 = inlined_call_operand.vmem [shape: bf16[2,32,128], index: 2, kind: input, shape index: {}, may-alias: {1,2,3}]   ;;  %s1205_s4 = inlined_call_operand.vmem [shape: bf16[32,96], index: 4, kind: input, shape index: {}]   ;;  %s1206_s5 = inlined_call_operand.vmem [shape: bf16[2,32,128], index: 5, kind: output, shape index: {0}]   ;;  %s1207_s6 = inlined_call_operand.vmem [shape: f32[1,32,2], index: 6, kind: output, shape index: {1}]  }
   0x1   :  { %925 = vset.pattern.permute.xlu1 %v948_v0  ;;  %924 = vset.pattern.permute.xlu0 %v948_v0  ;;  %v751_v1 = vld [vmem:[%s1201_s0 + $0x30] sm:$0xff]  ;;  %v859_v3 = vld [vmem:[%s1202_s1 + $0x8] sm:$0xff]   ;;  %v752_v4 = vld [vmem:[%s1201_s0 + $0x38] sm:$0xff]  ;;  %vm508_vm12 = vcmask 785408   ;;  %vm489_vm13 = vcmask 1031168   ;;  %vm464_vm14 = vcmask 1039360  }
   0x2   :  { %v79_v2 = vld [vmem:[%s1201_s0 + $0x10] sm:$0xff]  ;;  %319 = vperm.xlu1 %925, %v751_v1   ;;  %v80_v5 = vld [vmem:[%s1201_s0 + $0x18] sm:$0xff]  ;;  %v798_v6 = vunpack.c.h.bf16 %v859_v3  ;;  %v797_v7 = vunpack.c.l.bf16 %v859_v3  ;;  %v862_v14 = vld [vmem:[%s1204_s2 + $0x8] sm:$0xff]   ;;  %v1056_v55 = vand.u32 127, %v391_v52 }
   0x3   :  { %283 = vperm.xlu0 %924, %v79_v2   ;;  %v861_v8 = vld [vmem:[%s1202_s1 + $0x18] sm:$0xff]   ;;  %v813_v19 = vunpack.c.l.bf16 %v862_v14  ;;  %v814_v20 = vunpack.c.h.bf16 %v862_v14  ;;  %v78_v23 = vld [vmem:[%s1201_s0 + $0x8] sm:$0xff]  ;;  %v77_v24 = vld [vmem:[%s1201_s0] sm:$0xff] }
   0x4   :  { %v109_v9 = vmul.f32 0.0, %v798_v6  ;;  %v108_v10 = vmul.f32 0.0, %v797_v7  ;;  %v806_v11 = vunpack.c.h.bf16 %v861_v8  ;;  %v805_v12 = vunpack.c.l.bf16 %v861_v8  ;;  %v864_v13 = vld [vmem:[%s1204_s2 + $0x18] sm:$0xff]   ;;  %v792_v25 = vld [vmem:[%s1202_s1] sm:$0xff]   ;;  %v750_v28 = vld [vmem:[%s1201_s0 + $0x28] sm:$0xff] }
   0x5   :  { %v821_v15 = vunpack.c.l.bf16 %v864_v13  ;;  %v822_v16 = vunpack.c.h.bf16 %v864_v13  ;;  %v926_v22 = vpack.i.bf16 %v814_v20, %v813_v19  ;;  %v794_v26 = vunpack.c.h.bf16 %v792_v25  ;;  %v749_v29 = vld [vmem:[%s1201_s0 + $0x20] sm:$0xff]  ;;  %v860_v30 = vld [vmem:[%s1202_s1 + $0x10] sm:$0xff]   ;;  %s951_s0 = smov 126   ;;  %s952_s1 = smov 127  }
   0x6   :  { %324 = vperm.xlu1 %925, %v752_v4   ;;  %v113_v17 = vmul.f32 0.0, %v806_v11  ;;  %v112_v18 = vmul.f32 0.0, %v805_v12  ;;  %v793_v27 = vunpack.c.l.bf16 %v792_v25  ;;  %v802_v33 = vunpack.c.h.bf16 %v860_v30  ;;  %v863_v35 = vld [vmem:[%s1204_s2 + $0x10] sm:$0xff]   ;;  %v808_v36 = vld [vmem:[%s1204_s2] sm:$0xff]  }
   0x7   :  { %288 = vperm.xlu0 %924, %v80_v5   ;;  %v931_v21 = vpack.i.bf16 %v822_v16, %v821_v15  ;;  %v107_v31 = vmul.f32 0.0, %v794_v26  ;;  %v801_v34 = vunpack.c.l.bf16 %v860_v30  ;;  %v817_v37 = vunpack.c.l.bf16 %v863_v35 }
   0x8   :  { %v106_v32 = vmul.f32 0.0, %v793_v27  ;;  %v818_v38 = vunpack.c.h.bf16 %v863_v35  ;;  %v111_v39 = vmul.f32 0.0, %v802_v33  ;;  %v809_v41 = vunpack.c.l.bf16 %v808_v36 }
   0x9   :  { %v110_v40 = vmul.f32 0.0, %v801_v34  ;;  %v810_v42 = vunpack.c.h.bf16 %v808_v36  ;;  %v397_v58 = vadd.s32 4294967295, %v1056_v55 }
   0xa   :  { %172 = vrot.lane.b32.xlu1 %v109_v9, %s949_s12  ;;  %v941_v43 = vpack.i.bf16 %v818_v38, %v817_v37 }
   0xb   :  { %170 = vrot.lane.b32.xlu0 %v108_v10, %s949_s12  ;;  %v936_v44 = vpack.i.bf16 %v810_v42, %v809_v41  ;;  %vm399_vm1 = vcmp.ge.s32.totalorder %v397_v58, 0  ;;  %vm401_vm2 = vcmp.lt.s32.totalorder %v397_v58, 16 }
   0xc   :  { %vm1063_vm5 = vmand %vm399_vm1, %vm401_vm2  ;;  %vm427_vm1 = vcmp.lt.s32.totalorder %v1056_v55, 16  ;;  %vm724_vm2 = vcmask 15360  }
   0xd   :  { %vm1118_vm15 = vmpackc.low %vm1063_vm5, %vm1063_vm5 }
   0xe   :  { %180 = vrot.lane.b32.xlu1 %v113_v17, %s949_s12  ;;  %v947_v17 = vld [vmem:[%s1205_s4 + $0x8] sm:$0xff]  }
   0xf   :  { %178 = vrot.lane.b32.xlu0 %v112_v18, %s949_s12 }
  0x12   :  { %932 = vrot.lane.b32.xlu1 %v931_v21, %s949_s12 }
  0x13   :  { %927 = vrot.lane.b32.xlu0 %v926_v22, %s949_s12 }
  0x16   :  { %278 = vperm.xlu1 %925, %v78_v23  }
  0x17   :  { %273 = vperm.xlu0 %924, %v77_v24  }
  0x1a   :  { %314 = vperm.xlu1 %925, %v750_v28  }
  0x1b   :  { %309 = vperm.xlu0 %924, %v749_v29  }
  0x1e   :  { %168 = vrot.lane.b32.xlu1 %v107_v31, %s949_s12 }
  0x1f   :  { %166 = vrot.lane.b32.xlu0 %v106_v32, %s949_s12 }
  0x22   :  { %176 = vrot.lane.b32.xlu1 %v111_v39, %s949_s12 }
  0x23   :  { %174 = vrot.lane.b32.xlu0 %v110_v40, %s949_s12 }
  0x26   :  { %942 = vrot.lane.b32.xlu1 %v941_v43, %s949_s12 }
  0x27   :  { %937 = vrot.lane.b32.xlu0 %v936_v44, %s949_s12 }
  0x2a   :  { %479 = vrot.lane.b32.xlu1 %v950_v45, %s951_s0 }
  0x2e   :  { %487 = vrot.lane.b32.xlu1 %v950_v45, %s951_s0 }
  0x32   :  { %475 = vrot.lane.b32.xlu1 %v950_v45, %s951_s0 }
  0x36   :  { %483 = vrot.lane.b32.xlu1 %v950_v45, %s951_s0 }
  0x3a   :  { %454 = vrot.lane.b32.xlu1 %v950_v45, %s952_s1 }
  0x3e   :  { %462 = vrot.lane.b32.xlu1 %v950_v45, %s952_s1 }
  0x42   :  { %450 = vrot.lane.b32.xlu1 %v950_v45, %s952_s1 }
  0x46   :  { %458 = vrot.lane.b32.xlu1 %v950_v45, %s952_s1 }
  0x7d   :  { %v320_v46 = vpop.permute.xlu1 %319 }
  0x7e   :  { %v284_v47 = vpop.permute.xlu0 %283 }
  0x81   :  { %v325_v48 = vpop.permute.xlu1 %324 }
  0x82   :  { %v289_v49 = vpop.permute.xlu0 %288 }
  0x85   :  { %v173_v50 = vpop.permute.xlu1 %172 }
  0x86   :  { %v171_v51 = vpop.permute.xlu0 %170 }
  0x89   :  { %v181_v53 = vpop.permute.xlu1 %180 }
  0x8a   :  { %v179_v54 = vpop.permute.xlu0 %178 }
  0x8d   :  { %v933_v56 = vpop.permute.xlu1 %932 }
  0x8e   :  { %v928_v57 = vpop.permute.xlu0 %927  ;;  %v935_v59 = vunpack.i.h.bf16 %v933_v56  ;;  %v934_v60 = vunpack.i.l.bf16 %v933_v56 }
  0x8f   :  { %v930_v61 = vunpack.i.h.bf16 %v928_v57  ;;  %v929_v62 = vunpack.i.l.bf16 %v928_v57 }
  0x90   :  { %v262_v63 = vsel %vm254_vm0, %v181_v53, %v935_v59  ;;  %v261_v0 = vsel %vm254_vm0, %v179_v54, %v934_v60 }
  0x91   :  { %v258_v1 = vsel %vm254_vm0, %v173_v50, %v930_v61  ;;  %v257_v2 = vsel %vm254_vm0, %v171_v51, %v929_v62  ;;  %v303_v3 = vmul.f32 %v284_v47, %v261_v0  ;;  %v305_v4 = vmul.f32 %v289_v49, %v262_v63  ;;  %v279_v7 = vpop.permute.xlu1 %278 }
  0x92   :  { %v297_v5 = vmul.f32 %v289_v49, %v258_v1  ;;  %v295_v6 = vmul.f32 %v284_v47, %v257_v2  ;;  %v274_v8 = vpop.permute.xlu0 %273 }
  0x93   :  { %v339_v9 = vadd.f32 %v320_v46, %v303_v3  ;;  %v341_v10 = vadd.f32 %v325_v48, %v305_v4 }
  0x94   :  { %v333_v11 = vadd.f32 %v325_v48, %v297_v5  ;;  %v331_v12 = vadd.f32 %v320_v46, %v295_v6 }
  0x95   :  { %v315_v13 = vpop.permute.xlu1 %314  ;;  %vm355_vm6 = vcmp.ge.f32.partialorder %v339_v9, 0.0  ;;  %vm357_vm7 = vcmp.ge.f32.partialorder %v341_v10, 0.0  ;;  %v371_v18 = vmul.f32 0.3, %v339_v9  ;;  %v373_v19 = vmul.f32 0.3, %v341_v10 }
  0x96   :  { %v310_v14 = vpop.permute.xlu0 %309  ;;  %vm347_vm3 = vcmp.ge.f32.partialorder %v331_v12, 0.0  ;;  %vm349_vm4 = vcmp.ge.f32.partialorder %v333_v11, 0.0  ;;  %v363_v15 = vmul.f32 0.3, %v331_v12  ;;  %v365_v16 = vmul.f32 0.3, %v333_v11 }
  0x97   :  { %v387_v25 = vsel %vm355_vm6, %v339_v9, %v371_v18  ;;  %v389_v29 = vsel %vm357_vm7, %v341_v10, %v373_v19 }
  0x98   :  { %v379_v20 = vsel %vm347_vm3, %v331_v12, %v363_v15  ;;  %v381_v21 = vsel %vm349_vm4, %v333_v11, %v365_v16  ;;  %v421_v30 = vsel %vm1063_vm5, %v387_v25, 0.0  ;;  %v423_v31 = vsel %vm1063_vm5, %v389_v29, 0.0 }
  0x99   :  { %v413_v22 = vsel %vm1063_vm5, %v379_v20, 0.0  ;;  %v415_v23 = vsel %vm1063_vm5, %v381_v21, 0.0  ;;  %v1071_v24 = vpack.c.bf16 %v381_v21, %v379_v20  ;;  %v169_v26 = vpop.permute.xlu1 %168  ;;  %v1077_v32 = vpack.c.bf16 %v389_v29, %v387_v25 }
  0x9a   :  { %v167_v27 = vpop.permute.xlu0 %166  ;;  %v434_v28 = vpack.c.bf16 %v415_v23, %v413_v22  ;;  %v438_v35 = vpack.c.bf16 %v423_v31, %v421_v30 }
  0x9c   :  { %477 = vrot.lane.b32.xlu0 %v434_v28, %s951_s0 }
  0x9d   :  { %v177_v33 = vpop.permute.xlu1 %176 }
  0x9e   :  { %v175_v34 = vpop.permute.xlu0 %174 }
  0xa0   :  { %485 = vrot.lane.b32.xlu0 %v438_v35, %s951_s0 }
  0xa1   :  { %v943_v36 = vpop.permute.xlu1 %942 }
  0xa2   :  { %v938_v37 = vpop.permute.xlu0 %937  ;;  %v945_v38 = vunpack.i.h.bf16 %v943_v36  ;;  %v944_v39 = vunpack.i.l.bf16 %v943_v36 }
  0xa3   :  { %v940_v40 = vunpack.i.h.bf16 %v938_v37  ;;  %v939_v41 = vunpack.i.l.bf16 %v938_v37 }
  0xa4   :  { %v260_v42 = vsel %vm254_vm0, %v177_v33, %v945_v38  ;;  %v259_v43 = vsel %vm254_vm0, %v175_v34, %v944_v39 }
  0xa5   :  { %v256_v44 = vsel %vm254_vm0, %v169_v26, %v940_v40  ;;  %v255_v45 = vsel %vm254_vm0, %v167_v27, %v939_v41  ;;  %v301_v46 = vmul.f32 %v279_v7, %v260_v42  ;;  %v299_v47 = vmul.f32 %v274_v8, %v259_v43 }
  0xa6   :  { %v293_v48 = vmul.f32 %v279_v7, %v256_v44  ;;  %v291_v49 = vmul.f32 %v274_v8, %v255_v45  ;;  %v946_v7 = vld [vmem:[%s1205_s4] sm:$0xff]   ;;  %v480_v8 = vpop.permute.xlu1 %479 }
  0xa7   :  { %v337_v50 = vadd.f32 %v315_v13, %v301_v46  ;;  %v335_v51 = vadd.f32 %v310_v14, %v299_v47  ;;  %899 = vmatprep.mubr.msk.bf16.mxu0 %vm508_vm12, %v946_v7  ;;  %915 = vmatprep.mubr.msk.bf16.mxu1 %vm508_vm12, %v946_v7 }
  0xa8   :  { %v329_v52 = vadd.f32 %v315_v13, %v293_v48  ;;  %v327_v53 = vadd.f32 %v310_v14, %v291_v49 }
  0xa9   :  { %vm351_vm10 = vcmp.ge.f32.partialorder %v335_v51, 0.0  ;;  %vm353_vm11 = vcmp.ge.f32.partialorder %v337_v50, 0.0  ;;  %v367_v57 = vmul.f32 0.3, %v335_v51  ;;  %v369_v58 = vmul.f32 0.3, %v337_v50 }
  0xaa   :  { %vm343_vm8 = vcmp.ge.f32.partialorder %v327_v53, 0.0  ;;  %vm345_vm9 = vcmp.ge.f32.partialorder %v329_v52, 0.0  ;;  %v359_v54 = vmul.f32 0.3, %v327_v53  ;;  %v361_v56 = vmul.f32 0.3, %v329_v52  ;;  %v488_v11 = vpop.permute.xlu1 %487 }
  0xab   :  { %v383_v0 = vsel %vm351_vm10, %v335_v51, %v367_v57  ;;  %v385_v2 = vsel %vm353_vm11, %v337_v50, %v369_v58 }
  0xac   :  { %v375_v59 = vsel %vm343_vm8, %v327_v53, %v359_v54  ;;  %v377_v60 = vsel %vm345_vm9, %v329_v52, %v361_v56  ;;  %v417_v3 = vsel %vm1063_vm5, %v383_v0, 0.0  ;;  %v419_v4 = vsel %vm1063_vm5, %v385_v2, 0.0 }
  0xad   :  { %v409_v61 = vsel %vm1063_vm5, %v375_v59, 0.0  ;;  %v411_v62 = vsel %vm1063_vm5, %v377_v60, 0.0  ;;  %v1089_v63 = vpack.c.bf16 %v377_v60, %v375_v59  ;;  %v1095_v5 = vpack.c.bf16 %v385_v2, %v383_v0 }
  0xae   :  { %v432_v1 = vpack.c.bf16 %v411_v62, %v409_v61  ;;  %v436_v6 = vpack.c.bf16 %v419_v4, %v417_v3  ;;  %v476_v14 = vpop.permute.xlu1 %475 }
  0xb0   :  { %473 = vrot.lane.b32.xlu0 %v432_v1, %s951_s0 }
  0xb2   :  { %v484_v15 = vpop.permute.xlu1 %483 }
  0xb4   :  { %481 = vrot.lane.b32.xlu0 %v436_v6, %s951_s0 }
  0xb6   :  { %v455_v18 = vpop.permute.xlu1 %454 }
  0xb8   :  { %452 = vrot.lane.b32.xlu0 %v434_v28, %s952_s1 }
  0xba   :  { %v463_v22 = vpop.permute.xlu1 %462 }
  0xbc   :  { %460 = vrot.lane.b32.xlu0 %v438_v35, %s952_s1 }
  0xbe   :  { %v451_v27 = vpop.permute.xlu1 %450 }
  0xc0   :  { %448 = vrot.lane.b32.xlu0 %v432_v1, %s952_s1 }
  0xc2   :  { %v459_v33 = vpop.permute.xlu1 %458 }
  0xc4   :  { %456 = vrot.lane.b32.xlu0 %v436_v6, %s952_s1 }
 0x10e   :  { %v478_v9 = vpop.permute.xlu0 %477 }
 0x10f   :  { %v491_v10 = vsel %vm489_vm13, %v478_v9, %v480_v8 }
 0x110   :  { %887 = vmatprep.subr.bf16.mxu0 %v491_v10 }
 0x111   :  { %888 = vmatpush3.bf16.msra.mxu0 %v491_v10 }
 0x112   :  { %v486_v12 = vpop.permute.xlu0 %485 }
 0x113   :  { %v493_v13 = vsel %vm489_vm13, %v486_v12, %v488_v11 }
 0x114   :  { %903 = vmatprep.subr.bf16.mxu1 %v493_v13 }
 0x115   :  { %904 = vmatpush3.bf16.msra.mxu1 %v493_v13 }
 0x122   :  { %v474_v16 = vpop.permute.xlu0 %473 }
 0x123   :  { %v490_v19 = vsel %vm489_vm13, %v474_v16, %v476_v14 }
 0x124   :  { %889 = vmatprep.subr.bf16.mxu0 %v490_v19 }
 0x125   :  { %890 = vmatpush3.bf16.msra.mxu0 %v490_v19 }
 0x126   :  { %v482_v20 = vpop.permute.xlu0 %481 }
 0x127   :  { %v492_v21 = vsel %vm489_vm13, %v482_v20, %v484_v15 }
 0x128   :  { %905 = vmatprep.subr.bf16.mxu1 %v492_v21 }
 0x129   :  { %906 = vmatpush3.bf16.msra.mxu1 %v492_v21 }
 0x12a   :  { %v453_v23 = vpop.permute.xlu0 %452 }
 0x12b   :  { %v466_v25 = vsel %vm464_vm14, %v453_v23, %v455_v18 }
 0x12c   :  { %891 = vmatprep.subr.bf16.mxu0 %v466_v25 }
 0x12d   :  { %892 = vmatpush3.bf16.msra.mxu0 %v466_v25 }
 0x12e   :  { %v461_v26 = vpop.permute.xlu0 %460 }
 0x12f   :  { %v468_v28 = vsel %vm464_vm14, %v461_v26, %v463_v22 }
 0x130   :  { %907 = vmatprep.subr.bf16.mxu1 %v468_v28 }
 0x131   :  { %908 = vmatpush3.bf16.msra.mxu1 %v468_v28 }
 0x132   :  { %v449_v29 = vpop.permute.xlu0 %448 }
 0x133   :  { %v465_v30 = vsel %vm464_vm14, %v449_v29, %v451_v27 }
 0x134   :  { %893 = vmatprep.subr.bf16.mxu0 %v465_v30 }
 0x135   :  { %894 = vmatpush3.bf16.msra.mxu0 %v465_v30 }
 0x136   :  { %895 = vmatprep.subr.msk.bf16.mxu0 %vm1118_vm15, %v1071_v24  ;;  %v457_v34 = vpop.permute.xlu0 %456 }
 0x137   :  { %v467_v35 = vsel %vm464_vm14, %v457_v34, %v459_v33 }
 0x138   :  { %909 = vmatprep.subr.bf16.mxu1 %v467_v35 }
 0x139   :  { %896 = vmatpush3.bf16.msk.msra.mxu0 %vm1118_vm15, %v1071_v24  ;;  %910 = vmatpush3.bf16.msra.mxu1 %v467_v35 }
 0x13a   :  { %897 = vmatprep.subr.msk.bf16.mxu0 %vm1118_vm15, %v1089_v63  ;;  %911 = vmatprep.subr.msk.bf16.mxu1 %vm1118_vm15, %v1077_v32 }
 0x13d   :  { %898 = vmatpush3.bf16.msk.msra.mxu0 %vm1118_vm15, %v1089_v63  ;;  %912 = vmatpush3.bf16.msk.msra.mxu1 %vm1118_vm15, %v1077_v32 }
 0x13e   :  { %913 = vmatprep.subr.msk.bf16.mxu1 %vm1118_vm15, %v1095_v5 }
 0x140   :  { %900 = vmatmul.mubr.msk.bf16.vlgmr.msra.gmra.mxu0 %vm508_vm12, %v947_v17 }
 0x141   :  { %914 = vmatpush3.bf16.msk.msra.mxu1 %vm1118_vm15, %v1095_v5 }
 0x144   :  { %916 = vmatmul.mubr.msk.bf16.vlgmr.msra.gmra.mxu1 %vm508_vm12, %v947_v17 }
 0x200   :  { %v901_v24 = vpop.f32.mrf.mxu0 }
 0x201   :  { %v588_v36 = vsel %vm427_vm1, %v901_v24, 0.0 }
 0x202   :  { %594 = vadd.xlane.f32.xlu0 %v588_v36  ;;  %v549_v32 = vpop.f32.mrf.mxu0  ;;  %v604_v46 = vmul.f32 %v588_v36, %v588_v36 }
 0x203   :  { %v586_v40 = vsel %vm427_vm1, %v549_v32, 0.0 }
 0x204   :  { %v902_v37 = vpop.f32.mrf.mxu0  ;;  %v917_v38 = vpop.f32.mrf.mxu1  ;;  %v602_v53 = vmul.f32 %v586_v40, %v586_v40 }
 0x205   :  { %v847_v39 = vpack.c.bf16 %v902_v37, %v901_v24  ;;  %v690_v41 = vsel %vm427_vm1, %v917_v38, 0.0  ;;  %v589_v48 = vsel %vm427_vm1, %v902_v37, 0.0 }
 0x206   :  { %590 = vadd.xlane.f32.xlu0 %v586_v40  ;;  %v552_v42 = vpop.f32.mrf.mxu0  ;;  %696 = vadd.xlane.f32.xlu1 %v690_v41  ;;  %v652_v43 = vpop.f32.mrf.mxu1  ;;  %v605_v54 = vmul.f32 %v589_v48, %v589_v48  ;;  %v706_v60 = vmul.f32 %v690_v41, %v690_v41 }
 0x207   :  { %868 = vst [vmem:[%s1206_s5 + $0x8] sm:$0xff] %v847_v39   ;;  %v842_v44 = vpack.c.bf16 %v552_v42, %v549_v32  ;;  %v688_v51 = vsel %vm427_vm1, %v652_v43, 0.0  ;;  %v587_v58 = vsel %vm427_vm1, %v552_v42, 0.0 }
 0x208   :  { %v918_v45 = vpop.f32.mrf.mxu1  ;;  %v704_v56 = vmul.f32 %v688_v51, %v688_v51  ;;  %v603_v59 = vmul.f32 %v587_v58, %v587_v58 }
 0x209   :  { %843 = vst [vmem:[%s1206_s5] sm:$0xff] %v842_v44   ;;  %v857_v47 = vpack.c.bf16 %v918_v45, %v917_v38  ;;  %v691_v52 = vsel %vm427_vm1, %v918_v45, 0.0 }
 0x20a   :  { %596 = vadd.xlane.f32.xlu0 %v589_v48  ;;  %610 = vadd.xlane.f32.xlu1 %v604_v46  ;;  %v655_v49 = vpop.f32.mrf.mxu1  ;;  %v707_v62 = vmul.f32 %v691_v52, %v691_v52 }
 0x20b   :  { %870 = vst [vmem:[%s1206_s5 + $0x18] sm:$0xff] %v857_v47   ;;  %v852_v50 = vpack.c.bf16 %v655_v49, %v652_v43  ;;  %v689_v57 = vsel %vm427_vm1, %v655_v49, 0.0 }
 0x20c   :  { %v705_v61 = vmul.f32 %v689_v57, %v689_v57 }
 0x20d   :  { %869 = vst [vmem:[%s1206_s5 + $0x10] sm:$0xff] %v852_v50  }
 0x20e   :  { %692 = vadd.xlane.f32.xlu1 %v688_v51  ;;  %698 = vadd.xlane.f32.xlu0 %v691_v52 }
 0x212   :  { %606 = vadd.xlane.f32.xlu1 %v602_v53  ;;  %612 = vadd.xlane.f32.xlu0 %v605_v54 }
 0x216   :  { %708 = vadd.xlane.f32.xlu1 %v704_v56  ;;  %694 = vadd.xlane.f32.xlu0 %v689_v57 }
 0x21a   :  { %592 = vadd.xlane.f32.xlu1 %v587_v58  ;;  %608 = vadd.xlane.f32.xlu0 %v603_v59 }
 0x21e   :  { %712 = vadd.xlane.f32.xlu1 %v706_v60  ;;  %710 = vadd.xlane.f32.xlu0 %v705_v61 }
 0x222   :  { %714 = vadd.xlane.f32.xlu0 %v707_v62 }
 0x28b   :  { %v595_v63 = vpop.xlane.xlu0 %594 }
 0x28f   :  { %v697_v0 = vpop.xlane.xlu1 %696  ;;  %v591_v1 = vpop.xlane.xlu0 %590 }
 0x290   :  { %v702_v16 = vadd.f32 %v697_v0, %v595_v63 }
 0x293   :  { %v611_v2 = vpop.xlane.xlu1 %610  ;;  %v597_v3 = vpop.xlane.xlu0 %596 }
 0x297   :  { %v693_v4 = vpop.xlane.xlu1 %692  ;;  %v699_v5 = vpop.xlane.xlu0 %698 }
 0x298   :  { %v700_v9 = vadd.f32 %v693_v4, %v591_v1  ;;  %v703_v25 = vadd.f32 %v699_v5, %v597_v3 }
 0x29b   :  { %v607_v55 = vpop.xlane.xlu1 %606  ;;  %v613_v6 = vpop.xlane.xlu0 %612 }
 0x29f   :  { %v709_v7 = vpop.xlane.xlu1 %708  ;;  %v695_v8 = vpop.xlane.xlu0 %694 }
 0x2a0   :  { %v716_v10 = vadd.f32 %v709_v7, %v607_v55 }
 0x2a2   :  { %v720_v11 = vsel %vm254_vm0, %v700_v9, %v716_v10 }
 0x2a3   :  { %725 = vst.msk [vmem:[%s1207_s6] sm:$0xff] %vm724_vm2, %v720_v11  ;;  %v593_v12 = vpop.xlane.xlu1 %592  ;;  %v609_v13 = vpop.xlane.xlu0 %608 }
 0x2a4   :  { %v701_v18 = vadd.f32 %v695_v8, %v593_v12 }
 0x2a7   :  { %v713_v14 = vpop.xlane.xlu1 %712  ;;  %v711_v15 = vpop.xlane.xlu0 %710 }
 0x2a8   :  { %v718_v19 = vadd.f32 %v713_v14, %v611_v2  ;;  %v717_v20 = vadd.f32 %v711_v15, %v609_v13 }
 0x2aa   :  { %v722_v21 = vsel %vm254_vm0, %v702_v16, %v718_v19  ;;  %v721_v22 = vsel %vm254_vm0, %v701_v18, %v717_v20 }
 0x2ab   :  { %727 = vst.msk [vmem:[%s1207_s6 + $0x10] sm:$0xff] %vm724_vm2, %v722_v21  ;;  %726 = vst.msk [vmem:[%s1207_s6 + $0x8] sm:$0xff] %vm724_vm2, %v721_v22  ;;  %v715_v23 = vpop.xlane.xlu0 %714 }
 0x2ac   :  { %v719_v26 = vadd.f32 %v715_v23, %v613_v6 }
 0x2ae   :  { %v723_v27 = vsel %vm254_vm0, %v703_v25, %v719_v26 }
 0x2af   :  { %728 = vst.msk [vmem:[%s1207_s6 + $0x18] sm:$0xff] %vm724_vm2, %v723_v27 }

// kernel: _lambda_.9
= control target key start
LH: loop header
LB: loop body
LE: loop exit
PB: predicated region body
PF: predicated region fallthrough
CT: control target
= control target key end

     0   :  { %v1128_v0 = vmov 0   ;;  %s1129_s12 = smov 1   ;;  %v1130_v45 = vmov 0.0|0.0   ;;  %v343_v50 = vlaneseq  ;;  %vm254_vm0 = vcmask 7168   ;;  %s1439_s0 = inlined_call_operand.vmem [shape: f32[2,32,1], index: 0, kind: input, shape index: {}]   ;;  %s1440_s1 = inlined_call_operand.vmem [shape: bf16[2,32,128], index: 1, kind: input, shape index: {}, may-alias: {1,2,3}]   ;;  %s1441_s3 = inlined_call_operand.vmem [shape: bf16[2,32,128], index: 3, kind: input, shape index: {}, may-alias: {1,2,3}]   ;;  %s1442_s2 = inlined_call_operand.vmem [shape: bf16[2,32,128], index: 2, kind: input, shape index: {}, may-alias: {1,2,3}]   ;;  %s1443_s4 = inlined_call_operand.vmem [shape: bf16[64,96], index: 4, kind: input, shape index: {}]   ;;  %s1444_s5 = inlined_call_operand.vmem [shape: bf16[2,64,128], index: 5, kind: output, shape index: {0}]   ;;  %s1445_s6 = inlined_call_operand.vmem [shape: f32[1,64,2], index: 6, kind: output, shape index: {1}]  }
   0x1   :  { %1103 = vset.pattern.permute.xlu1 %v1128_v0  ;;  %1102 = vset.pattern.permute.xlu0 %v1128_v0  ;;  %v867_v1 = vld [vmem:[%s1439_s0 + $0x30] sm:$0xff]  ;;  %v1021_v3 = vld [vmem:[%s1440_s1 + $0x8] sm:$0xff]   ;;  %v868_v4 = vld [vmem:[%s1439_s0 + $0x38] sm:$0xff]  ;;  %vm474_vm4 = vcmask 785408   ;;  %vm445_vm5 = vcmask 1031168   ;;  %vm420_vm6 = vcmask 1039360  }
   0x2   :  { %v79_v2 = vld [vmem:[%s1439_s0 + $0x10] sm:$0xff]  ;;  %319 = vperm.xlu1 %1103, %v867_v1   ;;  %v80_v5 = vld [vmem:[%s1439_s0 + $0x18] sm:$0xff]  ;;  %v940_v6 = vunpack.c.h.bf16 %v1021_v3  ;;  %v939_v7 = vunpack.c.l.bf16 %v1021_v3  ;;  %v1024_v14 = vld [vmem:[%s1442_s2 + $0x8] sm:$0xff]   ;;  %v1236_v53 = vand.u32 127, %v343_v50  ;;  %vm836_vm9 = vcmask 15360  }
   0x3   :  { %283 = vperm.xlu0 %1102, %v79_v2   ;;  %v1023_v8 = vld [vmem:[%s1440_s1 + $0x18] sm:$0xff]   ;;  %v955_v19 = vunpack.c.l.bf16 %v1024_v14  ;;  %v956_v20 = vunpack.c.h.bf16 %v1024_v14  ;;  %v78_v23 = vld [vmem:[%s1439_s0 + $0x8] sm:$0xff]  ;;  %v77_v24 = vld [vmem:[%s1439_s0] sm:$0xff] }
   0x4   :  { %v109_v9 = vmul.f32 0.0, %v940_v6  ;;  %v108_v10 = vmul.f32 0.0, %v939_v7  ;;  %v948_v11 = vunpack.c.h.bf16 %v1023_v8  ;;  %v947_v12 = vunpack.c.l.bf16 %v1023_v8  ;;  %v1026_v13 = vld [vmem:[%s1442_s2 + $0x18] sm:$0xff]   ;;  %v934_v25 = vld [vmem:[%s1440_s1] sm:$0xff]   ;;  %v866_v28 = vld [vmem:[%s1439_s0 + $0x28] sm:$0xff] }
   0x5   :  { %v963_v15 = vunpack.c.l.bf16 %v1026_v13  ;;  %v964_v16 = vunpack.c.h.bf16 %v1026_v13  ;;  %v1104_v22 = vpack.i.bf16 %v956_v20, %v955_v19  ;;  %v936_v26 = vunpack.c.h.bf16 %v934_v25  ;;  %v865_v29 = vld [vmem:[%s1439_s0 + $0x20] sm:$0xff]  ;;  %v1022_v30 = vld [vmem:[%s1440_s1 + $0x10] sm:$0xff]   ;;  %s1131_s0 = smov 126   ;;  %s1132_s1 = smov 127  }
   0x6   :  { %324 = vperm.xlu1 %1103, %v868_v4   ;;  %v113_v17 = vmul.f32 0.0, %v948_v11  ;;  %v112_v18 = vmul.f32 0.0, %v947_v12  ;;  %v935_v27 = vunpack.c.l.bf16 %v934_v25  ;;  %v944_v33 = vunpack.c.h.bf16 %v1022_v30  ;;  %v1025_v35 = vld [vmem:[%s1442_s2 + $0x10] sm:$0xff]   ;;  %v950_v36 = vld [vmem:[%s1442_s2] sm:$0xff]  }
   0x7   :  { %288 = vperm.xlu0 %1102, %v80_v5   ;;  %v1109_v21 = vpack.i.bf16 %v964_v16, %v963_v15  ;;  %v107_v31 = vmul.f32 0.0, %v936_v26  ;;  %v943_v34 = vunpack.c.l.bf16 %v1022_v30  ;;  %v959_v37 = vunpack.c.l.bf16 %v1025_v35 }
   0x8   :  { %v106_v32 = vmul.f32 0.0, %v935_v27  ;;  %v960_v38 = vunpack.c.h.bf16 %v1025_v35  ;;  %v111_v39 = vmul.f32 0.0, %v944_v33  ;;  %v951_v41 = vunpack.c.l.bf16 %v950_v36 }
   0x9   :  { %v110_v40 = vmul.f32 0.0, %v943_v34  ;;  %v952_v42 = vunpack.c.h.bf16 %v950_v36  ;;  %v349_v56 = vadd.s32 4294967295, %v1236_v53  ;;  %vm379_vm8 = vcmp.lt.s32.totalorder %v1236_v53, 8 }
   0xa   :  { %172 = vrot.lane.b32.xlu1 %v109_v9, %s1129_s12  ;;  %v1119_v43 = vpack.i.bf16 %v960_v38, %v959_v37  ;;  %v1125_v9 = vld [vmem:[%s1443_s4 + $0x8] sm:$0xff]  }
   0xb   :  { %170 = vrot.lane.b32.xlu0 %v108_v10, %s1129_s12  ;;  %v1114_v44 = vpack.i.bf16 %v952_v42, %v951_v41  ;;  %vm351_vm1 = vcmp.ge.s32.totalorder %v349_v56, 0  ;;  %vm353_vm2 = vcmp.lt.s32.totalorder %v349_v56, 8 }
   0xc   :  { %vm1243_vm3 = vmand %vm351_vm1, %vm353_vm2 }
   0xd   :  { %vm1298_vm7 = vmpackc.low %vm1243_vm3, %vm1243_vm3 }
   0xe   :  { %180 = vrot.lane.b32.xlu1 %v113_v17, %s1129_s12 }
   0xf   :  { %178 = vrot.lane.b32.xlu0 %v112_v18, %s1129_s12 }
  0x12   :  { %1110 = vrot.lane.b32.xlu1 %v1109_v21, %s1129_s12 }
  0x13   :  { %1105 = vrot.lane.b32.xlu0 %v1104_v22, %s1129_s12 }
  0x16   :  { %278 = vperm.xlu1 %1103, %v78_v23  }
  0x17   :  { %273 = vperm.xlu0 %1102, %v77_v24  }
  0x1a   :  { %314 = vperm.xlu1 %1103, %v866_v28  }
  0x1b   :  { %309 = vperm.xlu0 %1102, %v865_v29  }
  0x1e   :  { %168 = vrot.lane.b32.xlu1 %v107_v31, %s1129_s12 }
  0x1f   :  { %166 = vrot.lane.b32.xlu0 %v106_v32, %s1129_s12 }
  0x22   :  { %176 = vrot.lane.b32.xlu1 %v111_v39, %s1129_s12 }
  0x23   :  { %174 = vrot.lane.b32.xlu0 %v110_v40, %s1129_s12 }
  0x26   :  { %1120 = vrot.lane.b32.xlu1 %v1119_v43, %s1129_s12 }
  0x27   :  { %1115 = vrot.lane.b32.xlu0 %v1114_v44, %s1129_s12 }
  0x2a   :  { %435 = vrot.lane.b32.xlu1 %v1130_v45, %s1131_s0 }
  0x2e   :  { %443 = vrot.lane.b32.xlu1 %v1130_v45, %s1131_s0 }
  0x32   :  { %431 = vrot.lane.b32.xlu1 %v1130_v45, %s1131_s0 }
  0x36   :  { %439 = vrot.lane.b32.xlu1 %v1130_v45, %s1131_s0 }
  0x3a   :  { %410 = vrot.lane.b32.xlu1 %v1130_v45, %s1132_s1 }
  0x3e   :  { %418 = vrot.lane.b32.xlu1 %v1130_v45, %s1132_s1 }
  0x42   :  { %406 = vrot.lane.b32.xlu1 %v1130_v45, %s1132_s1 }
  0x46   :  { %414 = vrot.lane.b32.xlu1 %v1130_v45, %s1132_s1 }
  0x7d   :  { %v320_v46 = vpop.permute.xlu1 %319 }
  0x7e   :  { %v284_v47 = vpop.permute.xlu0 %283 }
  0x81   :  { %v325_v48 = vpop.permute.xlu1 %324 }
  0x82   :  { %v289_v49 = vpop.permute.xlu0 %288 }
  0x85   :  { %v173_v51 = vpop.permute.xlu1 %172 }
  0x86   :  { %v171_v52 = vpop.permute.xlu0 %170 }
  0x89   :  { %v181_v54 = vpop.permute.xlu1 %180 }
  0x8a   :  { %v179_v55 = vpop.permute.xlu0 %178 }
  0x8d   :  { %v1111_v57 = vpop.permute.xlu1 %1110 }
  0x8e   :  { %v1106_v58 = vpop.permute.xlu0 %1105  ;;  %v1113_v59 = vunpack.i.h.bf16 %v1111_v57  ;;  %v1112_v60 = vunpack.i.l.bf16 %v1111_v57 }
  0x8f   :  { %v1108_v61 = vunpack.i.h.bf16 %v1106_v58  ;;  %v1107_v62 = vunpack.i.l.bf16 %v1106_v58 }
  0x90   :  { %v262_v63 = vsel %vm254_vm0, %v181_v54, %v1113_v59  ;;  %v261_v0 = vsel %vm254_vm0, %v179_v55, %v1112_v60  ;;  %v1124_v55 = vld [vmem:[%s1443_s4] sm:$0xff]  }
  0x91   :  { %v258_v1 = vsel %vm254_vm0, %v173_v51, %v1108_v61  ;;  %v257_v2 = vsel %vm254_vm0, %v171_v52, %v1107_v62  ;;  %v303_v3 = vmul.f32 %v284_v47, %v261_v0  ;;  %v305_v4 = vmul.f32 %v289_v49, %v262_v63  ;;  %v279_v7 = vpop.permute.xlu1 %278  ;;  %1069 = vmatprep.mubr.msk.bf16.mxu0 %vm474_vm4, %v1124_v55 }
  0x92   :  { %v297_v5 = vmul.f32 %v289_v49, %v258_v1  ;;  %v295_v6 = vmul.f32 %v284_v47, %v257_v2  ;;  %v274_v8 = vpop.permute.xlu0 %273  ;;  %1089 = vmatprep.mubr.msk.bf16.mxu1 %vm474_vm4, %v1124_v55 }
  0x93   :  { %v339_v12 = vadd.f32 %v320_v46, %v303_v3  ;;  %v341_v13 = vadd.f32 %v325_v48, %v305_v4 }
  0x94   :  { %v331_v10 = vadd.f32 %v320_v46, %v295_v6  ;;  %v333_v11 = vadd.f32 %v325_v48, %v297_v5 }
  0x95   :  { %v315_v14 = vpop.permute.xlu1 %314  ;;  %v1253_v20 = vpack.c.bf16 %v341_v13, %v339_v12  ;;  %v373_v21 = vsel %vm1243_vm3, %v339_v12, 0.0  ;;  %v375_v22 = vsel %vm1243_vm3, %v341_v13, 0.0 }
  0x96   :  { %v310_v15 = vpop.permute.xlu0 %309  ;;  %v365_v16 = vsel %vm1243_vm3, %v331_v10, 0.0  ;;  %v367_v17 = vsel %vm1243_vm3, %v333_v11, 0.0  ;;  %v1251_v19 = vpack.c.bf16 %v333_v11, %v331_v10  ;;  %v394_v25 = vpack.c.bf16 %v375_v22, %v373_v21 }
  0x97   :  { %v390_v18 = vpack.c.bf16 %v367_v17, %v365_v16 }
  0x99   :  { %433 = vrot.lane.b32.xlu0 %v390_v18, %s1131_s0  ;;  %v169_v23 = vpop.permute.xlu1 %168 }
  0x9a   :  { %v167_v24 = vpop.permute.xlu0 %166 }
  0x9d   :  { %441 = vrot.lane.b32.xlu0 %v394_v25, %s1131_s0  ;;  %v177_v26 = vpop.permute.xlu1 %176 }
  0x9e   :  { %v175_v27 = vpop.permute.xlu0 %174 }
  0xa1   :  { %v1121_v28 = vpop.permute.xlu1 %1120 }
  0xa2   :  { %v1116_v29 = vpop.permute.xlu0 %1115  ;;  %v1123_v30 = vunpack.i.h.bf16 %v1121_v28  ;;  %v1122_v31 = vunpack.i.l.bf16 %v1121_v28 }
  0xa3   :  { %v1118_v32 = vunpack.i.h.bf16 %v1116_v29  ;;  %v1117_v33 = vunpack.i.l.bf16 %v1116_v29 }
  0xa4   :  { %v260_v34 = vsel %vm254_vm0, %v177_v26, %v1123_v30  ;;  %v259_v35 = vsel %vm254_vm0, %v175_v27, %v1122_v31 }
  0xa5   :  { %v256_v36 = vsel %vm254_vm0, %v169_v23, %v1118_v32  ;;  %v255_v37 = vsel %vm254_vm0, %v167_v24, %v1117_v33  ;;  %v301_v38 = vmul.f32 %v279_v7, %v260_v34  ;;  %v299_v39 = vmul.f32 %v274_v8, %v259_v35  ;;  %v436_v56 = vpop.permute.xlu1 %435 }
  0xa6   :  { %v293_v40 = vmul.f32 %v279_v7, %v256_v36  ;;  %v291_v41 = vmul.f32 %v274_v8, %v255_v37 }
  0xa7   :  { %v335_v44 = vadd.f32 %v310_v15, %v299_v39  ;;  %v337_v45 = vadd.f32 %v315_v14, %v301_v38 }
  0xa8   :  { %v327_v42 = vadd.f32 %v310_v15, %v291_v41  ;;  %v329_v43 = vadd.f32 %v315_v14, %v293_v40 }
  0xa9   :  { %v1271_v50 = vpack.c.bf16 %v337_v45, %v335_v44  ;;  %v369_v51 = vsel %vm1243_vm3, %v335_v44, 0.0  ;;  %v371_v52 = vsel %vm1243_vm3, %v337_v45, 0.0  ;;  %v444_v59 = vpop.permute.xlu1 %443 }
  0xaa   :  { %v361_v46 = vsel %vm1243_vm3, %v327_v42, 0.0  ;;  %v363_v47 = vsel %vm1243_vm3, %v329_v43, 0.0  ;;  %v1269_v49 = vpack.c.bf16 %v329_v43, %v327_v42  ;;  %v392_v54 = vpack.c.bf16 %v371_v52, %v369_v51 }
  0xab   :  { %v388_v48 = vpack.c.bf16 %v363_v47, %v361_v46 }
  0xad   :  { %429 = vrot.lane.b32.xlu0 %v388_v48, %s1131_s0  ;;  %v432_v62 = vpop.permute.xlu1 %431 }
  0xb1   :  { %437 = vrot.lane.b32.xlu0 %v392_v54, %s1131_s0  ;;  %v440_v63 = vpop.permute.xlu1 %439 }
  0xb5   :  { %408 = vrot.lane.b32.xlu0 %v390_v18, %s1132_s1  ;;  %v411_v1 = vpop.permute.xlu1 %410  ;;  %v1126_v18 = vld [vmem:[%s1443_s4 + $0x10] sm:$0xff]  }
  0xb9   :  { %416 = vrot.lane.b32.xlu0 %v394_v25, %s1132_s1  ;;  %v419_v5 = vpop.permute.xlu1 %418 }
  0xbd   :  { %404 = vrot.lane.b32.xlu0 %v388_v48, %s1132_s1  ;;  %v407_v10 = vpop.permute.xlu1 %406 }
  0xc1   :  { %412 = vrot.lane.b32.xlu0 %v392_v54, %s1132_s1  ;;  %v415_v15 = vpop.permute.xlu1 %414 }
 0x10b   :  { %v434_v57 = vpop.permute.xlu0 %433 }
 0x10c   :  { %v447_v58 = vsel %vm445_vm5, %v434_v57, %v436_v56 }
 0x10d   :  { %1057 = vmatprep.subr.bf16.mxu0 %v447_v58 }
 0x10e   :  { %1058 = vmatpush3.bf16.msra.mxu0 %v447_v58 }
 0x10f   :  { %v442_v60 = vpop.permute.xlu0 %441 }
 0x110   :  { %v449_v61 = vsel %vm445_vm5, %v442_v60, %v444_v59 }
 0x111   :  { %1077 = vmatprep.subr.bf16.mxu1 %v449_v61 }
 0x112   :  { %1078 = vmatpush3.bf16.msra.mxu1 %v449_v61 }
 0x11f   :  { %v430_v0 = vpop.permute.xlu0 %429 }
 0x120   :  { %v446_v2 = vsel %vm445_vm5, %v430_v0, %v432_v62 }
 0x121   :  { %1059 = vmatprep.subr.bf16.mxu0 %v446_v2 }
 0x122   :  { %1060 = vmatpush3.bf16.msra.mxu0 %v446_v2 }
 0x123   :  { %v438_v3 = vpop.permute.xlu0 %437 }
 0x124   :  { %v448_v4 = vsel %vm445_vm5, %v438_v3, %v440_v63 }
 0x125   :  { %1079 = vmatprep.subr.bf16.mxu1 %v448_v4 }
 0x126   :  { %1080 = vmatpush3.bf16.msra.mxu1 %v448_v4 }
 0x127   :  { %v409_v6 = vpop.permute.xlu0 %408 }
 0x128   :  { %v422_v7 = vsel %vm420_vm6, %v409_v6, %v411_v1 }
 0x129   :  { %1061 = vmatprep.subr.bf16.mxu0 %v422_v7 }
 0x12a   :  { %1062 = vmatpush3.bf16.msra.mxu0 %v422_v7 }
 0x12b   :  { %v417_v8 = vpop.permute.xlu0 %416 }
 0x12c   :  { %v424_v11 = vsel %vm420_vm6, %v417_v8, %v419_v5 }
 0x12d   :  { %1081 = vmatprep.subr.bf16.mxu1 %v424_v11 }
 0x12e   :  { %1082 = vmatpush3.bf16.msra.mxu1 %v424_v11 }
 0x12f   :  { %v405_v12 = vpop.permute.xlu0 %404 }
 0x130   :  { %v421_v13 = vsel %vm420_vm6, %v405_v12, %v407_v10 }
 0x131   :  { %1063 = vmatprep.subr.bf16.mxu0 %v421_v13 }
 0x132   :  { %1064 = vmatpush3.bf16.msra.mxu0 %v421_v13 }
 0x133   :  { %1065 = vmatprep.subr.msk.bf16.mxu0 %vm1298_vm7, %v1251_v19  ;;  %v413_v16 = vpop.permute.xlu0 %412 }
 0x134   :  { %v423_v17 = vsel %vm420_vm6, %v413_v16, %v415_v15 }
 0x135   :  { %1083 = vmatprep.subr.bf16.mxu1 %v423_v17 }
 0x136   :  { %1066 = vmatpush3.bf16.msk.msra.mxu0 %vm1298_vm7, %v1251_v19  ;;  %1084 = vmatpush3.bf16.msra.mxu1 %v423_v17  ;;  %v1127_v19 = vld [vmem:[%s1443_s4 + $0x18] sm:$0xff]  }
 0x137   :  { %1067 = vmatprep.subr.msk.bf16.mxu0 %vm1298_vm7, %v1269_v49  ;;  %1085 = vmatprep.subr.msk.bf16.mxu1 %vm1298_vm7, %v1253_v20 }
 0x13a   :  { %1068 = vmatpush3.bf16.msk.msra.mxu0 %vm1298_vm7, %v1269_v49  ;;  %1086 = vmatpush3.bf16.msk.msra.mxu1 %vm1298_vm7, %v1253_v20 }
 0x13b   :  { %1087 = vmatprep.subr.msk.bf16.mxu1 %vm1298_vm7, %v1271_v50 }
 0x13d   :  { %1070 = vmatmul.mubr.msk.bf16.vlgmr.msra.gmra.mxu0 %vm474_vm4, %v1125_v9 }
 0x13e   :  { %1088 = vmatpush3.bf16.msk.msra.mxu1 %vm1298_vm7, %v1271_v50  ;;  %1073 = vmatprep.mubr.msk.bf16.mxu0 %vm474_vm4, %v1126_v18 }
 0x141   :  { %1090 = vmatmul.mubr.msk.bf16.vlgmr.msra.gmra.mxu1 %vm474_vm4, %v1125_v9 }
 0x142   :  { %1093 = vmatprep.mubr.msk.bf16.mxu1 %vm474_vm4, %v1126_v18 }
 0x145   :  { %1074 = vmatmul.mubr.msk.bf16.gmra.mxu0 %vm474_vm4, %v1127_v19 }
 0x149   :  { %1094 = vmatmul.mubr.msk.bf16.gmra.mxu1 %vm474_vm4, %v1127_v19 }
 0x1fd   :  { %v1071_v20 = vpop.f32.mrf.mxu0 }
 0x1fe   :  { %v596_v21 = vsel %vm379_vm8, %v1071_v20, 0.0 }
 0x1ff   :  { %606 = vadd.xlane.f32.xlu0 %v596_v21  ;;  %v521_v22 = vpop.f32.mrf.mxu0  ;;  %v628_v32 = vmul.f32 %v596_v21, %v596_v21 }
 0x200   :  { %v594_v26 = vsel %vm379_vm8, %v521_v22, 0.0 }
 0x201   :  { %v1072_v23 = vpop.f32.mrf.mxu0  ;;  %v1091_v24 = vpop.f32.mrf.mxu1  ;;  %v626_v54 = vmul.f32 %v594_v26, %v594_v26 }
 0x202   :  { %v989_v25 = vpack.c.bf16 %v1072_v23, %v1071_v20  ;;  %v766_v27 = vsel %vm379_vm8, %v1091_v24, 0.0  ;;  %v597_v35 = vsel %vm379_vm8, %v1072_v23, 0.0 }
 0x203   :  { %602 = vadd.xlane.f32.xlu0 %v594_v26  ;;  %v524_v28 = vpop.f32.mrf.mxu0  ;;  %776 = vadd.xlane.f32.xlu1 %v766_v27  ;;  %v692_v29 = vpop.f32.mrf.mxu1  ;;  %v798_v47 = vmul.f32 %v766_v27, %v766_v27  ;;  %v629_v48 = vmul.f32 %v597_v35, %v597_v35 }
 0x204   :  { %1030 = vst [vmem:[%s1444_s5 + $0x8] sm:$0xff] %v989_v25   ;;  %v984_v30 = vpack.c.bf16 %v524_v28, %v521_v22  ;;  %v764_v41 = vsel %vm379_vm8, %v692_v29, 0.0  ;;  %v595_v58 = vsel %vm379_vm8, %v524_v28, 0.0 }
 0x205   :  { %v1092_v31 = vpop.f32.mrf.mxu1  ;;  %v1075_v33 = vpop.f32.mrf.mxu0  ;;  %v796_v56 = vmul.f32 %v764_v41, %v764_v41  ;;  %v627_v59 = vmul.f32 %v595_v58, %v595_v58 }
 0x206   :  { %985 = vst [vmem:[%s1444_s5] sm:$0xff] %v984_v30   ;;  %v1009_v34 = vpack.c.bf16 %v1092_v31, %v1091_v24  ;;  %v767_v42 = vsel %vm379_vm8, %v1092_v31, 0.0  ;;  %v600_v60 = vsel %vm379_vm8, %v1075_v33, 0.0 }
 0x207   :  { %608 = vadd.xlane.f32.xlu0 %v597_v35  ;;  %638 = vadd.xlane.f32.xlu1 %v628_v32  ;;  %v695_v36 = vpop.f32.mrf.mxu1  ;;  %v537_v37 = vpop.f32.mrf.mxu0  ;;  %v799_v57 = vmul.f32 %v767_v42, %v767_v42  ;;  %v632_v2 = vmul.f32 %v600_v60, %v600_v60 }
 0x208   :  { %1034 = vst [vmem:[%s1444_s5 + $0x28] sm:$0xff] %v1009_v34   ;;  %v1004_v38 = vpack.c.bf16 %v695_v36, %v692_v29  ;;  %v765_v55 = vsel %vm379_vm8, %v695_v36, 0.0  ;;  %v598_v0 = vsel %vm379_vm8, %v537_v37, 0.0 }
 0x209   :  { %v1076_v39 = vpop.f32.mrf.mxu0  ;;  %v1095_v40 = vpop.f32.mrf.mxu1  ;;  %v797_v61 = vmul.f32 %v765_v55, %v765_v55  ;;  %v630_v6 = vmul.f32 %v598_v0, %v598_v0 }
 0x20a   :  { %1033 = vst [vmem:[%s1444_s5 + $0x20] sm:$0xff] %v1004_v38   ;;  %v999_v43 = vpack.c.bf16 %v1076_v39, %v1075_v33  ;;  %v770_v62 = vsel %vm379_vm8, %v1095_v40, 0.0  ;;  %v601_v63 = vsel %vm379_vm8, %v1076_v39, 0.0 }
 0x20b   :  { %772 = vadd.xlane.f32.xlu1 %v764_v41  ;;  %778 = vadd.xlane.f32.xlu0 %v767_v42  ;;  %v540_v44 = vpop.f32.mrf.mxu0  ;;  %v708_v45 = vpop.f32.mrf.mxu1  ;;  %v633_v4 = vmul.f32 %v601_v63, %v601_v63  ;;  %v802_v11 = vmul.f32 %v770_v62, %v770_v62 }
 0x20c   :  { %1032 = vst [vmem:[%s1444_s5 + $0x18] sm:$0xff] %v999_v43   ;;  %v994_v46 = vpack.c.bf16 %v540_v44, %v537_v37  ;;  %v599_v3 = vsel %vm379_vm8, %v540_v44, 0.0  ;;  %v768_v5 = vsel %vm379_vm8, %v708_v45, 0.0 }
 0x20d   :  { %v1096_v49 = vpop.f32.mrf.mxu1  ;;  %v800_v8 = vmul.f32 %v768_v5, %v768_v5  ;;  %v631_v10 = vmul.f32 %v599_v3, %v599_v3 }
 0x20e   :  { %1031 = vst [vmem:[%s1444_s5 + $0x10] sm:$0xff] %v994_v46   ;;  %v1019_v50 = vpack.c.bf16 %v1096_v49, %v1095_v40  ;;  %v771_v1 = vsel %vm379_vm8, %v1096_v49, 0.0 }
 0x20f   :  { %808 = vadd.xlane.f32.xlu1 %v798_v47  ;;  %640 = vadd.xlane.f32.xlu0 %v629_v48  ;;  %v711_v51 = vpop.f32.mrf.mxu1  ;;  %v803_v13 = vmul.f32 %v771_v1, %v771_v1 }
 0x210   :  { %1036 = vst [vmem:[%s1444_s5 + $0x38] sm:$0xff] %v1019_v50   ;;  %v1014_v52 = vpack.c.bf16 %v711_v51, %v708_v45  ;;  %v769_v7 = vsel %vm379_vm8, %v711_v51, 0.0 }
 0x211   :  { %v801_v12 = vmul.f32 %v769_v7, %v769_v7 }
 0x212   :  { %1035 = vst [vmem:[%s1444_s5 + $0x30] sm:$0xff] %v1014_v52  }
 0x213   :  { %634 = vadd.xlane.f32.xlu1 %v626_v54  ;;  %774 = vadd.xlane.f32.xlu0 %v765_v55 }
 0x217   :  { %804 = vadd.xlane.f32.xlu1 %v796_v56  ;;  %810 = vadd.xlane.f32.xlu0 %v799_v57 }
 0x21b   :  { %604 = vadd.xlane.f32.xlu1 %v595_v58  ;;  %636 = vadd.xlane.f32.xlu0 %v627_v59 }
 0x21f   :  { %614 = vadd.xlane.f32.xlu1 %v600_v60  ;;  %806 = vadd.xlane.f32.xlu0 %v797_v61 }
 0x223   :  { %616 = vadd.xlane.f32.xlu0 %v601_v63  ;;  %784 = vadd.xlane.f32.xlu1 %v770_v62 }
 0x227   :  { %610 = vadd.xlane.f32.xlu1 %v598_v0  ;;  %786 = vadd.xlane.f32.xlu0 %v771_v1 }
 0x22b   :  { %646 = vadd.xlane.f32.xlu1 %v632_v2  ;;  %612 = vadd.xlane.f32.xlu0 %v599_v3 }
 0x22f   :  { %780 = vadd.xlane.f32.xlu1 %v768_v5  ;;  %648 = vadd.xlane.f32.xlu0 %v633_v4 }
 0x233   :  { %642 = vadd.xlane.f32.xlu1 %v630_v6  ;;  %782 = vadd.xlane.f32.xlu0 %v769_v7 }
 0x237   :  { %812 = vadd.xlane.f32.xlu1 %v800_v8  ;;  %644 = vadd.xlane.f32.xlu0 %v631_v10 }
 0x23b   :  { %816 = vadd.xlane.f32.xlu1 %v802_v11  ;;  %814 = vadd.xlane.f32.xlu0 %v801_v12 }
 0x23f   :  { %818 = vadd.xlane.f32.xlu0 %v803_v13 }
 0x288   :  { %v607_v14 = vpop.xlane.xlu0 %606 }
 0x28c   :  { %v777_v15 = vpop.xlane.xlu1 %776  ;;  %v603_v16 = vpop.xlane.xlu0 %602 }
 0x28d   :  { %v790_v21 = vadd.f32 %v777_v15, %v607_v14 }
 0x290   :  { %v639_v17 = vpop.xlane.xlu1 %638  ;;  %v609_v9 = vpop.xlane.xlu0 %608 }
 0x294   :  { %v773_v18 = vpop.xlane.xlu1 %772  ;;  %v779_v53 = vpop.xlane.xlu0 %778 }
 0x295   :  { %v788_v28 = vadd.f32 %v773_v18, %v603_v16  ;;  %v791_v29 = vadd.f32 %v779_v53, %v609_v9 }
 0x298   :  { %v809_v19 = vpop.xlane.xlu1 %808  ;;  %v641_v20 = vpop.xlane.xlu0 %640 }
 0x299   :  { %v822_v22 = vadd.f32 %v809_v19, %v639_v17 }
 0x29b   :  { %v830_v23 = vsel %vm254_vm0, %v790_v21, %v822_v22 }
 0x29c   :  { %839 = vst.msk [vmem:[%s1445_s6 + $0x10] sm:$0xff] %vm836_vm9, %v830_v23  ;;  %v635_v24 = vpop.xlane.xlu1 %634  ;;  %v775_v25 = vpop.xlane.xlu0 %774 }
 0x2a0   :  { %v805_v26 = vpop.xlane.xlu1 %804  ;;  %v811_v27 = vpop.xlane.xlu0 %810 }
 0x2a1   :  { %v820_v30 = vadd.f32 %v805_v26, %v635_v24  ;;  %v823_v31 = vadd.f32 %v811_v27, %v641_v20 }
 0x2a3   :  { %v828_v32 = vsel %vm254_vm0, %v788_v28, %v820_v30  ;;  %v831_v33 = vsel %vm254_vm0, %v791_v29, %v823_v31 }
 0x2a4   :  { %837 = vst.msk [vmem:[%s1445_s6] sm:$0xff] %vm836_vm9, %v828_v32  ;;  %840 = vst.msk [vmem:[%s1445_s6 + $0x18] sm:$0xff] %vm836_vm9, %v831_v33  ;;  %v605_v34 = vpop.xlane.xlu1 %604  ;;  %v637_v35 = vpop.xlane.xlu0 %636 }
 0x2a5   :  { %v789_v38 = vadd.f32 %v775_v25, %v605_v34 }
 0x2a8   :  { %v615_v36 = vpop.xlane.xlu1 %614  ;;  %v807_v37 = vpop.xlane.xlu0 %806 }
 0x2a9   :  { %v821_v39 = vadd.f32 %v807_v37, %v637_v35 }
 0x2ab   :  { %v829_v40 = vsel %vm254_vm0, %v789_v38, %v821_v39 }
 0x2ac   :  { %838 = vst.msk [vmem:[%s1445_s6 + $0x8] sm:$0xff] %vm836_vm9, %v829_v40  ;;  %v785_v41 = vpop.xlane.xlu1 %784  ;;  %v617_v42 = vpop.xlane.xlu0 %616 }
 0x2ad   :  { %v794_v59 = vadd.f32 %v785_v41, %v615_v36 }
 0x2b0   :  { %v611_v43 = vpop.xlane.xlu1 %610  ;;  %v787_v44 = vpop.xlane.xlu0 %786 }
 0x2b1   :  { %v795_v2 = vadd.f32 %v787_v44, %v617_v42 }
 0x2b4   :  { %v647_v45 = vpop.xlane.xlu1 %646  ;;  %v613_v46 = vpop.xlane.xlu0 %612 }
 0x2b8   :  { %v781_v47 = vpop.xlane.xlu1 %780  ;;  %v649_v48 = vpop.xlane.xlu0 %648 }
 0x2b9   :  { %v792_v54 = vadd.f32 %v781_v47, %v611_v43 }
 0x2bc   :  { %v643_v49 = vpop.xlane.xlu1 %642  ;;  %v783_v50 = vpop.xlane.xlu0 %782 }
 0x2bd   :  { %v793_v60 = vadd.f32 %v783_v50, %v613_v46 }
 0x2c0   :  { %v813_v51 = vpop.xlane.xlu1 %812  ;;  %v645_v52 = vpop.xlane.xlu0 %644 }
 0x2c1   :  { %v824_v55 = vadd.f32 %v813_v51, %v643_v49 }
 0x2c3   :  { %v832_v56 = vsel %vm254_vm0, %v792_v54, %v824_v55 }
 0x2c4   :  { %841 = vst.msk [vmem:[%s1445_s6 + $0x20] sm:$0xff] %vm836_vm9, %v832_v56  ;;  %v817_v57 = vpop.xlane.xlu1 %816  ;;  %v815_v58 = vpop.xlane.xlu0 %814 }
 0x2c5   :  { %v826_v61 = vadd.f32 %v817_v57, %v647_v45  ;;  %v825_v62 = vadd.f32 %v815_v58, %v645_v52 }
 0x2c7   :  { %v834_v63 = vsel %vm254_vm0, %v794_v59, %v826_v61  ;;  %v833_v0 = vsel %vm254_vm0, %v793_v60, %v825_v62 }
 0x2c8   :  { %843 = vst.msk [vmem:[%s1445_s6 + $0x30] sm:$0xff] %vm836_vm9, %v834_v63  ;;  %842 = vst.msk [vmem:[%s1445_s6 + $0x28] sm:$0xff] %vm836_vm9, %v833_v0  ;;  %v819_v1 = vpop.xlane.xlu0 %818 }
 0x2c9   :  { %v827_v3 = vadd.f32 %v819_v1, %v649_v48 }
 0x2cb   :  { %v835_v4 = vsel %vm254_vm0, %v795_v2, %v827_v3 }
 0x2cc   :  { %844 = vst.msk [vmem:[%s1445_s6 + $0x38] sm:$0xff] %vm836_vm9, %v835_v4 }

// kernel: _lambda_.11
= control target key start
LH: loop header
LB: loop body
LE: loop exit
PB: predicated region body
PF: predicated region fallthrough
CT: control target
= control target key end

     0   :  { %v290_v0 = vmov 0   ;;  %s432_s1 = inlined_call_operand.vmem [shape: f32[2,64,1], index: 1, kind: input, shape index: {}]   ;;  %s433_s0 = inlined_call_operand.vmem [shape: bf16[2,64,128], index: 0, kind: input, shape index: {}]   ;;  %s434_s2 = inlined_call_operand.vmem [shape: f32[2,64,128], index: 2, kind: output, shape index: {}]  }
   0x1   :  { %289 = vset.pattern.permute.xlu1 %v290_v0  ;;  %288 = vset.pattern.permute.xlu0 %v290_v0  ;;  %v45_v1 = vld [vmem:[%s432_s1 + $0x10] sm:$0xff]  ;;  %v43_v2 = vld [vmem:[%s432_s1] sm:$0xff]  ;;  %v46_v3 = vld [vmem:[%s432_s1 + $0x18] sm:$0xff] }
   0x2   :  { %63 = vperm.xlu1 %289, %v45_v1   ;;  %53 = vperm.xlu0 %288, %v43_v2   ;;  %v44_v4 = vld [vmem:[%s432_s1 + $0x8] sm:$0xff]  ;;  %v47_v6 = vld [vmem:[%s432_s1 + $0x20] sm:$0xff]  ;;  %v50_v7 = vld [vmem:[%s432_s1 + $0x38] sm:$0xff] }
   0x3   :  { %v48_v5 = vld [vmem:[%s432_s1 + $0x28] sm:$0xff]  ;;  %v49_v8 = vld [vmem:[%s432_s1 + $0x30] sm:$0xff]  ;;  %v240_v10 = vld [vmem:[%s432_s1 + $0x40] sm:$0xff] }
   0x4   :  { %v241_v9 = vld [vmem:[%s432_s1 + $0x48] sm:$0xff]  ;;  %v243_v11 = vld [vmem:[%s432_s1 + $0x58] sm:$0xff]  ;;  %v242_v12 = vld [vmem:[%s432_s1 + $0x50] sm:$0xff] }
   0x5   :  { %v245_v13 = vld [vmem:[%s432_s1 + $0x68] sm:$0xff]  ;;  %v244_v14 = vld [vmem:[%s432_s1 + $0x60] sm:$0xff]  ;;  %v247_v15 = vld [vmem:[%s432_s1 + $0x78] sm:$0xff] }
   0x6   :  { %68 = vperm.xlu1 %289, %v46_v3   ;;  %58 = vperm.xlu0 %288, %v44_v4   ;;  %v246_v16 = vld [vmem:[%s432_s1 + $0x70] sm:$0xff]  ;;  %v280_v21 = vld [vmem:[%s433_s0 + $0x8] sm:$0xff]   ;;  %v249_v23 = vld [vmem:[%s433_s0] sm:$0xff]  }
   0x7   :  { %v284_v22 = vld [vmem:[%s433_s0 + $0x28] sm:$0xff]   ;;  %v283_v24 = vld [vmem:[%s433_s0 + $0x20] sm:$0xff]   ;;  %v281_v27 = vld [vmem:[%s433_s0 + $0x10] sm:$0xff]   ;;  %v254_v29 = vunpack.c.l.bf16 %v280_v21  ;;  %v250_v31 = vunpack.c.l.bf16 %v249_v23  ;;  %v255_v35 = vunpack.c.h.bf16 %v280_v21  ;;  %v251_v37 = vunpack.c.h.bf16 %v249_v23 }
   0x8   :  { %v285_v28 = vld [vmem:[%s433_s0 + $0x30] sm:$0xff]   ;;  %v270_v30 = vunpack.c.l.bf16 %v284_v22  ;;  %v266_v32 = vunpack.c.l.bf16 %v283_v24  ;;  %v282_v33 = vld [vmem:[%s433_s0 + $0x18] sm:$0xff]   ;;  %v271_v36 = vunpack.c.h.bf16 %v284_v22  ;;  %v267_v38 = vunpack.c.h.bf16 %v283_v24 }
   0x9   :  { %v286_v34 = vld [vmem:[%s433_s0 + $0x38] sm:$0xff]   ;;  %v259_v39 = vunpack.c.h.bf16 %v281_v27  ;;  %v275_v40 = vunpack.c.h.bf16 %v285_v28  ;;  %v258_v41 = vunpack.c.l.bf16 %v281_v27  ;;  %v274_v42 = vunpack.c.l.bf16 %v285_v28 }
   0xa   :  { %78 = vperm.xlu1 %289, %v48_v5   ;;  %73 = vperm.xlu0 %288, %v47_v6   ;;  %v263_v45 = vunpack.c.h.bf16 %v282_v33  ;;  %v279_v46 = vunpack.c.h.bf16 %v286_v34  ;;  %v262_v47 = vunpack.c.l.bf16 %v282_v33  ;;  %v278_v48 = vunpack.c.l.bf16 %v286_v34 }
   0xe   :  { %88 = vperm.xlu1 %289, %v50_v7   ;;  %83 = vperm.xlu0 %288, %v49_v8  }
  0x12   :  { %123 = vperm.xlu1 %289, %v241_v9   ;;  %118 = vperm.xlu0 %288, %v240_v10  }
  0x16   :  { %133 = vperm.xlu1 %289, %v243_v11   ;;  %128 = vperm.xlu0 %288, %v242_v12  }
  0x1a   :  { %143 = vperm.xlu1 %289, %v245_v13   ;;  %138 = vperm.xlu0 %288, %v244_v14  }
  0x1e   :  { %153 = vperm.xlu1 %289, %v247_v15   ;;  %148 = vperm.xlu0 %288, %v246_v16  }
  0x7d   :  { %v64_v17 = vpop.permute.xlu1 %63  ;;  %v54_v18 = vpop.permute.xlu0 %53 }
  0x7e   :  { %v93_v49 = vmul.f32 %v254_v29, %v64_v17  ;;  %v101_v50 = vmul.f32 %v270_v30, %v64_v17  ;;  %v91_v51 = vmul.f32 %v250_v31, %v54_v18  ;;  %v99_v52 = vmul.f32 %v266_v32, %v54_v18 }
  0x81   :  { %v69_v19 = vpop.permute.xlu1 %68  ;;  %v59_v20 = vpop.permute.xlu0 %58 }
  0x82   :  { %v94_v53 = vmul.f32 %v255_v35, %v69_v19  ;;  %v102_v54 = vmul.f32 %v271_v36, %v69_v19  ;;  %v92_v55 = vmul.f32 %v251_v37, %v59_v20  ;;  %v100_v56 = vmul.f32 %v267_v38, %v59_v20 }
  0x85   :  { %v79_v25 = vpop.permute.xlu1 %78  ;;  %v74_v26 = vpop.permute.xlu0 %73 }
  0x86   :  { %v96_v57 = vmul.f32 %v259_v39, %v79_v25  ;;  %v104_v58 = vmul.f32 %v275_v40, %v79_v25  ;;  %v95_v59 = vmul.f32 %v258_v41, %v74_v26  ;;  %v103_v60 = vmul.f32 %v274_v42, %v74_v26 }
  0x89   :  { %v89_v43 = vpop.permute.xlu1 %88  ;;  %v84_v44 = vpop.permute.xlu0 %83 }
  0x8a   :  { %v98_v3 = vmul.f32 %v263_v45, %v89_v43  ;;  %v106_v4 = vmul.f32 %v279_v46, %v89_v43  ;;  %v378_v5 = vmul.f32 %v262_v47, %v84_v44  ;;  %v380_v6 = vmul.f32 %v278_v48, %v84_v44 }
  0x8d   :  { %v124_v61 = vpop.permute.xlu1 %123  ;;  %v119_v62 = vpop.permute.xlu0 %118 }
  0x8e   :  { %v157_v63 = vadd.f32 %v124_v61, %v92_v55  ;;  %v165_v0 = vadd.f32 %v124_v61, %v100_v56  ;;  %v156_v1 = vadd.f32 %v119_v62, %v91_v51  ;;  %v164_v2 = vadd.f32 %v119_v62, %v99_v52 }
  0x90   :  { %vm173_vm0 = vcmp.ge.f32.partialorder %v157_v63, 0.0  ;;  %vm181_vm1 = vcmp.ge.f32.partialorder %v165_v0, 0.0  ;;  %v189_v7 = vmul.f32 0.3, %v157_v63  ;;  %v197_v8 = vmul.f32 0.3, %v165_v0 }
  0x91   :  { %vm172_vm2 = vcmp.ge.f32.partialorder %v156_v1, 0.0  ;;  %vm180_vm3 = vcmp.ge.f32.partialorder %v164_v2, 0.0  ;;  %v188_v9 = vmul.f32 0.3, %v156_v1  ;;  %v196_v10 = vmul.f32 0.3, %v164_v2  ;;  %v134_v11 = vpop.permute.xlu1 %133  ;;  %v129_v12 = vpop.permute.xlu0 %128 }
  0x92   :  { %v205_v13 = vsel %vm173_vm0, %v157_v63, %v189_v7  ;;  %v213_v14 = vsel %vm181_vm1, %v165_v0, %v197_v8  ;;  %v159_v15 = vadd.f32 %v134_v11, %v94_v53  ;;  %v167_v16 = vadd.f32 %v134_v11, %v102_v54 }
  0x93   :  { %221 = vst [vmem:[%s434_s2 + $0x8] sm:$0xff] %v205_v13  ;;  %229 = vst [vmem:[%s434_s2 + $0x48] sm:$0xff] %v213_v14  ;;  %v204_v17 = vsel %vm172_vm2, %v156_v1, %v188_v9  ;;  %v212_v18 = vsel %vm180_vm3, %v164_v2, %v196_v10  ;;  %v158_v19 = vadd.f32 %v129_v12, %v93_v49 }
  0x94   :  { %v166_v20 = vadd.f32 %v129_v12, %v101_v50  ;;  %220 = vst [vmem:[%s434_s2] sm:$0xff] %v204_v17  ;;  %228 = vst [vmem:[%s434_s2 + $0x40] sm:$0xff] %v212_v18  ;;  %vm175_vm4 = vcmp.ge.f32.partialorder %v159_v15, 0.0  ;;  %vm183_vm5 = vcmp.ge.f32.partialorder %v167_v16, 0.0  ;;  %v191_v21 = vmul.f32 0.3, %v159_v15 }
  0x95   :  { %v199_v22 = vmul.f32 0.3, %v167_v16  ;;  %vm174_vm6 = vcmp.ge.f32.partialorder %v158_v19, 0.0  ;;  %v190_v23 = vmul.f32 0.3, %v158_v19  ;;  %v144_v25 = vpop.permute.xlu1 %143  ;;  %v139_v26 = vpop.permute.xlu0 %138 }
  0x96   :  { %vm182_vm7 = vcmp.ge.f32.partialorder %v166_v20, 0.0  ;;  %v198_v24 = vmul.f32 0.3, %v166_v20  ;;  %v207_v27 = vsel %vm175_vm4, %v159_v15, %v191_v21  ;;  %v161_v29 = vadd.f32 %v144_v25, %v96_v57 }
  0x97   :  { %v215_v28 = vsel %vm183_vm5, %v167_v16, %v199_v22  ;;  %v169_v30 = vadd.f32 %v144_v25, %v104_v58  ;;  %223 = vst [vmem:[%s434_s2 + $0x18] sm:$0xff] %v207_v27  ;;  %v206_v31 = vsel %vm174_vm6, %v158_v19, %v190_v23  ;;  %v160_v33 = vadd.f32 %v139_v26, %v95_v59 }
  0x98   :  { %231 = vst [vmem:[%s434_s2 + $0x58] sm:$0xff] %v215_v28  ;;  %v214_v32 = vsel %vm182_vm7, %v166_v20, %v198_v24  ;;  %v168_v34 = vadd.f32 %v139_v26, %v103_v60  ;;  %222 = vst [vmem:[%s434_s2 + $0x10] sm:$0xff] %v206_v31  ;;  %vm177_vm8 = vcmp.ge.f32.partialorder %v161_v29, 0.0  ;;  %v193_v35 = vmul.f32 0.3, %v161_v29 }
  0x99   :  { %230 = vst [vmem:[%s434_s2 + $0x50] sm:$0xff] %v214_v32  ;;  %vm185_vm9 = vcmp.ge.f32.partialorder %v169_v30, 0.0  ;;  %v201_v36 = vmul.f32 0.3, %v169_v30  ;;  %vm176_vm10 = vcmp.ge.f32.partialorder %v160_v33, 0.0  ;;  %v154_v39 = vpop.permute.xlu1 %153  ;;  %v149_v40 = vpop.permute.xlu0 %148 }
  0x9a   :  { %vm184_vm11 = vcmp.ge.f32.partialorder %v168_v34, 0.0  ;;  %v192_v37 = vmul.f32 0.3, %v160_v33  ;;  %v200_v38 = vmul.f32 0.3, %v168_v34  ;;  %v209_v41 = vsel %vm177_vm8, %v161_v29, %v193_v35 }
  0x9b   :  { %v217_v42 = vsel %vm185_vm9, %v169_v30, %v201_v36  ;;  %v163_v43 = vadd.f32 %v154_v39, %v98_v3  ;;  %v171_v44 = vadd.f32 %v154_v39, %v106_v4  ;;  %225 = vst [vmem:[%s434_s2 + $0x28] sm:$0xff] %v209_v41  ;;  %v162_v47 = vadd.f32 %v149_v40, %v378_v5 }
  0x9c   :  { %233 = vst [vmem:[%s434_s2 + $0x68] sm:$0xff] %v217_v42  ;;  %v208_v45 = vsel %vm176_vm10, %v160_v33, %v192_v37  ;;  %v216_v46 = vsel %vm184_vm11, %v168_v34, %v200_v38  ;;  %v170_v48 = vadd.f32 %v149_v40, %v380_v6 }
  0x9d   :  { %224 = vst [vmem:[%s434_s2 + $0x20] sm:$0xff] %v208_v45  ;;  %232 = vst [vmem:[%s434_s2 + $0x60] sm:$0xff] %v216_v46  ;;  %vm179_vm12 = vcmp.ge.f32.partialorder %v163_v43, 0.0  ;;  %vm187_vm13 = vcmp.ge.f32.partialorder %v171_v44, 0.0  ;;  %v195_v49 = vmul.f32 0.3, %v163_v43 }
  0x9e   :  { %v203_v50 = vmul.f32 0.3, %v171_v44  ;;  %vm178_vm14 = vcmp.ge.f32.partialorder %v162_v47, 0.0  ;;  %vm186_vm15 = vcmp.ge.f32.partialorder %v170_v48, 0.0  ;;  %v194_v51 = vmul.f32 0.3, %v162_v47 }
  0x9f   :  { %v202_v52 = vmul.f32 0.3, %v170_v48  ;;  %v211_v53 = vsel %vm179_vm12, %v163_v43, %v195_v49 }
  0xa0   :  { %v219_v54 = vsel %vm187_vm13, %v171_v44, %v203_v50  ;;  %227 = vst [vmem:[%s434_s2 + $0x38] sm:$0xff] %v211_v53  ;;  %v210_v55 = vsel %vm178_vm14, %v162_v47, %v194_v51 }
  0xa1   :  { %235 = vst [vmem:[%s434_s2 + $0x78] sm:$0xff] %v219_v54  ;;  %v218_v56 = vsel %vm186_vm15, %v170_v48, %v202_v52  ;;  %226 = vst [vmem:[%s434_s2 + $0x30] sm:$0xff] %v210_v55 }
  0xa2   :  { %234 = vst [vmem:[%s434_s2 + $0x70] sm:$0xff] %v218_v56 }

// kernel: _lambda_.10
= control target key start
LH: loop header
LB: loop body
LE: loop exit
PB: predicated region body
PF: predicated region fallthrough
CT: control target
= control target key end

     0   :  { %v1624_v0 = vmov 0   ;;  %s1625_s12 = smov 1   ;;  %vm422_vm0 = vcmask 7168   ;;  %s2169_s0 = inlined_call_operand.vmem [shape: f32[2,64,1], index: 0, kind: input, shape index: {}]   ;;  %s2170_s1 = inlined_call_operand.vmem [shape: bf16[2,64,128], index: 1, kind: input, shape index: {}, may-alias: {1,2,3}]   ;;  %s2171_s3 = inlined_call_operand.vmem [shape: bf16[2,64,128], index: 3, kind: input, shape index: {}, may-alias: {1,2,3}]   ;;  %s2172_s2 = inlined_call_operand.vmem [shape: bf16[2,64,128], index: 2, kind: input, shape index: {}, may-alias: {1,2,3}]   ;;  %s2173_s4 = inlined_call_operand.vmem [shape: bf16[64,192], index: 4, kind: input, shape index: {}]   ;;  %s2174_s5 = inlined_call_operand.vmem [shape: bf16[2,64,128], index: 5, kind: output, shape index: {0}]   ;;  %s2175_s6 = inlined_call_operand.vmem [shape: f32[1,64,2], index: 6, kind: output, shape index: {1}]  }
   0x1   :  { %1571 = vset.pattern.permute.xlu1 %v1624_v0  ;;  %1570 = vset.pattern.permute.xlu0 %v1624_v0  ;;  %v1319_v1 = vld [vmem:[%s2169_s0 + $0x70] sm:$0xff]  ;;  %v1539_v3 = vld [vmem:[%s2170_s1 + $0x18] sm:$0xff]   ;;  %v82_v23 = vld [vmem:[%s2169_s0 + $0x28] sm:$0xff] }
   0x2   :  { %v83_v2 = vld [vmem:[%s2169_s0 + $0x30] sm:$0xff]  ;;  %559 = vperm.xlu1 %1571, %v1319_v1   ;;  %v1320_v4 = vld [vmem:[%s2169_s0 + $0x78] sm:$0xff]  ;;  %v1416_v6 = vunpack.c.h.bf16 %v1539_v3  ;;  %v1415_v7 = vunpack.c.l.bf16 %v1539_v3  ;;  %935 = vmatprep.subr.bf16.mxu0 %v1624_v0  ;;  %v81_v24 = vld [vmem:[%s2169_s0 + $0x20] sm:$0xff] }
   0x3   :  { %487 = vperm.xlu0 %1570, %v83_v2   ;;  %v84_v5 = vld [vmem:[%s2169_s0 + $0x38] sm:$0xff]  ;;  %1106 = vmatprep.subr.bf16.mxu1 %v1624_v0  ;;  %v1538_v25 = vld [vmem:[%s2170_s1 + $0x10] sm:$0xff]   ;;  %v1318_v28 = vld [vmem:[%s2169_s0 + $0x68] sm:$0xff] }
   0x4   :  { %v1543_v8 = vld [vmem:[%s2170_s1 + $0x38] sm:$0xff]   ;;  %v137_v9 = vmul.f32 0.0, %v1416_v6  ;;  %v136_v10 = vmul.f32 0.0, %v1415_v7  ;;  %v1412_v26 = vunpack.c.h.bf16 %v1538_v25  ;;  %v1411_v27 = vunpack.c.l.bf16 %v1538_v25  ;;  %v1317_v29 = vld [vmem:[%s2169_s0 + $0x60] sm:$0xff]  ;;  %v1542_v30 = vld [vmem:[%s2170_s1 + $0x30] sm:$0xff]  }
   0x5   :  { %v1432_v11 = vunpack.c.h.bf16 %v1543_v8  ;;  %v1431_v12 = vunpack.c.l.bf16 %v1543_v8  ;;  %v1550_v13 = vld [vmem:[%s2172_s2 + $0x38] sm:$0xff]   ;;  %v1428_v33 = vunpack.c.h.bf16 %v1542_v30  ;;  %v1427_v34 = vunpack.c.l.bf16 %v1542_v30  ;;  %v1549_v35 = vld [vmem:[%s2172_s2 + $0x30] sm:$0xff]   ;;  %v1537_v47 = vld [vmem:[%s2170_s1 + $0x8] sm:$0xff]  }
   0x6   :  { %564 = vperm.xlu1 %1571, %v1320_v4   ;;  %v1546_v14 = vld [vmem:[%s2172_s2 + $0x18] sm:$0xff]   ;;  %v1463_v15 = vunpack.c.l.bf16 %v1550_v13  ;;  %v1464_v16 = vunpack.c.h.bf16 %v1550_v13  ;;  %v135_v31 = vmul.f32 0.0, %v1412_v26  ;;  %v134_v32 = vmul.f32 0.0, %v1411_v27  ;;  %v1545_v36 = vld [vmem:[%s2172_s2 + $0x10] sm:$0xff]   ;;  %v1541_v52 = vld [vmem:[%s2170_s1 + $0x28] sm:$0xff]  }
   0x7   :  { %492 = vperm.xlu0 %1570, %v84_v5   ;;  %v145_v17 = vmul.f32 0.0, %v1432_v11  ;;  %v144_v18 = vmul.f32 0.0, %v1431_v12  ;;  %v1447_v19 = vunpack.c.l.bf16 %v1546_v14  ;;  %v1448_v20 = vunpack.c.h.bf16 %v1546_v14  ;;  %v80_v45 = vld [vmem:[%s2169_s0 + $0x18] sm:$0xff]  ;;  %v79_v46 = vld [vmem:[%s2169_s0 + $0x10] sm:$0xff]  ;;  %v1548_v57 = vld [vmem:[%s2172_s2 + $0x28] sm:$0xff]  }
   0x8   :  { %v1577_v21 = vpack.i.bf16 %v1464_v16, %v1463_v15  ;;  %v1459_v37 = vunpack.c.l.bf16 %v1549_v35  ;;  %v1460_v38 = vunpack.c.h.bf16 %v1549_v35  ;;  %v143_v39 = vmul.f32 0.0, %v1428_v33  ;;  %v1316_v50 = vld [vmem:[%s2169_s0 + $0x58] sm:$0xff]  ;;  %v1315_v51 = vld [vmem:[%s2169_s0 + $0x50] sm:$0xff]  ;;  %v1544_v58 = vld [vmem:[%s2172_s2 + $0x8] sm:$0xff]  }
   0x9   :  { %v1572_v22 = vpack.i.bf16 %v1448_v20, %v1447_v19  ;;  %v142_v40 = vmul.f32 0.0, %v1427_v34  ;;  %v1443_v41 = vunpack.c.l.bf16 %v1545_v36  ;;  %v1444_v42 = vunpack.c.h.bf16 %v1545_v36  ;;  %v78_v4 = vld [vmem:[%s2169_s0 + $0x8] sm:$0xff]  ;;  %v77_v5 = vld [vmem:[%s2169_s0] sm:$0xff] }
   0xa   :  { %260 = vrot.lane.b32.xlu1 %v137_v9, %s1625_s12  ;;  %v1587_v43 = vpack.i.bf16 %v1460_v38, %v1459_v37  ;;  %v1408_v48 = vunpack.c.h.bf16 %v1537_v47  ;;  %v1407_v49 = vunpack.c.l.bf16 %v1537_v47  ;;  %v1424_v55 = vunpack.c.h.bf16 %v1541_v52  ;;  %v1402_v6 = vld [vmem:[%s2170_s1] sm:$0xff]   ;;  %v1314_v9 = vld [vmem:[%s2169_s0 + $0x48] sm:$0xff] }
   0xb   :  { %258 = vrot.lane.b32.xlu0 %v136_v10, %s1625_s12  ;;  %v1582_v44 = vpack.i.bf16 %v1444_v42, %v1443_v41  ;;  %v1423_v56 = vunpack.c.l.bf16 %v1541_v52  ;;  %v1455_v59 = vunpack.c.l.bf16 %v1548_v57  ;;  %v1456_v60 = vunpack.c.h.bf16 %v1548_v57  ;;  %v1313_v10 = vld [vmem:[%s2169_s0 + $0x40] sm:$0xff]  ;;  %s1627_s0 = smov 127  }
   0xc   :  { %v133_v53 = vmul.f32 0.0, %v1408_v48  ;;  %v132_v54 = vmul.f32 0.0, %v1407_v49  ;;  %v141_v61 = vmul.f32 0.0, %v1424_v55  ;;  %v1439_v63 = vunpack.c.l.bf16 %v1544_v58  ;;  %v1540_v11 = vld [vmem:[%s2170_s1 + $0x20] sm:$0xff]   ;;  %s1628_s1 = smov 126  }
   0xd   :  { %v140_v62 = vmul.f32 0.0, %v1423_v56  ;;  %v1440_v1 = vunpack.c.h.bf16 %v1544_v58  ;;  %v1597_v2 = vpack.i.bf16 %v1456_v60, %v1455_v59  ;;  %v1404_v7 = vunpack.c.h.bf16 %v1402_v6  ;;  %v1547_v16 = vld [vmem:[%s2172_s2 + $0x20] sm:$0xff]  }
   0xe   :  { %276 = vrot.lane.b32.xlu1 %v145_v17, %s1625_s12  ;;  %v1403_v8 = vunpack.c.l.bf16 %v1402_v6  ;;  %v1420_v14 = vunpack.c.h.bf16 %v1540_v11  ;;  %v1419_v15 = vunpack.c.l.bf16 %v1540_v11  ;;  %v1434_v17 = vld [vmem:[%s2172_s2] sm:$0xff]   ;;  %v1452_v19 = vunpack.c.h.bf16 %v1547_v16 }
   0xf   :  { %274 = vrot.lane.b32.xlu0 %v144_v18, %s1625_s12  ;;  %v1592_v3 = vpack.i.bf16 %v1440_v1, %v1439_v63  ;;  %v131_v12 = vmul.f32 0.0, %v1404_v7  ;;  %v1451_v18 = vunpack.c.l.bf16 %v1547_v16  ;;  %v1626_v26 = vmov 0.0|0.0  }
  0x10   :  { %v130_v13 = vmul.f32 0.0, %v1403_v8  ;;  %v139_v20 = vmul.f32 0.0, %v1420_v14  ;;  %v695_v33 = vlaneseq }
  0x12   :  { %1578 = vrot.lane.b32.xlu1 %v1577_v21, %s1625_s12  ;;  %v138_v21 = vmul.f32 0.0, %v1419_v15  ;;  %v1802_v36 = vand.u32 127, %v695_v33 }
  0x13   :  { %1573 = vrot.lane.b32.xlu0 %v1572_v22, %s1625_s12  ;;  %v1435_v22 = vunpack.c.l.bf16 %v1434_v17 }
  0x16   :  { %482 = vperm.xlu1 %1571, %v82_v23   ;;  %v1436_v23 = vunpack.c.h.bf16 %v1434_v17 }
  0x17   :  { %477 = vperm.xlu0 %1570, %v81_v24   ;;  %v1607_v24 = vpack.i.bf16 %v1452_v19, %v1451_v18 }
  0x18   :  { %v1602_v25 = vpack.i.bf16 %v1436_v23, %v1435_v22 }
  0x1a   :  { %554 = vperm.xlu1 %1571, %v1318_v28  }
  0x1b   :  { %549 = vperm.xlu0 %1570, %v1317_v29  }
  0x1e   :  { %256 = vrot.lane.b32.xlu1 %v135_v31, %s1625_s12 }
  0x1f   :  { %254 = vrot.lane.b32.xlu0 %v134_v32, %s1625_s12 }
  0x22   :  { %272 = vrot.lane.b32.xlu1 %v143_v39, %s1625_s12  ;;  %v701_v39 = vadd.s32 4294967295, %v1802_v36 }
  0x23   :  { %270 = vrot.lane.b32.xlu0 %v142_v40, %s1625_s12 }
  0x24   :  { %vm703_vm1 = vcmp.ge.s32.totalorder %v701_v39, 0  ;;  %vm705_vm2 = vcmp.lt.s32.totalorder %v701_v39, 8 }
  0x25   :  { %vm1811_vm5 = vmand %vm703_vm1, %vm705_vm2 }
  0x26   :  { %1588 = vrot.lane.b32.xlu1 %v1587_v43, %s1625_s12 }
  0x27   :  { %1583 = vrot.lane.b32.xlu0 %v1582_v44, %s1625_s12 }
  0x2a   :  { %472 = vperm.xlu1 %1571, %v80_v45  }
  0x2b   :  { %467 = vperm.xlu0 %1570, %v79_v46  }
  0x2e   :  { %544 = vperm.xlu1 %1571, %v1316_v50  }
  0x2f   :  { %539 = vperm.xlu0 %1570, %v1315_v51  }
  0x32   :  { %252 = vrot.lane.b32.xlu1 %v133_v53, %s1625_s12 }
  0x33   :  { %250 = vrot.lane.b32.xlu0 %v132_v54, %s1625_s12 }
  0x36   :  { %268 = vrot.lane.b32.xlu1 %v141_v61, %s1625_s12 }
  0x37   :  { %266 = vrot.lane.b32.xlu0 %v140_v62, %s1625_s12 }
  0x3a   :  { %1598 = vrot.lane.b32.xlu1 %v1597_v2, %s1625_s12 }
  0x3b   :  { %1593 = vrot.lane.b32.xlu0 %v1592_v3, %s1625_s12 }
  0x3e   :  { %462 = vperm.xlu1 %1571, %v78_v4  }
  0x3f   :  { %457 = vperm.xlu0 %1570, %v77_v5  }
  0x42   :  { %534 = vperm.xlu1 %1571, %v1314_v9  }
  0x43   :  { %529 = vperm.xlu0 %1570, %v1313_v10  }
  0x46   :  { %248 = vrot.lane.b32.xlu1 %v131_v12, %s1625_s12 }
  0x47   :  { %246 = vrot.lane.b32.xlu0 %v130_v13, %s1625_s12 }
  0x4a   :  { %264 = vrot.lane.b32.xlu1 %v139_v20, %s1625_s12 }
  0x4b   :  { %262 = vrot.lane.b32.xlu0 %v138_v21, %s1625_s12 }
  0x4e   :  { %1608 = vrot.lane.b32.xlu1 %v1607_v24, %s1625_s12 }
  0x4f   :  { %1603 = vrot.lane.b32.xlu0 %v1602_v25, %s1625_s12 }
  0x52   :  { %802 = vrot.lane.b32.xlu1 %v1626_v26, %s1627_s0 }
  0x56   :  { %818 = vrot.lane.b32.xlu1 %v1626_v26, %s1627_s0 }
  0x5a   :  { %798 = vrot.lane.b32.xlu1 %v1626_v26, %s1627_s0 }
  0x5e   :  { %814 = vrot.lane.b32.xlu1 %v1626_v26, %s1627_s0 }
  0x62   :  { %794 = vrot.lane.b32.xlu1 %v1626_v26, %s1627_s0 }
  0x66   :  { %810 = vrot.lane.b32.xlu1 %v1626_v26, %s1627_s0 }
  0x6a   :  { %790 = vrot.lane.b32.xlu1 %v1626_v26, %s1627_s0 }
  0x6e   :  { %806 = vrot.lane.b32.xlu1 %v1626_v26, %s1627_s0 }
  0x72   :  { %851 = vrot.lane.b32.xlu1 %v1626_v26, %s1628_s1 }
  0x76   :  { %867 = vrot.lane.b32.xlu1 %v1626_v26, %s1628_s1 }
  0x7a   :  { %847 = vrot.lane.b32.xlu1 %v1626_v26, %s1628_s1 }
  0x7d   :  { %v560_v27 = vpop.permute.xlu1 %559 }
  0x7e   :  { %v488_v28 = vpop.permute.xlu0 %487  ;;  %863 = vrot.lane.b32.xlu1 %v1626_v26, %s1628_s1 }
  0x81   :  { %v565_v29 = vpop.permute.xlu1 %564 }
  0x82   :  { %v493_v30 = vpop.permute.xlu0 %492  ;;  %843 = vrot.lane.b32.xlu1 %v1626_v26, %s1628_s1 }
  0x85   :  { %v261_v31 = vpop.permute.xlu1 %260 }
  0x86   :  { %v259_v32 = vpop.permute.xlu0 %258  ;;  %859 = vrot.lane.b32.xlu1 %v1626_v26, %s1628_s1 }
  0x89   :  { %v277_v34 = vpop.permute.xlu1 %276 }
  0x8a   :  { %v275_v35 = vpop.permute.xlu0 %274  ;;  %839 = vrot.lane.b32.xlu1 %v1626_v26, %s1628_s1 }
  0x8d   :  { %v1579_v37 = vpop.permute.xlu1 %1578 }
  0x8e   :  { %v1574_v38 = vpop.permute.xlu0 %1573  ;;  %v1581_v40 = vunpack.i.h.bf16 %v1579_v37  ;;  %v1580_v41 = vunpack.i.l.bf16 %v1579_v37  ;;  %855 = vrot.lane.b32.xlu1 %v1626_v26, %s1628_s1 }
  0x8f   :  { %v1576_v42 = vunpack.i.h.bf16 %v1574_v38  ;;  %v1575_v43 = vunpack.i.l.bf16 %v1574_v38 }
  0x90   :  { %v438_v44 = vsel %vm422_vm0, %v277_v34, %v1581_v40  ;;  %v437_v45 = vsel %vm422_vm0, %v275_v35, %v1580_v41 }
  0x91   :  { %v430_v46 = vsel %vm422_vm0, %v261_v31, %v1576_v42  ;;  %v429_v47 = vsel %vm422_vm0, %v259_v32, %v1575_v43  ;;  %v523_v48 = vmul.f32 %v488_v28, %v437_v45  ;;  %v525_v49 = vmul.f32 %v493_v30, %v438_v44  ;;  %v483_v52 = vpop.permute.xlu1 %482 }
  0x92   :  { %v509_v50 = vmul.f32 %v493_v30, %v430_v46  ;;  %v507_v51 = vmul.f32 %v488_v28, %v429_v47  ;;  %v478_v53 = vpop.permute.xlu0 %477 }
  0x93   :  { %v595_v54 = vadd.f32 %v560_v27, %v523_v48  ;;  %v597_v55 = vadd.f32 %v565_v29, %v525_v49 }
  0x94   :  { %v581_v56 = vadd.f32 %v565_v29, %v509_v50  ;;  %v579_v57 = vadd.f32 %v560_v27, %v507_v51 }
  0x95   :  { %v555_v58 = vpop.permute.xlu1 %554  ;;  %vm627_vm6 = vcmp.ge.f32.partialorder %v595_v54, 0.0  ;;  %vm629_vm7 = vcmp.ge.f32.partialorder %v597_v55, 0.0  ;;  %v659_v63 = vmul.f32 0.3, %v595_v54  ;;  %v661_v1 = vmul.f32 0.3, %v597_v55 }
  0x96   :  { %v550_v59 = vpop.permute.xlu0 %549  ;;  %vm611_vm3 = vcmp.ge.f32.partialorder %v579_v57, 0.0  ;;  %vm613_vm4 = vcmp.ge.f32.partialorder %v581_v56, 0.0  ;;  %v643_v60 = vmul.f32 0.3, %v579_v57  ;;  %v645_v61 = vmul.f32 0.3, %v581_v56 }
  0x97   :  { %v1827_v7 = vsel %vm627_vm6, %v595_v54, %v659_v63  ;;  %v1831_v11 = vsel %vm629_vm7, %v597_v55, %v661_v1  ;;  %vm922_vm6 = vcmask 523264   ;;  %vm820_vm7 = vcmask 1039360  }
  0x98   :  { %v1815_v2 = vsel %vm611_vm3, %v579_v57, %v643_v60  ;;  %v1817_v3 = vsel %vm613_vm4, %v581_v56, %v645_v61  ;;  %v741_v12 = vsel %vm1811_vm5, %v1827_v7, 0.0  ;;  %v743_v13 = vsel %vm1811_vm5, %v1831_v11, 0.0 }
  0x99   :  { %v725_v4 = vsel %vm1811_vm5, %v1815_v2, 0.0  ;;  %v727_v5 = vsel %vm1811_vm5, %v1817_v3, 0.0  ;;  %v1330_v6 = vpack.c.bf16 %v1817_v3, %v1815_v2  ;;  %v257_v8 = vpop.permute.xlu1 %256  ;;  %v1354_v14 = vpack.c.bf16 %v1831_v11, %v1827_v7 }
  0x9a   :  { %v255_v9 = vpop.permute.xlu0 %254  ;;  %v1829_v10 = vpack.c.bf16 %v727_v5, %v725_v4  ;;  %v1843_v17 = vpack.c.bf16 %v743_v13, %v741_v12 }
  0x9c   :  { %800 = vrot.lane.b32.xlu0 %v1829_v10, %s1627_s0 }
  0x9d   :  { %v273_v15 = vpop.permute.xlu1 %272 }
  0x9e   :  { %v271_v16 = vpop.permute.xlu0 %270 }
  0xa0   :  { %816 = vrot.lane.b32.xlu0 %v1843_v17, %s1627_s0 }
  0xa1   :  { %v1589_v18 = vpop.permute.xlu1 %1588 }
  0xa2   :  { %v1584_v19 = vpop.permute.xlu0 %1583  ;;  %v1591_v20 = vunpack.i.h.bf16 %v1589_v18  ;;  %v1590_v21 = vunpack.i.l.bf16 %v1589_v18 }
  0xa3   :  { %v1586_v22 = vunpack.i.h.bf16 %v1584_v19  ;;  %v1585_v23 = vunpack.i.l.bf16 %v1584_v19 }
  0xa4   :  { %v436_v24 = vsel %vm422_vm0, %v273_v15, %v1591_v20  ;;  %v435_v25 = vsel %vm422_vm0, %v271_v16, %v1590_v21 }
  0xa5   :  { %v428_v26 = vsel %vm422_vm0, %v257_v8, %v1586_v22  ;;  %v427_v27 = vsel %vm422_vm0, %v255_v9, %v1585_v23  ;;  %v521_v28 = vmul.f32 %v483_v52, %v436_v24  ;;  %v519_v29 = vmul.f32 %v478_v53, %v435_v25  ;;  %v473_v32 = vpop.permute.xlu1 %472 }
  0xa6   :  { %v505_v30 = vmul.f32 %v483_v52, %v428_v26  ;;  %v503_v31 = vmul.f32 %v478_v53, %v427_v27  ;;  %v468_v33 = vpop.permute.xlu0 %467 }
  0xa7   :  { %v593_v34 = vadd.f32 %v555_v58, %v521_v28  ;;  %v591_v35 = vadd.f32 %v550_v59, %v519_v29 }
  0xa8   :  { %v577_v37 = vadd.f32 %v555_v58, %v505_v30  ;;  %v575_v38 = vadd.f32 %v550_v59, %v503_v31 }
  0xa9   :  { %v545_v39 = vpop.permute.xlu1 %544  ;;  %vm623_vm10 = vcmp.ge.f32.partialorder %v591_v35, 0.0  ;;  %vm625_vm11 = vcmp.ge.f32.partialorder %v593_v34, 0.0  ;;  %v655_v43 = vmul.f32 0.3, %v591_v35  ;;  %v657_v44 = vmul.f32 0.3, %v593_v34 }
  0xaa   :  { %v540_v40 = vpop.permute.xlu0 %539  ;;  %vm607_vm8 = vcmp.ge.f32.partialorder %v575_v38, 0.0  ;;  %vm609_vm9 = vcmp.ge.f32.partialorder %v577_v37, 0.0  ;;  %v639_v41 = vmul.f32 0.3, %v575_v38  ;;  %v641_v42 = vmul.f32 0.3, %v577_v37 }
  0xab   :  { %v1863_v50 = vsel %vm623_vm10, %v591_v35, %v655_v43  ;;  %v1867_v54 = vsel %vm625_vm11, %v593_v34, %v657_v44  ;;  %vm1284_vm10 = vcmask 15360  }
  0xac   :  { %v1851_v45 = vsel %vm607_vm8, %v575_v38, %v639_v41  ;;  %v1853_v46 = vsel %vm609_vm9, %v577_v37, %v641_v42  ;;  %v737_v55 = vsel %vm1811_vm5, %v1863_v50, 0.0  ;;  %v739_v56 = vsel %vm1811_vm5, %v1867_v54, 0.0  ;;  %vm1977_vm8 = vmpackc.low %vm1811_vm5, %vm1811_vm5 }
  0xad   :  { %v721_v47 = vsel %vm1811_vm5, %v1851_v45, 0.0  ;;  %v723_v48 = vsel %vm1811_vm5, %v1853_v46, 0.0  ;;  %v1333_v49 = vpack.c.bf16 %v1853_v46, %v1851_v45  ;;  %v253_v51 = vpop.permute.xlu1 %252  ;;  %v1357_v57 = vpack.c.bf16 %v1867_v54, %v1863_v50 }
  0xae   :  { %v251_v52 = vpop.permute.xlu0 %250  ;;  %v1865_v53 = vpack.c.bf16 %v723_v48, %v721_v47  ;;  %v1879_v60 = vpack.c.bf16 %v739_v56, %v737_v55  ;;  %vm747_vm9 = vcmp.lt.s32.totalorder %v1802_v36, 8 }
  0xb0   :  { %796 = vrot.lane.b32.xlu0 %v1865_v53, %s1627_s0 }
  0xb1   :  { %v269_v58 = vpop.permute.xlu1 %268 }
  0xb2   :  { %v267_v59 = vpop.permute.xlu0 %266 }
  0xb4   :  { %812 = vrot.lane.b32.xlu0 %v1879_v60, %s1627_s0 }
  0xb5   :  { %v1599_v61 = vpop.permute.xlu1 %1598 }
  0xb6   :  { %v1594_v63 = vpop.permute.xlu0 %1593  ;;  %v1601_v1 = vunpack.i.h.bf16 %v1599_v61  ;;  %v1600_v4 = vunpack.i.l.bf16 %v1599_v61 }
  0xb7   :  { %v1596_v5 = vunpack.i.h.bf16 %v1594_v63  ;;  %v1595_v8 = vunpack.i.l.bf16 %v1594_v63 }
  0xb8   :  { %v434_v9 = vsel %vm422_vm0, %v269_v58, %v1601_v1  ;;  %v433_v12 = vsel %vm422_vm0, %v267_v59, %v1600_v4 }
  0xb9   :  { %v426_v13 = vsel %vm422_vm0, %v253_v51, %v1596_v5  ;;  %v425_v15 = vsel %vm422_vm0, %v251_v52, %v1595_v8  ;;  %v517_v16 = vmul.f32 %v473_v32, %v434_v9  ;;  %v515_v18 = vmul.f32 %v468_v33, %v433_v12  ;;  %v463_v21 = vpop.permute.xlu1 %462 }
  0xba   :  { %v501_v19 = vmul.f32 %v473_v32, %v426_v13  ;;  %v499_v20 = vmul.f32 %v468_v33, %v425_v15  ;;  %v458_v22 = vpop.permute.xlu0 %457 }
  0xbb   :  { %v589_v23 = vadd.f32 %v545_v39, %v517_v16  ;;  %v587_v24 = vadd.f32 %v540_v40, %v515_v18 }
  0xbc   :  { %v573_v25 = vadd.f32 %v545_v39, %v501_v19  ;;  %v571_v26 = vadd.f32 %v540_v40, %v499_v20 }
  0xbd   :  { %v535_v27 = vpop.permute.xlu1 %534  ;;  %vm619_vm14 = vcmp.ge.f32.partialorder %v587_v24, 0.0  ;;  %vm621_vm15 = vcmp.ge.f32.partialorder %v589_v23, 0.0  ;;  %v651_v31 = vmul.f32 0.3, %v587_v24  ;;  %v653_v34 = vmul.f32 0.3, %v589_v23 }
  0xbe   :  { %v530_v28 = vpop.permute.xlu0 %529  ;;  %vm603_vm12 = vcmp.ge.f32.partialorder %v571_v26, 0.0  ;;  %vm605_vm13 = vcmp.ge.f32.partialorder %v573_v25, 0.0  ;;  %v635_v29 = vmul.f32 0.3, %v571_v26  ;;  %v637_v30 = vmul.f32 0.3, %v573_v25 }
  0xbf   :  { %v1899_v39 = vsel %vm619_vm14, %v587_v24, %v651_v31  ;;  %v1901_v43 = vsel %vm621_vm15, %v589_v23, %v653_v34 }
  0xc0   :  { %v1887_v35 = vsel %vm603_vm12, %v571_v26, %v635_v29  ;;  %v1889_v32 = vsel %vm605_vm13, %v573_v25, %v637_v30  ;;  %v733_v44 = vsel %vm1811_vm5, %v1899_v39, 0.0  ;;  %v735_v47 = vsel %vm1811_vm5, %v1901_v43, 0.0 }
  0xc1   :  { %v717_v33 = vsel %vm1811_vm5, %v1887_v35, 0.0  ;;  %v719_v37 = vsel %vm1811_vm5, %v1889_v32, 0.0  ;;  %v1336_v38 = vpack.c.bf16 %v1889_v32, %v1887_v35  ;;  %v249_v40 = vpop.permute.xlu1 %248  ;;  %v1360_v48 = vpack.c.bf16 %v1901_v43, %v1899_v39 }
  0xc2   :  { %v247_v41 = vpop.permute.xlu0 %246  ;;  %v758_v42 = vpack.c.bf16 %v719_v37, %v717_v33  ;;  %v766_v55 = vpack.c.bf16 %v735_v47, %v733_v44  ;;  %v1614_v47 = vld [vmem:[%s2173_s4 + $0x4] ss:$8 sps:$4 sm:$0xff]  }
  0xc3   :  { %1341 = vmatprep.mubr.msk.bf16.mxu0 %vm922_vm6, %v1614_v47  ;;  %1365 = vmatprep.mubr.msk.bf16.mxu1 %vm922_vm6, %v1614_v47 }
  0xc4   :  { %792 = vrot.lane.b32.xlu0 %v758_v42, %s1627_s0 }
  0xc5   :  { %v265_v51 = vpop.permute.xlu1 %264 }
  0xc6   :  { %v263_v52 = vpop.permute.xlu0 %262 }
  0xc8   :  { %808 = vrot.lane.b32.xlu0 %v766_v55, %s1627_s0 }
  0xc9   :  { %v1609_v56 = vpop.permute.xlu1 %1608 }
  0xca   :  { %v1604_v58 = vpop.permute.xlu0 %1603  ;;  %v1611_v59 = vunpack.i.h.bf16 %v1609_v56  ;;  %v1610_v61 = vunpack.i.l.bf16 %v1609_v56 }
  0xcb   :  { %v1606_v63 = vunpack.i.h.bf16 %v1604_v58  ;;  %v1605_v1 = vunpack.i.l.bf16 %v1604_v58 }
  0xcc   :  { %v432_v4 = vsel %vm422_vm0, %v265_v51, %v1611_v59  ;;  %v431_v5 = vsel %vm422_vm0, %v263_v52, %v1610_v61 }
  0xcd   :  { %v424_v8 = vsel %vm422_vm0, %v249_v40, %v1606_v63  ;;  %v423_v9 = vsel %vm422_vm0, %v247_v41, %v1605_v1  ;;  %v513_v12 = vmul.f32 %v463_v21, %v432_v4  ;;  %v511_v13 = vmul.f32 %v458_v22, %v431_v5 }
  0xce   :  { %v497_v15 = vmul.f32 %v463_v21, %v424_v8  ;;  %v495_v16 = vmul.f32 %v458_v22, %v423_v9 }
  0xcf   :  { %v585_v18 = vadd.f32 %v535_v27, %v513_v12  ;;  %v583_v19 = vadd.f32 %v530_v28, %v511_v13 }
  0xd0   :  { %v569_v20 = vadd.f32 %v535_v27, %v497_v15  ;;  %v567_v23 = vadd.f32 %v530_v28, %v495_v16 }
  0xd1   :  { %vm615_vm3 = vcmp.ge.f32.partialorder %v583_v19, 0.0  ;;  %vm617_vm4 = vcmp.ge.f32.partialorder %v585_v18, 0.0  ;;  %v647_v26 = vmul.f32 0.3, %v583_v19  ;;  %v649_v29 = vmul.f32 0.3, %v585_v18 }
  0xd2   :  { %vm599_vm1 = vcmp.ge.f32.partialorder %v567_v23, 0.0  ;;  %vm601_vm2 = vcmp.ge.f32.partialorder %v569_v20, 0.0  ;;  %v631_v24 = vmul.f32 0.3, %v567_v23  ;;  %v633_v25 = vmul.f32 0.3, %v569_v20 }
  0xd3   :  { %v1929_v28 = vsel %vm615_vm3, %v583_v19, %v647_v26  ;;  %v1931_v33 = vsel %vm617_vm4, %v585_v18, %v649_v29  ;;  %v1615_v29 = vld [vmem:[%s2173_s4 + $0x14] ss:$8 sps:$4 sm:$0xff]  }
  0xd4   :  { %v1917_v30 = vsel %vm599_vm1, %v567_v23, %v631_v24  ;;  %v1919_v31 = vsel %vm601_vm2, %v569_v20, %v633_v25  ;;  %v729_v37 = vsel %vm1811_vm5, %v1929_v28, 0.0  ;;  %v731_v40 = vsel %vm1811_vm5, %v1931_v33, 0.0 }
  0xd5   :  { %v713_v21 = vsel %vm1811_vm5, %v1917_v30, 0.0  ;;  %v715_v22 = vsel %vm1811_vm5, %v1919_v31, 0.0  ;;  %v1339_v27 = vpack.c.bf16 %v1919_v31, %v1917_v30  ;;  %v1363_v41 = vpack.c.bf16 %v1931_v33, %v1929_v28  ;;  %v1623_v28 = vld [vmem:[%s2173_s4 + $0x30] ss:$8 sps:$4 sm:$0xff]  }
  0xd6   :  { %v756_v34 = vpack.c.bf16 %v715_v22, %v713_v21  ;;  %v764_v44 = vpack.c.bf16 %v731_v40, %v729_v37  ;;  %vm869_vm5 = vcmask 1031168   ;;  %v1617_v21 = vld [vmem:[%s2173_s4 + $0x10] ss:$8 sps:$4 sm:$0xff]   ;;  %v1618_v22 = vld [vmem:[%s2173_s4 + $0x24] ss:$8 sps:$4 sm:$0xff]  }
  0xd8   :  { %788 = vrot.lane.b32.xlu0 %v756_v34, %s1627_s0 }
  0xdc   :  { %804 = vrot.lane.b32.xlu0 %v764_v44, %s1627_s0 }
  0xe0   :  { %849 = vrot.lane.b32.xlu0 %v1829_v10, %s1628_s1  ;;  %v803_v10 = vpop.permute.xlu1 %802 }
  0xe4   :  { %865 = vrot.lane.b32.xlu0 %v1843_v17, %s1628_s1 }
  0xe8   :  { %845 = vrot.lane.b32.xlu0 %v1865_v53, %s1628_s1 }
  0xec   :  { %861 = vrot.lane.b32.xlu0 %v1879_v60, %s1628_s1  ;;  %v819_v60 = vpop.permute.xlu1 %818 }
  0xf0   :  { %841 = vrot.lane.b32.xlu0 %v758_v42, %s1628_s1  ;;  %v799_v52 = vpop.permute.xlu1 %798 }
  0xf4   :  { %857 = vrot.lane.b32.xlu0 %v766_v55, %s1628_s1  ;;  %v815_v58 = vpop.permute.xlu1 %814 }
  0xf8   :  { %837 = vrot.lane.b32.xlu0 %v756_v34, %s1628_s1  ;;  %v795_v63 = vpop.permute.xlu1 %794 }
  0xfc   :  { %853 = vrot.lane.b32.xlu0 %v764_v44, %s1628_s1  ;;  %v811_v1 = vpop.permute.xlu1 %810 }
 0x100   :  { %v791_v5 = vpop.permute.xlu1 %790 }
 0x104   :  { %v807_v13 = vpop.permute.xlu1 %806 }
 0x108   :  { %v852_v15 = vpop.permute.xlu1 %851 }
 0x10c   :  { %v868_v16 = vpop.permute.xlu1 %867 }
 0x10e   :  { %v801_v17 = vpop.permute.xlu0 %800 }
 0x10f   :  { %v824_v53 = vsel %vm820_vm7, %v801_v17, %v803_v10 }
 0x110   :  { %936 = vmatpush1.bf16.msra.mxu0 %v824_v53  ;;  %v848_v24 = vpop.permute.xlu1 %847 }
 0x111   :  { %937 = vmatprep.subr.bf16.mxu0 %v1624_v0 }
 0x112   :  { %v817_v42 = vpop.permute.xlu0 %816 }
 0x113   :  { %v828_v51 = vsel %vm820_vm7, %v817_v42, %v819_v60 }
 0x114   :  { %1107 = vmatpush1.bf16.msra.mxu1 %v828_v51  ;;  %v864_v2 = vpop.permute.xlu1 %863 }
 0x115   :  { %1108 = vmatprep.subr.bf16.mxu1 %v1624_v0 }
 0x118   :  { %v844_v7 = vpop.permute.xlu1 %843 }
 0x11c   :  { %v860_v45 = vpop.permute.xlu1 %859 }
 0x122   :  { %v797_v55 = vpop.permute.xlu0 %796 }
 0x123   :  { %v823_v56 = vsel %vm820_vm7, %v797_v55, %v799_v52 }
 0x124   :  { %938 = vmatpush1.bf16.msra.mxu0 %v823_v56 }
 0x125   :  { %939 = vmatprep.subr.bf16.mxu0 %v1624_v0 }
 0x126   :  { %v813_v59 = vpop.permute.xlu0 %812 }
 0x127   :  { %v827_v61 = vsel %vm820_vm7, %v813_v59, %v815_v58 }
 0x128   :  { %1109 = vmatpush1.bf16.msra.mxu1 %v827_v61 }
 0x129   :  { %1110 = vmatprep.subr.bf16.mxu1 %v1624_v0 }
 0x136   :  { %v793_v4 = vpop.permute.xlu0 %792 }
 0x137   :  { %v822_v8 = vsel %vm820_vm7, %v793_v4, %v795_v63 }
 0x138   :  { %940 = vmatpush1.bf16.msra.mxu0 %v822_v8 }
 0x139   :  { %941 = vmatprep.subr.bf16.mxu0 %v1624_v0 }
 0x13a   :  { %v809_v9 = vpop.permute.xlu0 %808 }
 0x13b   :  { %v826_v12 = vsel %vm820_vm7, %v809_v9, %v811_v1 }
 0x13c   :  { %1111 = vmatpush1.bf16.msra.mxu1 %v826_v12 }
 0x13d   :  { %1112 = vmatprep.subr.bf16.mxu1 %v1624_v0 }
 0x14a   :  { %v789_v18 = vpop.permute.xlu0 %788 }
 0x14b   :  { %v821_v19 = vsel %vm820_vm7, %v789_v18, %v791_v5 }
 0x14c   :  { %942 = vmatpush1.bf16.msra.mxu0 %v821_v19 }
 0x14d   :  { %943 = vmatprep.subr.bf16.mxu0 %v1624_v0 }
 0x14e   :  { %v805_v23 = vpop.permute.xlu0 %804 }
 0x14f   :  { %v825_v25 = vsel %vm820_vm7, %v805_v23, %v807_v13 }
 0x150   :  { %1331 = vmatpush1.bf16.msk.msra.mxu0 %vm1977_vm8, %v1330_v6  ;;  %1113 = vmatpush1.bf16.msra.mxu1 %v825_v25 }
 0x151   :  { %945 = vmatprep.subr.bf16.mxu0 %v1624_v0  ;;  %1114 = vmatprep.subr.bf16.mxu1 %v1624_v0 }
 0x152   :  { %v850_v62 = vpop.permute.xlu0 %849 }
 0x154   :  { %1334 = vmatpush1.bf16.msk.msra.mxu0 %vm1977_vm8, %v1333_v49  ;;  %1355 = vmatpush1.bf16.msk.msra.mxu1 %vm1977_vm8, %v1354_v14  ;;  %v873_v14 = vsel %vm869_vm5, %v850_v62, %v852_v15 }
 0x155   :  { %947 = vmatprep.subr.bf16.mxu0 %v1624_v0  ;;  %1116 = vmatprep.subr.bf16.mxu1 %v1624_v0 }
 0x156   :  { %v866_v3 = vpop.permute.xlu0 %865 }
 0x157   :  { %v877_v50 = vsel %vm869_vm5, %v866_v3, %v868_v16 }
 0x158   :  { %1337 = vmatpush1.bf16.msk.msra.mxu0 %vm1977_vm8, %v1336_v38  ;;  %1358 = vmatpush1.bf16.msk.msra.mxu1 %vm1977_vm8, %v1357_v57  ;;  %v840_v57 = vpop.permute.xlu1 %839 }
 0x159   :  { %949 = vmatprep.subr.bf16.mxu0 %v1624_v0  ;;  %1118 = vmatprep.subr.bf16.mxu1 %v1624_v0 }
 0x15a   :  { %v846_v6 = vpop.permute.xlu0 %845 }
 0x15b   :  { %v872_v49 = vsel %vm869_vm5, %v846_v6, %v848_v24 }
 0x15c   :  { %1340 = vmatpush1.bf16.msk.msra.mxu0 %vm1977_vm8, %v1339_v27  ;;  %1361 = vmatpush1.bf16.msk.msra.mxu1 %vm1977_vm8, %v1360_v48  ;;  %v1612_v48 = vld [vmem:[%s2173_s4] ss:$8 sps:$4 sm:$0xff]   ;;  %v856_v26 = vpop.permute.xlu1 %855  ;;  %v1621_v27 = vld [vmem:[%s2173_s4 + $0x34] ss:$8 sps:$4 sm:$0xff]  }
 0x15d   :  { %959 = vmatprep.subr.bf16.mxu0 %v1624_v0  ;;  %1120 = vmatprep.subr.bf16.mxu1 %v1624_v0 }
 0x15e   :  { %v862_v11 = vpop.permute.xlu0 %861 }
 0x15f   :  { %v876_v32 = vsel %vm869_vm5, %v862_v11, %v864_v2 }
 0x160   :  { %960 = vmatpush2.bf16.msra.mxu0 %v873_v14  ;;  %1364 = vmatpush1.bf16.msk.msra.mxu1 %vm1977_vm8, %v1363_v41 }
 0x161   :  { %961 = vmatprep.subr.bf16.mxu0 %v1624_v0  ;;  %1130 = vmatprep.subr.bf16.mxu1 %v1624_v0 }
 0x162   :  { %v842_v46 = vpop.permute.xlu0 %841 }
 0x163   :  { %v871_v35 = vsel %vm869_vm5, %v842_v46, %v844_v7 }
 0x164   :  { %962 = vmatpush2.bf16.msra.mxu0 %v872_v49  ;;  %1131 = vmatpush2.bf16.msra.mxu1 %v877_v50 }
 0x165   :  { %963 = vmatprep.subr.bf16.mxu0 %v1624_v0  ;;  %1132 = vmatprep.subr.bf16.mxu1 %v1624_v0 }
 0x166   :  { %v858_v54 = vpop.permute.xlu0 %857 }
 0x167   :  { %v875_v43 = vsel %vm869_vm5, %v858_v54, %v860_v45 }
 0x168   :  { %964 = vmatpush2.bf16.msra.mxu0 %v871_v35  ;;  %1133 = vmatpush2.bf16.msra.mxu1 %v876_v32 }
 0x169   :  { %965 = vmatprep.subr.bf16.mxu0 %v1624_v0  ;;  %1134 = vmatprep.subr.bf16.mxu1 %v1624_v0 }
 0x16a   :  { %v838_v38 = vpop.permute.xlu0 %837 }
 0x16b   :  { %v870_v39 = vsel %vm869_vm5, %v838_v38, %v840_v57 }
 0x16c   :  { %966 = vmatpush2.bf16.msra.mxu0 %v870_v39  ;;  %1135 = vmatpush2.bf16.msra.mxu1 %v875_v43 }
 0x16d   :  { %1136 = vmatprep.subr.bf16.mxu1 %v1624_v0  ;;  %v1620_v0 = vld [vmem:[%s2173_s4 + $0x20] ss:$8 sps:$4 sm:$0xff]  }
 0x16e   :  { %v854_v30 = vpop.permute.xlu0 %853 }
 0x16f   :  { %968 = vmatmul.mubr.bf16.vlgmr.msra.gmra.mxu0 %v1612_v48  ;;  %v874_v31 = vsel %vm869_vm5, %v854_v30, %v856_v26 }
 0x170   :  { %1137 = vmatpush2.bf16.msra.mxu1 %v874_v31  ;;  %1342 = vmatprep.mubr.msk.bf16.mxu0 %vm922_vm6, %v1615_v29 }
 0x173   :  { %1139 = vmatmul.mubr.bf16.vlgmr.msra.gmra.mxu1 %v1612_v48 }
 0x174   :  { %1366 = vmatprep.mubr.msk.bf16.mxu1 %vm922_vm6, %v1615_v29 }
 0x177   :  { %976 = vmatmul.mubr.bf16.gmra.mxu0 %v1617_v21 }
 0x178   :  { %1343 = vmatprep.mubr.msk.bf16.mxu0 %vm922_vm6, %v1618_v22 }
 0x17b   :  { %1147 = vmatmul.mubr.bf16.gmra.mxu1 %v1617_v21 }
 0x17c   :  { %1367 = vmatprep.mubr.msk.bf16.mxu1 %vm922_vm6, %v1618_v22 }
 0x17f   :  { %984 = vmatmul.mubr.bf16.gmra.mxu0 %v1620_v0 }
 0x180   :  { %1344 = vmatprep.mubr.msk.bf16.mxu0 %vm922_vm6, %v1621_v27 }
 0x183   :  { %1155 = vmatmul.mubr.bf16.gmra.mxu1 %v1620_v0 }
 0x184   :  { %1368 = vmatprep.mubr.msk.bf16.mxu1 %vm922_vm6, %v1621_v27 }
 0x187   :  { %992 = vmatmul.mubr.bf16.gmra.mxu0 %v1623_v28 }
 0x18b   :  { %1163 = vmatmul.mubr.bf16.gmra.mxu1 %v1623_v28 }
 0x22f   :  { %v969_v34 = vpop.f32.mrf.mxu0 }
 0x230   :  { %v1042_v33 = vsel %vm747_vm9, %v969_v34, 0.0 }
 0x231   :  { %v971_v37 = vpop.f32.mrf.mxu0  ;;  %1050 = vadd.xlane.f32.xlu0 %v1042_v33  ;;  %v1074_v60 = vmul.f32 %v1042_v33, %v1042_v33 }
 0x233   :  { %v972_v40 = vpop.f32.mrf.mxu0  ;;  %v1140_v41 = vpop.f32.mrf.mxu1 }
 0x234   :  { %v1500_v44 = vpack.c.bf16 %v972_v40, %v969_v34  ;;  %v1212_v47 = vsel %vm747_vm9, %v1140_v41, 0.0  ;;  %v1043_v51 = vsel %vm747_vm9, %v972_v40, 0.0 }
 0x235   :  { %v974_v10 = vpop.f32.mrf.mxu0  ;;  %1220 = vadd.xlane.f32.xlu1 %v1212_v47  ;;  %v1142_v17 = vpop.f32.mrf.mxu1  ;;  %v1244_v59 = vmul.f32 %v1212_v47, %v1212_v47  ;;  %v1075_v61 = vmul.f32 %v1043_v51, %v1043_v51 }
 0x236   :  { %1501 = vst [vmem:[%s2174_s5] sm:$0xff] %v1500_v44  }
 0x237   :  { %v1143_v53 = vpop.f32.mrf.mxu1  ;;  %v977_v42 = vpop.f32.mrf.mxu0 }
 0x238   :  { %v1520_v52 = vpack.c.bf16 %v1143_v53, %v1140_v41  ;;  %v1213_v55 = vsel %vm747_vm9, %v1143_v53, 0.0  ;;  %v1044_v19 = vsel %vm747_vm9, %v977_v42, 0.0 }
 0x239   :  { %1082 = vadd.xlane.f32.xlu1 %v1074_v60  ;;  %1222 = vadd.xlane.f32.xlu0 %v1213_v55  ;;  %v1145_v56 = vpop.f32.mrf.mxu1  ;;  %v979_v58 = vpop.f32.mrf.mxu0  ;;  %v1245_v9 = vmul.f32 %v1213_v55, %v1213_v55  ;;  %v1076_v3 = vmul.f32 %v1044_v19, %v1044_v19 }
 0x23a   :  { %1561 = vst [vmem:[%s2174_s5 + $0x20] sm:$0xff] %v1520_v52  }
 0x23b   :  { %v980_v63 = vpop.f32.mrf.mxu0  ;;  %v1148_v1 = vpop.f32.mrf.mxu1 }
 0x23c   :  { %v1505_v4 = vpack.c.bf16 %v980_v63, %v977_v42  ;;  %v1214_v20 = vsel %vm747_vm9, %v1148_v1, 0.0  ;;  %v1045_v11 = vsel %vm747_vm9, %v980_v63, 0.0 }
 0x23d   :  { %1252 = vadd.xlane.f32.xlu1 %v1244_v59  ;;  %1084 = vadd.xlane.f32.xlu0 %v1075_v61  ;;  %v982_v5 = vpop.f32.mrf.mxu0  ;;  %v1150_v8 = vpop.f32.mrf.mxu1  ;;  %v1246_v49 = vmul.f32 %v1214_v20, %v1214_v20  ;;  %v1077_v43 = vmul.f32 %v1045_v11, %v1045_v11 }
 0x23e   :  { %1558 = vst [vmem:[%s2174_s5 + $0x8] sm:$0xff] %v1505_v4  }
 0x23f   :  { %v1151_v12 = vpop.f32.mrf.mxu1  ;;  %v985_v13 = vpop.f32.mrf.mxu0 }
 0x240   :  { %v1525_v15 = vpack.c.bf16 %v1151_v12, %v1148_v1  ;;  %v1215_v57 = vsel %vm747_vm9, %v1151_v12, 0.0  ;;  %v1046_v39 = vsel %vm747_vm9, %v985_v13, 0.0 }
 0x241   :  { %1052 = vadd.xlane.f32.xlu1 %v1043_v51  ;;  %1254 = vadd.xlane.f32.xlu0 %v1245_v9  ;;  %v1153_v16 = vpop.f32.mrf.mxu1  ;;  %v987_v18 = vpop.f32.mrf.mxu0  ;;  %v1247_v31 = vmul.f32 %v1215_v57, %v1215_v57  ;;  %v1078_v21 = vmul.f32 %v1046_v39, %v1046_v39 }
 0x242   :  { %1562 = vst [vmem:[%s2174_s5 + $0x28] sm:$0xff] %v1525_v15  }
 0x243   :  { %v988_v23 = vpop.f32.mrf.mxu0  ;;  %v1156_v24 = vpop.f32.mrf.mxu1 }
 0x244   :  { %v1510_v25 = vpack.c.bf16 %v988_v23, %v985_v13  ;;  %v1216_v30 = vsel %vm747_vm9, %v1156_v24, 0.0  ;;  %v1047_v22 = vsel %vm747_vm9, %v988_v23, 0.0 }
 0x245   :  { %1054 = vadd.xlane.f32.xlu0 %v1044_v19  ;;  %1224 = vadd.xlane.f32.xlu1 %v1214_v20  ;;  %v990_v62 = vpop.f32.mrf.mxu0  ;;  %v1158_v2 = vpop.f32.mrf.mxu1  ;;  %v1248_v0 = vmul.f32 %v1216_v30, %v1216_v30  ;;  %v1079_v34 = vmul.f32 %v1047_v22, %v1047_v22 }
 0x246   :  { %1559 = vst [vmem:[%s2174_s5 + $0x10] sm:$0xff] %v1510_v25  }
 0x247   :  { %v1159_v6 = vpop.f32.mrf.mxu1  ;;  %v993_v7 = vpop.f32.mrf.mxu0 }
 0x248   :  { %v1530_v14 = vpack.c.bf16 %v1159_v6, %v1156_v24  ;;  %v1217_v27 = vsel %vm747_vm9, %v1159_v6, 0.0  ;;  %v1048_v28 = vsel %vm747_vm9, %v993_v7, 0.0 }
 0x249   :  { %1056 = vadd.xlane.f32.xlu0 %v1045_v11  ;;  %1086 = vadd.xlane.f32.xlu1 %v1076_v3  ;;  %v1161_v45 = vpop.f32.mrf.mxu1  ;;  %v995_v46 = vpop.f32.mrf.mxu0  ;;  %v1249_v37 = vmul.f32 %v1217_v27, %v1217_v27  ;;  %v1080_v40 = vmul.f32 %v1048_v28, %v1048_v28 }
 0x24a   :  { %1563 = vst [vmem:[%s2174_s5 + $0x30] sm:$0xff] %v1530_v14  }
 0x24b   :  { %v996_v50 = vpop.f32.mrf.mxu0  ;;  %v1164_v54 = vpop.f32.mrf.mxu1 }
 0x24c   :  { %v1515_v35 = vpack.c.bf16 %v996_v50, %v993_v7  ;;  %v1218_v33 = vsel %vm747_vm9, %v1164_v54, 0.0  ;;  %v1049_v41 = vsel %vm747_vm9, %v996_v50, 0.0 }
 0x24d   :  { %1256 = vadd.xlane.f32.xlu1 %v1246_v49  ;;  %1226 = vadd.xlane.f32.xlu0 %v1215_v57  ;;  %v998_v32 = vpop.f32.mrf.mxu0  ;;  %v1166_v38 = vpop.f32.mrf.mxu1  ;;  %v1250_v44 = vmul.f32 %v1218_v33, %v1218_v33  ;;  %v1081_v10 = vmul.f32 %v1049_v41, %v1049_v41 }
 0x24e   :  { %1560 = vst [vmem:[%s2174_s5 + $0x18] sm:$0xff] %v1515_v35  }
 0x24f   :  { %v1167_v48 = vpop.f32.mrf.mxu1 }
 0x250   :  { %v1535_v26 = vpack.c.bf16 %v1167_v48, %v1164_v54  ;;  %v1219_v47 = vsel %vm747_vm9, %v1167_v48, 0.0 }
 0x251   :  { %1058 = vadd.xlane.f32.xlu1 %v1046_v39  ;;  %1088 = vadd.xlane.f32.xlu0 %v1077_v43  ;;  %v1169_v29 = vpop.f32.mrf.mxu1  ;;  %v1251_v17 = vmul.f32 %v1219_v47, %v1219_v47 }
 0x252   :  { %1564 = vst [vmem:[%s2174_s5 + $0x38] sm:$0xff] %v1535_v26  }
 0x255   :  { %1258 = vadd.xlane.f32.xlu0 %v1247_v31  ;;  %1228 = vadd.xlane.f32.xlu1 %v1216_v30 }
 0x259   :  { %1060 = vadd.xlane.f32.xlu0 %v1047_v22  ;;  %1090 = vadd.xlane.f32.xlu1 %v1078_v21 }
 0x25d   :  { %1260 = vadd.xlane.f32.xlu1 %v1248_v0  ;;  %1230 = vadd.xlane.f32.xlu0 %v1217_v27 }
 0x261   :  { %1062 = vadd.xlane.f32.xlu1 %v1048_v28  ;;  %1092 = vadd.xlane.f32.xlu0 %v1079_v34 }
 0x265   :  { %1262 = vadd.xlane.f32.xlu0 %v1249_v37  ;;  %1232 = vadd.xlane.f32.xlu1 %v1218_v33 }
 0x269   :  { %1064 = vadd.xlane.f32.xlu0 %v1049_v41  ;;  %1094 = vadd.xlane.f32.xlu1 %v1080_v40 }
 0x26d   :  { %1264 = vadd.xlane.f32.xlu1 %v1250_v44  ;;  %1234 = vadd.xlane.f32.xlu0 %v1219_v47 }
 0x271   :  { %1096 = vadd.xlane.f32.xlu0 %v1081_v10 }
 0x275   :  { %1266 = vadd.xlane.f32.xlu0 %v1251_v17 }
 0x2ba   :  { %v1051_v53 = vpop.xlane.xlu0 %1050 }
 0x2be   :  { %v1221_v60 = vpop.xlane.xlu1 %1220 }
 0x2bf   :  { %v1236_v56 = vadd.f32 %v1221_v60, %v1051_v53 }
 0x2c2   :  { %v1083_v42 = vpop.xlane.xlu1 %1082  ;;  %v1223_v51 = vpop.xlane.xlu0 %1222 }
 0x2c6   :  { %v1253_v52 = vpop.xlane.xlu1 %1252  ;;  %v1085_v55 = vpop.xlane.xlu0 %1084 }
 0x2c7   :  { %v1268_v58 = vadd.f32 %v1253_v52, %v1083_v42 }
 0x2c9   :  { %v1276_v59 = vsel %vm422_vm0, %v1236_v56, %v1268_v58 }
 0x2ca   :  { %1285 = vst.msk [vmem:[%s2175_s6] sm:$0xff] %vm1284_vm10, %v1276_v59  ;;  %v1053_v36 = vpop.xlane.xlu1 %1052  ;;  %v1255_v61 = vpop.xlane.xlu0 %1254 }
 0x2cb   :  { %v1237_v63 = vadd.f32 %v1223_v51, %v1053_v36  ;;  %v1269_v1 = vadd.f32 %v1255_v61, %v1085_v55 }
 0x2cd   :  { %v1277_v4 = vsel %vm422_vm0, %v1237_v63, %v1269_v1 }
 0x2ce   :  { %1286 = vst.msk [vmem:[%s2175_s6 + $0x8] sm:$0xff] %vm1284_vm10, %v1277_v4  ;;  %v1225_v5 = vpop.xlane.xlu1 %1224  ;;  %v1055_v8 = vpop.xlane.xlu0 %1054 }
 0x2cf   :  { %v1238_v16 = vadd.f32 %v1225_v5, %v1055_v8 }
 0x2d2   :  { %v1087_v9 = vpop.xlane.xlu1 %1086  ;;  %v1057_v12 = vpop.xlane.xlu0 %1056 }
 0x2d6   :  { %v1257_v13 = vpop.xlane.xlu1 %1256  ;;  %v1227_v15 = vpop.xlane.xlu0 %1226 }
 0x2d7   :  { %v1270_v18 = vadd.f32 %v1257_v13, %v1087_v9  ;;  %v1239_v62 = vadd.f32 %v1227_v15, %v1057_v12 }
 0x2d9   :  { %v1278_v19 = vsel %vm422_vm0, %v1238_v16, %v1270_v18 }
 0x2da   :  { %1287 = vst.msk [vmem:[%s2175_s6 + $0x10] sm:$0xff] %vm1284_vm10, %v1278_v19  ;;  %v1059_v20 = vpop.xlane.xlu1 %1058  ;;  %v1089_v23 = vpop.xlane.xlu0 %1088 }
 0x2de   :  { %v1229_v24 = vpop.xlane.xlu1 %1228  ;;  %v1259_v25 = vpop.xlane.xlu0 %1258 }
 0x2df   :  { %v1271_v2 = vadd.f32 %v1259_v25, %v1089_v23  ;;  %v1240_v45 = vadd.f32 %v1229_v24, %v1059_v20 }
 0x2e1   :  { %v1279_v3 = vsel %vm422_vm0, %v1239_v62, %v1271_v2 }
 0x2e2   :  { %1288 = vst.msk [vmem:[%s2175_s6 + $0x18] sm:$0xff] %vm1284_vm10, %v1279_v3  ;;  %v1091_v6 = vpop.xlane.xlu1 %1090  ;;  %v1061_v7 = vpop.xlane.xlu0 %1060 }
 0x2e6   :  { %v1261_v11 = vpop.xlane.xlu1 %1260  ;;  %v1231_v14 = vpop.xlane.xlu0 %1230 }
 0x2e7   :  { %v1272_v46 = vadd.f32 %v1261_v11, %v1091_v6  ;;  %v1241_v32 = vadd.f32 %v1231_v14, %v1061_v7 }
 0x2e9   :  { %v1280_v49 = vsel %vm422_vm0, %v1240_v45, %v1272_v46 }
 0x2ea   :  { %1289 = vst.msk [vmem:[%s2175_s6 + $0x20] sm:$0xff] %vm1284_vm10, %v1280_v49  ;;  %v1063_v50 = vpop.xlane.xlu1 %1062  ;;  %v1093_v54 = vpop.xlane.xlu0 %1092 }
 0x2ee   :  { %v1233_v57 = vpop.xlane.xlu1 %1232  ;;  %v1263_v35 = vpop.xlane.xlu0 %1262 }
 0x2ef   :  { %v1273_v38 = vadd.f32 %v1263_v35, %v1093_v54  ;;  %v1242_v30 = vadd.f32 %v1233_v57, %v1063_v50 }
 0x2f1   :  { %v1281_v39 = vsel %vm422_vm0, %v1241_v32, %v1273_v38 }
 0x2f2   :  { %1290 = vst.msk [vmem:[%s2175_s6 + $0x28] sm:$0xff] %vm1284_vm10, %v1281_v39  ;;  %v1095_v43 = vpop.xlane.xlu1 %1094  ;;  %v1065_v48 = vpop.xlane.xlu0 %1064 }
 0x2f6   :  { %v1265_v26 = vpop.xlane.xlu1 %1264  ;;  %v1235_v29 = vpop.xlane.xlu0 %1234 }
 0x2f7   :  { %v1274_v31 = vadd.f32 %v1265_v26, %v1095_v43  ;;  %v1243_v27 = vadd.f32 %v1235_v29, %v1065_v48 }
 0x2f9   :  { %v1282_v21 = vsel %vm422_vm0, %v1242_v30, %v1274_v31 }
 0x2fa   :  { %1291 = vst.msk [vmem:[%s2175_s6 + $0x30] sm:$0xff] %vm1284_vm10, %v1282_v21  ;;  %v1097_v22 = vpop.xlane.xlu0 %1096 }
 0x2fe   :  { %v1267_v0 = vpop.xlane.xlu0 %1266 }
 0x2ff   :  { %v1275_v28 = vadd.f32 %v1267_v0, %v1097_v22 }
 0x301   :  { %v1283_v34 = vsel %vm422_vm0, %v1243_v27, %v1275_v28 }
 0x302   :  { %1292 = vst.msk [vmem:[%s2175_s6 + $0x38] sm:$0xff] %vm1284_vm10, %v1283_v34 }

</bundles_post_ra>
